<compile_context>
chip_gen: v6e
topology: v6e:2x2x1
jax: 0.10.0
libtpu: 0.0.40
codegen_flags: <defaults>
</compile_context>

<pallas_src>
from functools import partial

import jax
import jax.numpy as jnp
import numpy as np
from jax.experimental import pallas as pl
from jax.experimental.pallas import tpu as pltpu


def _round_up(n, m):
    return ((n + m - 1) // m) * m


def _reorder_gate_cols(w, H, Hp):
    """(..., 4H) -> (..., 4Hp): gate k occupies lanes [k*Hp, k*Hp+H), rest zero."""
    pad = [(0, 0)] * (w.ndim - 1) + [(0, Hp - H)]
    slabs = [jnp.pad(w[..., k * H:(k + 1) * H], pad) for k in range(4)]
    return jnp.concatenate(slabs, axis=-1)


def _sigmoid1(x):
    # sigmoid(x) == 0.5*tanh(0.5*x) + 0.5 : one EUP op + cheap VPU mul/add
    # (vs exp + divide). Preserves the pad-lane invariant: sigmoid(0)=0.5.
    return 0.5 * jnp.tanh(0.5 * x) + 0.5


# ---------------------------------------------------------------------------
# Pallas kernel
# ---------------------------------------------------------------------------
def _make_kernel(num_layers: int, seq_len: int, bt: int, hp: int):
    T, BT, Hp = seq_len, bt, hp

    def kernel(x_ref, *refs):
        # refs: per layer l: w_ih (Din_p,4Hp), w_hh (Hp,4Hp), bias (1,4Hp)
        #       then: fc1_w (Hp,F1p), fc1_b (1,F1p), fc2_w (F1p,Op), fc2_b (1,Op),
        #       out_ref (BT,Op), xw scratch (T*BT,4Hp), hs scratch (T*BT,Hp)
        layer_refs = refs[:3 * num_layers]
        (fc1_w_ref, fc1_b_ref, fc2_w_ref, fc2_b_ref,
         out_ref, xw_ref, hs_ref) = refs[3 * num_layers:]

        h = jnp.zeros((BT, Hp), jnp.float32)
        for l in range(num_layers):
            w_ih_ref = layer_refs[3 * l]
            w_hh_ref = layer_refs[3 * l + 1]
            b_ref = layer_refs[3 * l + 2]

            # Hoisted input projection: one big MXU matmul per layer (eval-mode BN is
            # pre-folded into layer 0's w_ih / bias).  Result goes straight into VMEM
            # scratch so it is never a live vreg value across the unrolled t-loop.
            layer_in = x_ref[...] if l == 0 else hs_ref[...]     # (T*BT, Din)
            xw_ref[...] = jnp.dot(layer_in, w_ih_ref[...],
                                  preferred_element_type=jnp.float32) + b_ref[...]

            h = jnp.zeros((BT, Hp), jnp.float32)
            c = jnp.zeros((BT, Hp), jnp.float32)
            last = (l == num_layers - 1)
            for t in range(T):                                   # short static recurrence
                # Stream the per-step xw slice and W_hh from VMEM at the use site
                # (no large values held live across steps -> no spill traffic).
                gates = xw_ref[pl.ds(t * BT, BT), :] + jnp.dot(
                    h, w_hh_ref[...], preferred_element_type=jnp.float32)  # (BT, 4Hp)
                # 128-lane-aligned gate slabs -> whole-vreg slices, no lane relayouts.
                # Pad lanes: gates==0 -> i=f=o=0.5, g=0 -> c,h stay exactly 0.
                i = _sigmoid1(gates[:, 0 * Hp:1 * Hp])
                f = _sigmoid1(gates[:, 1 * Hp:2 * Hp])
                g = jnp.tanh(gates[:, 2 * Hp:3 * Hp])
                o = _sigmoid1(gates[:, 3 * Hp:4 * Hp])
                c = f * c + i * g
                h = o * jnp.tanh(c)
                if not last:
                    hs_ref[pl.ds(t * BT, BT), :] = h             # feed next layer; no jnp.stack

        # h == out[:, -1, :] of the top LSTM layer.
        # Dropout(p=0.5) is identity in eval mode (inference script).
        y = jnp.dot(h, fc1_w_ref[...], preferred_element_type=jnp.float32) + fc1_b_ref[...]
        y = jnp.maximum(y, 0.0)
        y = jnp.dot(y, fc2_w_ref[...], preferred_element_type=jnp.float32) + fc2_b_ref[...]
        out_ref[...] = jax.nn.sigmoid(y).astype(out_ref.dtype)

    return kernel


# ---------------------------------------------------------------------------
# One-time weight preprocessing (fold BN, reorder gates, pad) -- NOT per call
# ---------------------------------------------------------------------------
def prepare_params(params, *, num_layers, hidden):
    """Fold eval-mode BatchNorm into layer-0 LSTM input weights, reorder gate columns
    into 128-lane-aligned slabs, and zero-pad everything to vreg-aligned shapes.
    Call once at parameter-load time; pass the returned tuple to lstm_model_forward."""
    (bn_scale, bn_shift, lstm_weights, fc1_w, fc1_b, fc2_w, fc2_b) = params
    H = hidden
    D = lstm_weights[0][0].shape[0]
    F1 = fc1_w.shape[1]
    out_size = fc2_w.shape[1]

    Hp = _round_up(H, 128)          # padded hidden (gate slab width)
    F1p = _round_up(F1, 128)        # padded MLP hidden
    Op = _round_up(out_size, 128)   # lane-dense output

    flat = []
    for l, (w_ih_t, w_hh_t, b) in enumerate(lstm_weights):
        if l == 0:
            # Fold eval-mode BN affine: (x*s + sh) @ W + b == x @ (s[:,None]*W) + (sh @ W + b)
            b = b + bn_shift.reshape(1, D) @ w_ih_t
            w_ih_t = bn_scale.reshape(D, 1) * w_ih_t
            w_ih_p = _reorder_gate_cols(w_ih_t, H, Hp)                       # (D, 4Hp)
        else:
            w_ih_p = jnp.pad(_reorder_gate_cols(w_ih_t, H, Hp),
                             ((0, Hp - H), (0, 0)))                          # (Hp, 4Hp)
        w_hh_p = jnp.pad(_reorder_gate_cols(w_hh_t, H, Hp), ((0, Hp - H), (0, 0)))
        b_p = _reorder_gate_cols(b.reshape(1, 4 * H), H, Hp)                 # (1, 4Hp)
        flat += [w_ih_p, w_hh_p, b_p]

    flat += [jnp.pad(fc1_w, ((0, Hp - H), (0, F1p - F1))),
             jnp.pad(fc1_b.reshape(1, F1), ((0, 0), (0, F1p - F1))),
             jnp.pad(fc2_w, ((0, F1p - F1), (0, Op - out_size))),
             jnp.pad(fc2_b.reshape(1, out_size), ((0, 0), (0, Op - out_size)))]
    # Materialize now so no weight-prep ops run on the per-call path.
    flat = [jax.block_until_ready(w.astype(jnp.float32)) for w in flat]
    return tuple(flat)


# ---------------------------------------------------------------------------
# Forward: activation layout + pallas_call (jitted; weights are pre-padded)
# ---------------------------------------------------------------------------
@partial(jax.jit, static_argnames=("num_layers", "out_size"))
def lstm_model_forward(x, weights, *, num_layers, out_size):
    """x: (B, T, D) float32. weights: output of prepare_params. -> (B, out_size) f32."""
    B, T, D = x.shape
    Hp = weights[1].shape[0]        # layer-0 w_hh: (Hp, 4Hp)
    Op = weights[-1].shape[1]       # padded fc2 bias: (1, Op)

    # Batch tiling: sublane-aligned tile, grid axis marked "parallel" so v7x can run
    # batch tiles on both TensorCores (grid=(1,) and therefore a no-op at small batch).
    Bp = _round_up(B, 8)
    BT = min(Bp, 128)               # fill MXU rows up to 128 per tile when batch allows
    Bp = _round_up(Bp, BT)
    n_tiles = Bp // BT

    # Per-call activation prep only: pad batch, arrange batch-tile-major then t-major so
    # each grid step sees a contiguous (T*BT, D) slab of t-major rows.
    x_p = jnp.pad(x.astype(jnp.float32), ((0, Bp - B), (0, 0), (0, 0)))
    x_tiles = x_p.reshape(n_tiles, BT, T, D).transpose(0, 2, 1, 3).reshape(n_tiles * T * BT, D)

    kernel = _make_kernel(num_layers, T, BT, Hp)
    w_specs = [pl.BlockSpec(w.shape, lambda i: (0, 0)) for w in weights]

    out_p = pl.pallas_call(
        kernel,
        out_shape=jax.ShapeDtypeStruct((Bp, Op), jnp.float32),
        grid=(n_tiles,),
        in_specs=[pl.BlockSpec((T * BT, D), lambda i: (i, 0))] + w_specs,
        out_specs=pl.BlockSpec((BT, Op), lambda i: (i, 0)),
        scratch_shapes=[pltpu.VMEM((T * BT, 4 * Hp), jnp.float32),   # xw: hoisted projection
                        pltpu.VMEM((T * BT, Hp), jnp.float32)],      # hs: inter-layer slab
        compiler_params=pltpu.CompilerParams(
            dimension_semantics=("parallel",)),
    )(x_tiles, *weights)
    return out_p[:B, :out_size]


# ---------------------------------------------------------------------------
# Pure-JAX reference (original, unfolded math) for a correctness check
# ---------------------------------------------------------------------------
def reference_forward(x, params, *, num_layers, hidden):
    (bn_scale, bn_shift, lstm_weights, fc1_w, fc1_b, fc2_w, fc2_b) = params
    B, T, D = x.shape
    H = hidden
    layer_in = x * bn_scale[:, None, :] + bn_shift[:, None, :]
    h = jnp.zeros((B, H), jnp.float32)
    for (w_ih_t, w_hh_t, b) in lstm_weights:
        h = jnp.zeros((B, H), jnp.float32)
        c = jnp.zeros((B, H), jnp.float32)
        hs = []
        for t in range(T):
            gates = layer_in[:, t, :] @ w_ih_t + h @ w_hh_t + b
            i = jax.nn.sigmoid(gates[:, 0 * H:1 * H])
            f = jax.nn.sigmoid(gates[:, 1 * H:2 * H])
            g = jnp.tanh(gates[:, 2 * H:3 * H])
            o = jax.nn.sigmoid(gates[:, 3 * H:4 * H])
            c = f * c + i * g
            h = o * jnp.tanh(c)
            hs.append(h)
        layer_in = jnp.stack(hs, axis=1)
    y = jnp.maximum(h @ fc1_w + fc1_b, 0.0)
    return jax.nn.sigmoid(y @ fc2_w + fc2_b)


# ---------------------------------------------------------------------------
# Deterministic parameter construction (synthetic; shapes from the module)
# ---------------------------------------------------------------------------
def init_params(key, *, input_size, hidden, num_layers, output_size):
    keys = jax.random.split(key, 8 + 4 * num_layers)
    k_iter = iter(keys)

    def u(k, shape, scale):
        return jax.random.uniform(k, shape, jnp.float32, -scale, scale)

    # BatchNorm1d(input_size), eval mode: fold running stats into scale/shift.
    gamma = 1.0 + 0.1 * u(next(k_iter), (input_size,), 1.0)
    beta = 0.1 * u(next(k_iter), (input_size,), 1.0)
    running_mean = 0.2 * u(next(k_iter), (input_size,), 1.0)
    running_var = 1.0 + 0.1 * jnp.abs(u(next(k_iter), (input_size,), 1.0))
    eps = 1e-5
    bn_scale = (gamma / jnp.sqrt(running_var + eps)).reshape(1, input_size)
    bn_shift = (beta - running_mean * gamma / jnp.sqrt(running_var + eps)).reshape(1, input_size)

    # LSTM weights (PyTorch layout: (4H, Din)/(4H, H); stored pre-transposed here).
    s = 1.0 / np.sqrt(hidden)
    lstm_weights = []
    for l in range(num_layers):
        d_in = input_size if l == 0 else hidden
        w_ih_t = u(next(k_iter), (d_in, 4 * hidden), s)
        w_hh_t = u(next(k_iter), (hidden, 4 * hidden), s)
        b_ih = u(next(k_iter), (4 * hidden,), s)
        b_hh = u(next(k_iter), (4 * hidden,), s)
        lstm_weights.append((w_ih_t, w_hh_t, (b_ih + b_hh).reshape(1, 4 * hidden)))

    # fc: Linear(hidden, 64) -> ReLU -> Linear(64, output_size) -> Sigmoid
    fc1_w = u(next(k_iter), (hidden, 64), 1.0 / np.sqrt(hidden))
    fc1_b = u(next(k_iter), (1, 64), 1.0 / np.sqrt(hidden))
    fc2_w = u(next(k_iter), (64, output_size), 1.0 / np.sqrt(64))
    fc2_b = u(next(k_iter), (1, output_size), 1.0 / np.sqrt(64))

    return (bn_scale, bn_shift, lstm_weights, fc1_w, fc1_b, fc2_w, fc2_b)


if __name__ == "__main__":
    # Small shapes consistent with the checkpoint-defined hyperparameters.
    batch, seq_len = 4, 8
    input_size, hidden, num_layers, output_size = 16, 32, 2, 2

    key = jax.random.PRNGKey(0)
    k_x, k_p = jax.random.split(key)
    x = jax.random.normal(k_x, (batch, seq_len, input_size), jnp.float32)
    params = init_params(k_p, input_size=input_size, hidden=hidden,
                         num_layers=num_layers, output_size=output_size)

    # One-time weight preprocessing (folded/padded) -- off the per-call path.
    weights = prepare_params(params, num_layers=num_layers, hidden=hidden)

    out = lstm_model_forward(x, weights, num_layers=num_layers, out_size=output_size)
    out = jax.block_until_ready(out)

    ref = reference_forward(x, params, num_layers=num_layers, hidden=hidden)
    np.testing.assert_allclose(np.asarray(out), np.asarray(ref), rtol=1e-3, atol=1e-4)

    print("KERNEL_OK")
</pallas_src>

<mosaic_0001>
module attributes {stable_mosaic.version = 11 : i64} {
  func.func @kernel(%arg0: i32, %arg1: memref<64x16xf32, #tpu.memory_space<vmem>>, %arg2: memref<16x512xf32, #tpu.memory_space<vmem>>, %arg3: memref<128x512xf32, #tpu.memory_space<vmem>>, %arg4: memref<1x512xf32, #tpu.memory_space<vmem>>, %arg5: memref<128x512xf32, #tpu.memory_space<vmem>>, %arg6: memref<128x512xf32, #tpu.memory_space<vmem>>, %arg7: memref<1x512xf32, #tpu.memory_space<vmem>>, %arg8: memref<128x128xf32, #tpu.memory_space<vmem>>, %arg9: memref<1x128xf32, #tpu.memory_space<vmem>>, %arg10: memref<128x128xf32, #tpu.memory_space<vmem>>, %arg11: memref<1x128xf32, #tpu.memory_space<vmem>>, %arg12: memref<8x128xf32, #tpu.memory_space<vmem>>, %arg13: memref<64x512xf32, #tpu.memory_space<vmem>>, %arg14: memref<64x128xf32, #tpu.memory_space<vmem>>) attributes {dimension_semantics = [#tpu.dimension_semantics<parallel>], iteration_bounds = array<i64: 1>, scalar_prefetch = 0 : i64, scratch_operands = 2 : i64, tpu.core_type = #tpu.core_type<tc>, window_params = [{transform_indices = @transform_0, window_bounds = array<i64: 64, 16>}, {pipeline_mode = #tpu.pipeline_mode<synchronous>, transform_indices = @transform_1, window_bounds = array<i64: 16, 512>}, {pipeline_mode = #tpu.pipeline_mode<synchronous>, transform_indices = @transform_2, window_bounds = array<i64: 128, 512>}, {pipeline_mode = #tpu.pipeline_mode<synchronous>, transform_indices = @transform_3, window_bounds = array<i64: 1, 512>}, {pipeline_mode = #tpu.pipeline_mode<synchronous>, transform_indices = @transform_4, window_bounds = array<i64: 128, 512>}, {pipeline_mode = #tpu.pipeline_mode<synchronous>, transform_indices = @transform_5, window_bounds = array<i64: 128, 512>}, {pipeline_mode = #tpu.pipeline_mode<synchronous>, transform_indices = @transform_6, window_bounds = array<i64: 1, 512>}, {pipeline_mode = #tpu.pipeline_mode<synchronous>, transform_indices = @transform_7, window_bounds = array<i64: 128, 128>}, {pipeline_mode = #tpu.pipeline_mode<synchronous>, transform_indices = @transform_8, window_bounds = array<i64: 1, 128>}, {pipeline_mode = #tpu.pipeline_mode<synchronous>, transform_indices = @transform_9, window_bounds = array<i64: 128, 128>}, {pipeline_mode = #tpu.pipeline_mode<synchronous>, transform_indices = @transform_10, window_bounds = array<i64: 1, 128>}, {transform_indices = @transform_11, window_bounds = array<i64: 8, 128>}]} {
    %c0 = arith.constant 0 : index
    %c0_0 = arith.constant 0 : index
    %0 = vector.load %arg1[%c0, %c0_0] : memref<64x16xf32, #tpu.memory_space<vmem>>, vector<64x16xf32>
    %c0_1 = arith.constant 0 : index
    %c0_2 = arith.constant 0 : index
    %1 = vector.load %arg2[%c0_1, %c0_2] : memref<16x512xf32, #tpu.memory_space<vmem>>, vector<16x512xf32>
    %cst = arith.constant dense<0.000000e+00> : vector<64x512xf32>
    %2 = tpu.matmul %0, %1, %cst {dimension_numbers = #tpu.dot_dimension_numbers<[1], [0], [0], [1], [0, 0, 1, 1], [], []>} : vector<64x16xf32>, vector<16x512xf32>, vector<64x512xf32> -> vector<64x512xf32>
    %c0_3 = arith.constant 0 : index
    %c0_4 = arith.constant 0 : index
    %3 = vector.load %arg4[%c0_3, %c0_4] : memref<1x512xf32, #tpu.memory_space<vmem>>, vector<1x512xf32>
    %4 = vector.broadcast %3 : vector<1x512xf32> to vector<64x512xf32>
    %5 = arith.addf %2, %4 : vector<64x512xf32>
    %c0_5 = arith.constant 0 : index
    %c0_6 = arith.constant 0 : index
    %6 = vector.load %arg13[%c0_5, %c0_6] : memref<64x512xf32, #tpu.memory_space<vmem>>, vector<64x512xf32>
    tpu.vector_store %arg13[%c0_5, %c0_6], %5 {strides = array<i32>} : memref<64x512xf32, #tpu.memory_space<vmem>>, vector<64x512xf32>,
    %cst_7 = arith.constant 0.000000e+00 : f32
    %7 = vector.broadcast %cst_7 : f32 to vector<8x128xf32>
    %cst_8 = arith.constant 0.000000e+00 : f32
    %8 = vector.broadcast %cst_8 : f32 to vector<8x128xf32>
    %c0_9 = arith.constant 0 : index
    %c0_10 = arith.constant 0 : index
    %9 = vector.load %arg13[%c0_9, %c0_10] : memref<64x512xf32, #tpu.memory_space<vmem>>, vector<8x512xf32>
    %c0_11 = arith.constant 0 : index
    %c0_12 = arith.constant 0 : index
    %10 = vector.load %arg3[%c0_11, %c0_12] : memref<128x512xf32, #tpu.memory_space<vmem>>, vector<128x512xf32>
    %cst_13 = arith.constant dense<0.000000e+00> : vector<8x512xf32>
    %11 = tpu.matmul %7, %10, %cst_13 {dimension_numbers = #tpu.dot_dimension_numbers<[1], [0], [0], [1], [0, 0, 1, 1], [], []>} : vector<8x128xf32>, vector<128x512xf32>, vector<8x512xf32> -> vector<8x512xf32>
    %12 = arith.addf %9, %11 : vector<8x512xf32>
    %13 = vector.extract_strided_slice %12 {offsets = [0, 0], sizes = [8, 128], strides = [1, 1]} : vector<8x512xf32> to vector<8x128xf32>
    %cst_14 = arith.constant 5.000000e-01 : f32
    %14 = vector.broadcast %cst_14 : f32 to vector<8x128xf32>
    %15 = arith.mulf %14, %13 : vector<8x128xf32>
    %16 = math.tanh %15 : vector<8x128xf32>
    %cst_15 = arith.constant 5.000000e-01 : f32
    %17 = vector.broadcast %cst_15 : f32 to vector<8x128xf32>
    %18 = arith.mulf %17, %16 : vector<8x128xf32>
    %cst_16 = arith.constant 5.000000e-01 : f32
    %19 = vector.broadcast %cst_16 : f32 to vector<8x128xf32>
    %20 = arith.addf %18, %19 : vector<8x128xf32>
    %21 = vector.extract_strided_slice %12 {offsets = [0, 128], sizes = [8, 128], strides = [1, 1]} : vector<8x512xf32> to vector<8x128xf32>
    %cst_17 = arith.constant 5.000000e-01 : f32
    %22 = vector.broadcast %cst_17 : f32 to vector<8x128xf32>
    %23 = arith.mulf %22, %21 : vector<8x128xf32>
    %24 = math.tanh %23 : vector<8x128xf32>
    %cst_18 = arith.constant 5.000000e-01 : f32
    %25 = vector.broadcast %cst_18 : f32 to vector<8x128xf32>
    %26 = arith.mulf %25, %24 : vector<8x128xf32>
    %cst_19 = arith.constant 5.000000e-01 : f32
    %27 = vector.broadcast %cst_19 : f32 to vector<8x128xf32>
    %28 = arith.addf %26, %27 : vector<8x128xf32>
    %29 = vector.extract_strided_slice %12 {offsets = [0, 256], sizes = [8, 128], strides = [1, 1]} : vector<8x512xf32> to vector<8x128xf32>
    %30 = math.tanh %29 : vector<8x128xf32>
    %31 = vector.extract_strided_slice %12 {offsets = [0, 384], sizes = [8, 128], strides = [1, 1]} : vector<8x512xf32> to vector<8x128xf32>
    %cst_20 = arith.constant 5.000000e-01 : f32
    %32 = vector.broadcast %cst_20 : f32 to vector<8x128xf32>
    %33 = arith.mulf %32, %31 : vector<8x128xf32>
    %34 = math.tanh %33 : vector<8x128xf32>
    %cst_21 = arith.constant 5.000000e-01 : f32
    %35 = vector.broadcast %cst_21 : f32 to vector<8x128xf32>
    %36 = arith.mulf %35, %34 : vector<8x128xf32>
    %cst_22 = arith.constant 5.000000e-01 : f32
    %37 = vector.broadcast %cst_22 : f32 to vector<8x128xf32>
    %38 = arith.addf %36, %37 : vector<8x128xf32>
    %39 = arith.mulf %28, %8 : vector<8x128xf32>
    %40 = arith.mulf %20, %30 : vector<8x128xf32>
    %41 = arith.addf %39, %40 : vector<8x128xf32>
    %42 = math.tanh %41 : vector<8x128xf32>
    %43 = arith.mulf %38, %42 : vector<8x128xf32>
    %c0_23 = arith.constant 0 : index
    %c0_24 = arith.constant 0 : index
    %44 = vector.load %arg14[%c0_23, %c0_24] : memref<64x128xf32, #tpu.memory_space<vmem>>, vector<8x128xf32>
    tpu.vector_store %arg14[%c0_23, %c0_24], %43 {strides = array<i32>} : memref<64x128xf32, #tpu.memory_space<vmem>>, vector<8x128xf32>,
    %c8 = arith.constant 8 : index
    %c0_25 = arith.constant 0 : index
    %45 = vector.load %arg13[%c8, %c0_25] : memref<64x512xf32, #tpu.memory_space<vmem>>, vector<8x512xf32>
    %c0_26 = arith.constant 0 : index
    %c0_27 = arith.constant 0 : index
    %46 = vector.load %arg3[%c0_26, %c0_27] : memref<128x512xf32, #tpu.memory_space<vmem>>, vector<128x512xf32>
    %cst_28 = arith.constant dense<0.000000e+00> : vector<8x512xf32>
    %47 = tpu.matmul %43, %46, %cst_28 {dimension_numbers = #tpu.dot_dimension_numbers<[1], [0], [0], [1], [0, 0, 1, 1], [], []>} : vector<8x128xf32>, vector<128x512xf32>, vector<8x512xf32> -> vector<8x512xf32>
    %48 = arith.addf %45, %47 : vector<8x512xf32>
    %49 = vector.extract_strided_slice %48 {offsets = [0, 0], sizes = [8, 128], strides = [1, 1]} : vector<8x512xf32> to vector<8x128xf32>
    %cst_29 = arith.constant 5.000000e-01 : f32
    %50 = vector.broadcast %cst_29 : f32 to vector<8x128xf32>
    %51 = arith.mulf %50, %49 : vector<8x128xf32>
    %52 = math.tanh %51 : vector<8x128xf32>
    %cst_30 = arith.constant 5.000000e-01 : f32
    %53 = vector.broadcast %cst_30 : f32 to vector<8x128xf32>
    %54 = arith.mulf %53, %52 : vector<8x128xf32>
    %cst_31 = arith.constant 5.000000e-01 : f32
    %55 = vector.broadcast %cst_31 : f32 to vector<8x128xf32>
    %56 = arith.addf %54, %55 : vector<8x128xf32>
    %57 = vector.extract_strided_slice %48 {offsets = [0, 128], sizes = [8, 128], strides = [1, 1]} : vector<8x512xf32> to vector<8x128xf32>
    %cst_32 = arith.constant 5.000000e-01 : f32
    %58 = vector.broadcast %cst_32 : f32 to vector<8x128xf32>
    %59 = arith.mulf %58, %57 : vector<8x128xf32>
    %60 = math.tanh %59 : vector<8x128xf32>
    %cst_33 = arith.constant 5.000000e-01 : f32
    %61 = vector.broadcast %cst_33 : f32 to vector<8x128xf32>
    %62 = arith.mulf %61, %60 : vector<8x128xf32>
    %cst_34 = arith.constant 5.000000e-01 : f32
    %63 = vector.broadcast %cst_34 : f32 to vector<8x128xf32>
    %64 = arith.addf %62, %63 : vector<8x128xf32>
    %65 = vector.extract_strided_slice %48 {offsets = [0, 256], sizes = [8, 128], strides = [1, 1]} : vector<8x512xf32> to vector<8x128xf32>
    %66 = math.tanh %65 : vector<8x128xf32>
    %67 = vector.extract_strided_slice %48 {offsets = [0, 384], sizes = [8, 128], strides = [1, 1]} : vector<8x512xf32> to vector<8x128xf32>
    %cst_35 = arith.constant 5.000000e-01 : f32
    %68 = vector.broadcast %cst_35 : f32 to vector<8x128xf32>
    %69 = arith.mulf %68, %67 : vector<8x128xf32>
    %70 = math.tanh %69 : vector<8x128xf32>
    %cst_36 = arith.constant 5.000000e-01 : f32
    %71 = vector.broadcast %cst_36 : f32 to vector<8x128xf32>
    %72 = arith.mulf %71, %70 : vector<8x128xf32>
    %cst_37 = arith.constant 5.000000e-01 : f32
    %73 = vector.broadcast %cst_37 : f32 to vector<8x128xf32>
    %74 = arith.addf %72, %73 : vector<8x128xf32>
    %75 = arith.mulf %64, %41 : vector<8x128xf32>
    %76 = arith.mulf %56, %66 : vector<8x128xf32>
    %77 = arith.addf %75, %76 : vector<8x128xf32>
    %78 = math.tanh %77 : vector<8x128xf32>
    %79 = arith.mulf %74, %78 : vector<8x128xf32>
    %c8_38 = arith.constant 8 : index
    %c0_39 = arith.constant 0 : index
    %80 = vector.load %arg14[%c8_38, %c0_39] : memref<64x128xf32, #tpu.memory_space<vmem>>, vector<8x128xf32>
    tpu.vector_store %arg14[%c8_38, %c0_39], %79 {strides = array<i32>} : memref<64x128xf32, #tpu.memory_space<vmem>>, vector<8x128xf32>,
    %c16 = arith.constant 16 : index
    %c0_40 = arith.constant 0 : index
    %81 = vector.load %arg13[%c16, %c0_40] : memref<64x512xf32, #tpu.memory_space<vmem>>, vector<8x512xf32>
    %c0_41 = arith.constant 0 : index
    %c0_42 = arith.constant 0 : index
    %82 = vector.load %arg3[%c0_41, %c0_42] : memref<128x512xf32, #tpu.memory_space<vmem>>, vector<128x512xf32>
    %cst_43 = arith.constant dense<0.000000e+00> : vector<8x512xf32>
    %83 = tpu.matmul %79, %82, %cst_43 {dimension_numbers = #tpu.dot_dimension_numbers<[1], [0], [0], [1], [0, 0, 1, 1], [], []>} : vector<8x128xf32>, vector<128x512xf32>, vector<8x512xf32> -> vector<8x512xf32>
    %84 = arith.addf %81, %83 : vector<8x512xf32>
    %85 = vector.extract_strided_slice %84 {offsets = [0, 0], sizes = [8, 128], strides = [1, 1]} : vector<8x512xf32> to vector<8x128xf32>
    %cst_44 = arith.constant 5.000000e-01 : f32
    %86 = vector.broadcast %cst_44 : f32 to vector<8x128xf32>
    %87 = arith.mulf %86, %85 : vector<8x128xf32>
    %88 = math.tanh %87 : vector<8x128xf32>
    %cst_45 = arith.constant 5.000000e-01 : f32
    %89 = vector.broadcast %cst_45 : f32 to vector<8x128xf32>
    %90 = arith.mulf %89, %88 : vector<8x128xf32>
    %cst_46 = arith.constant 5.000000e-01 : f32
    %91 = vector.broadcast %cst_46 : f32 to vector<8x128xf32>
    %92 = arith.addf %90, %91 : vector<8x128xf32>
    %93 = vector.extract_strided_slice %84 {offsets = [0, 128], sizes = [8, 128], strides = [1, 1]} : vector<8x512xf32> to vector<8x128xf32>
    %cst_47 = arith.constant 5.000000e-01 : f32
    %94 = vector.broadcast %cst_47 : f32 to vector<8x128xf32>
    %95 = arith.mulf %94, %93 : vector<8x128xf32>
    %96 = math.tanh %95 : vector<8x128xf32>
    %cst_48 = arith.constant 5.000000e-01 : f32
    %97 = vector.broadcast %cst_48 : f32 to vector<8x128xf32>
    %98 = arith.mulf %97, %96 : vector<8x128xf32>
    %cst_49 = arith.constant 5.000000e-01 : f32
    %99 = vector.broadcast %cst_49 : f32 to vector<8x128xf32>
    %100 = arith.addf %98, %99 : vector<8x128xf32>
    %101 = vector.extract_strided_slice %84 {offsets = [0, 256], sizes = [8, 128], strides = [1, 1]} : vector<8x512xf32> to vector<8x128xf32>
    %102 = math.tanh %101 : vector<8x128xf32>
    %103 = vector.extract_strided_slice %84 {offsets = [0, 384], sizes = [8, 128], strides = [1, 1]} : vector<8x512xf32> to vector<8x128xf32>
    %cst_50 = arith.constant 5.000000e-01 : f32
    %104 = vector.broadcast %cst_50 : f32 to vector<8x128xf32>
    %105 = arith.mulf %104, %103 : vector<8x128xf32>
    %106 = math.tanh %105 : vector<8x128xf32>
    %cst_51 = arith.constant 5.000000e-01 : f32
    %107 = vector.broadcast %cst_51 : f32 to vector<8x128xf32>
    %108 = arith.mulf %107, %106 : vector<8x128xf32>
    %cst_52 = arith.constant 5.000000e-01 : f32
    %109 = vector.broadcast %cst_52 : f32 to vector<8x128xf32>
    %110 = arith.addf %108, %109 : vector<8x128xf32>
    %111 = arith.mulf %100, %77 : vector<8x128xf32>
    %112 = arith.mulf %92, %102 : vector<8x128xf32>
    %113 = arith.addf %111, %112 : vector<8x128xf32>
    %114 = math.tanh %113 : vector<8x128xf32>
    %115 = arith.mulf %110, %114 : vector<8x128xf32>
    %c16_53 = arith.constant 16 : index
    %c0_54 = arith.constant 0 : index
    %116 = vector.load %arg14[%c16_53, %c0_54] : memref<64x128xf32, #tpu.memory_space<vmem>>, vector<8x128xf32>
    tpu.vector_store %arg14[%c16_53, %c0_54], %115 {strides = array<i32>} : memref<64x128xf32, #tpu.memory_space<vmem>>, vector<8x128xf32>,
    %c24 = arith.constant 24 : index
    %c0_55 = arith.constant 0 : index
    %117 = vector.load %arg13[%c24, %c0_55] : memref<64x512xf32, #tpu.memory_space<vmem>>, vector<8x512xf32>
    %c0_56 = arith.constant 0 : index
    %c0_57 = arith.constant 0 : index
    %118 = vector.load %arg3[%c0_56, %c0_57] : memref<128x512xf32, #tpu.memory_space<vmem>>, vector<128x512xf32>
    %cst_58 = arith.constant dense<0.000000e+00> : vector<8x512xf32>
    %119 = tpu.matmul %115, %118, %cst_58 {dimension_numbers = #tpu.dot_dimension_numbers<[1], [0], [0], [1], [0, 0, 1, 1], [], []>} : vector<8x128xf32>, vector<128x512xf32>, vector<8x512xf32> -> vector<8x512xf32>
    %120 = arith.addf %117, %119 : vector<8x512xf32>
    %121 = vector.extract_strided_slice %120 {offsets = [0, 0], sizes = [8, 128], strides = [1, 1]} : vector<8x512xf32> to vector<8x128xf32>
    %cst_59 = arith.constant 5.000000e-01 : f32
    %122 = vector.broadcast %cst_59 : f32 to vector<8x128xf32>
    %123 = arith.mulf %122, %121 : vector<8x128xf32>
    %124 = math.tanh %123 : vector<8x128xf32>
    %cst_60 = arith.constant 5.000000e-01 : f32
    %125 = vector.broadcast %cst_60 : f32 to vector<8x128xf32>
    %126 = arith.mulf %125, %124 : vector<8x128xf32>
    %cst_61 = arith.constant 5.000000e-01 : f32
    %127 = vector.broadcast %cst_61 : f32 to vector<8x128xf32>
    %128 = arith.addf %126, %127 : vector<8x128xf32>
    %129 = vector.extract_strided_slice %120 {offsets = [0, 128], sizes = [8, 128], strides = [1, 1]} : vector<8x512xf32> to vector<8x128xf32>
    %cst_62 = arith.constant 5.000000e-01 : f32
    %130 = vector.broadcast %cst_62 : f32 to vector<8x128xf32>
    %131 = arith.mulf %130, %129 : vector<8x128xf32>
    %132 = math.tanh %131 : vector<8x128xf32>
    %cst_63 = arith.constant 5.000000e-01 : f32
    %133 = vector.broadcast %cst_63 : f32 to vector<8x128xf32>
    %134 = arith.mulf %133, %132 : vector<8x128xf32>
    %cst_64 = arith.constant 5.000000e-01 : f32
    %135 = vector.broadcast %cst_64 : f32 to vector<8x128xf32>
    %136 = arith.addf %134, %135 : vector<8x128xf32>
    %137 = vector.extract_strided_slice %120 {offsets = [0, 256], sizes = [8, 128], strides = [1, 1]} : vector<8x512xf32> to vector<8x128xf32>
    %138 = math.tanh %137 : vector<8x128xf32>
    %139 = vector.extract_strided_slice %120 {offsets = [0, 384], sizes = [8, 128], strides = [1, 1]} : vector<8x512xf32> to vector<8x128xf32>
    %cst_65 = arith.constant 5.000000e-01 : f32
    %140 = vector.broadcast %cst_65 : f32 to vector<8x128xf32>
    %141 = arith.mulf %140, %139 : vector<8x128xf32>
    %142 = math.tanh %141 : vector<8x128xf32>
    %cst_66 = arith.constant 5.000000e-01 : f32
    %143 = vector.broadcast %cst_66 : f32 to vector<8x128xf32>
    %144 = arith.mulf %143, %142 : vector<8x128xf32>
    %cst_67 = arith.constant 5.000000e-01 : f32
    %145 = vector.broadcast %cst_67 : f32 to vector<8x128xf32>
    %146 = arith.addf %144, %145 : vector<8x128xf32>
    %147 = arith.mulf %136, %113 : vector<8x128xf32>
    %148 = arith.mulf %128, %138 : vector<8x128xf32>
    %149 = arith.addf %147, %148 : vector<8x128xf32>
    %150 = math.tanh %149 : vector<8x128xf32>
    %151 = arith.mulf %146, %150 : vector<8x128xf32>
    %c24_68 = arith.constant 24 : index
    %c0_69 = arith.constant 0 : index
    %152 = vector.load %arg14[%c24_68, %c0_69] : memref<64x128xf32, #tpu.memory_space<vmem>>, vector<8x128xf32>
    tpu.vector_store %arg14[%c24_68, %c0_69], %151 {strides = array<i32>} : memref<64x128xf32, #tpu.memory_space<vmem>>, vector<8x128xf32>,
    %c32 = arith.constant 32 : index
    %c0_70 = arith.constant 0 : index
    %153 = vector.load %arg13[%c32, %c0_70] : memref<64x512xf32, #tpu.memory_space<vmem>>, vector<8x512xf32>
    %c0_71 = arith.constant 0 : index
    %c0_72 = arith.constant 0 : index
    %154 = vector.load %arg3[%c0_71, %c0_72] : memref<128x512xf32, #tpu.memory_space<vmem>>, vector<128x512xf32>
    %cst_73 = arith.constant dense<0.000000e+00> : vector<8x512xf32>
    %155 = tpu.matmul %151, %154, %cst_73 {dimension_numbers = #tpu.dot_dimension_numbers<[1], [0], [0], [1], [0, 0, 1, 1], [], []>} : vector<8x128xf32>, vector<128x512xf32>, vector<8x512xf32> -> vector<8x512xf32>
    %156 = arith.addf %153, %155 : vector<8x512xf32>
    %157 = vector.extract_strided_slice %156 {offsets = [0, 0], sizes = [8, 128], strides = [1, 1]} : vector<8x512xf32> to vector<8x128xf32>
    %cst_74 = arith.constant 5.000000e-01 : f32
    %158 = vector.broadcast %cst_74 : f32 to vector<8x128xf32>
    %159 = arith.mulf %158, %157 : vector<8x128xf32>
    %160 = math.tanh %159 : vector<8x128xf32>
    %cst_75 = arith.constant 5.000000e-01 : f32
    %161 = vector.broadcast %cst_75 : f32 to vector<8x128xf32>
    %162 = arith.mulf %161, %160 : vector<8x128xf32>
    %cst_76 = arith.constant 5.000000e-01 : f32
    %163 = vector.broadcast %cst_76 : f32 to vector<8x128xf32>
    %164 = arith.addf %162, %163 : vector<8x128xf32>
    %165 = vector.extract_strided_slice %156 {offsets = [0, 128], sizes = [8, 128], strides = [1, 1]} : vector<8x512xf32> to vector<8x128xf32>
    %cst_77 = arith.constant 5.000000e-01 : f32
    %166 = vector.broadcast %cst_77 : f32 to vector<8x128xf32>
    %167 = arith.mulf %166, %165 : vector<8x128xf32>
    %168 = math.tanh %167 : vector<8x128xf32>
    %cst_78 = arith.constant 5.000000e-01 : f32
    %169 = vector.broadcast %cst_78 : f32 to vector<8x128xf32>
    %170 = arith.mulf %169, %168 : vector<8x128xf32>
    %cst_79 = arith.constant 5.000000e-01 : f32
    %171 = vector.broadcast %cst_79 : f32 to vector<8x128xf32>
    %172 = arith.addf %170, %171 : vector<8x128xf32>
    %173 = vector.extract_strided_slice %156 {offsets = [0, 256], sizes = [8, 128], strides = [1, 1]} : vector<8x512xf32> to vector<8x128xf32>
    %174 = math.tanh %173 : vector<8x128xf32>
    %175 = vector.extract_strided_slice %156 {offsets = [0, 384], sizes = [8, 128], strides = [1, 1]} : vector<8x512xf32> to vector<8x128xf32>
    %cst_80 = arith.constant 5.000000e-01 : f32
    %176 = vector.broadcast %cst_80 : f32 to vector<8x128xf32>
    %177 = arith.mulf %176, %175 : vector<8x128xf32>
    %178 = math.tanh %177 : vector<8x128xf32>
    %cst_81 = arith.constant 5.000000e-01 : f32
    %179 = vector.broadcast %cst_81 : f32 to vector<8x128xf32>
    %180 = arith.mulf %179, %178 : vector<8x128xf32>
    %cst_82 = arith.constant 5.000000e-01 : f32
    %181 = vector.broadcast %cst_82 : f32 to vector<8x128xf32>
    %182 = arith.addf %180, %181 : vector<8x128xf32>
    %183 = arith.mulf %172, %149 : vector<8x128xf32>
    %184 = arith.mulf %164, %174 : vector<8x128xf32>
    %185 = arith.addf %183, %184 : vector<8x128xf32>
    %186 = math.tanh %185 : vector<8x128xf32>
    %187 = arith.mulf %182, %186 : vector<8x128xf32>
    %c32_83 = arith.constant 32 : index
    %c0_84 = arith.constant 0 : index
    %188 = vector.load %arg14[%c32_83, %c0_84] : memref<64x128xf32, #tpu.memory_space<vmem>>, vector<8x128xf32>
    tpu.vector_store %arg14[%c32_83, %c0_84], %187 {strides = array<i32>} : memref<64x128xf32, #tpu.memory_space<vmem>>, vector<8x128xf32>,
    %c40 = arith.constant 40 : index
    %c0_85 = arith.constant 0 : index
    %189 = vector.load %arg13[%c40, %c0_85] : memref<64x512xf32, #tpu.memory_space<vmem>>, vector<8x512xf32>
    %c0_86 = arith.constant 0 : index
    %c0_87 = arith.constant 0 : index
    %190 = vector.load %arg3[%c0_86, %c0_87] : memref<128x512xf32, #tpu.memory_space<vmem>>, vector<128x512xf32>
    %cst_88 = arith.constant dense<0.000000e+00> : vector<8x512xf32>
    %191 = tpu.matmul %187, %190, %cst_88 {dimension_numbers = #tpu.dot_dimension_numbers<[1], [0], [0], [1], [0, 0, 1, 1], [], []>} : vector<8x128xf32>, vector<128x512xf32>, vector<8x512xf32> -> vector<8x512xf32>
    %192 = arith.addf %189, %191 : vector<8x512xf32>
    %193 = vector.extract_strided_slice %192 {offsets = [0, 0], sizes = [8, 128], strides = [1, 1]} : vector<8x512xf32> to vector<8x128xf32>
    %cst_89 = arith.constant 5.000000e-01 : f32
    %194 = vector.broadcast %cst_89 : f32 to vector<8x128xf32>
    %195 = arith.mulf %194, %193 : vector<8x128xf32>
    %196 = math.tanh %195 : vector<8x128xf32>
    %cst_90 = arith.constant 5.000000e-01 : f32
    %197 = vector.broadcast %cst_90 : f32 to vector<8x128xf32>
    %198 = arith.mulf %197, %196 : vector<8x128xf32>
    %cst_91 = arith.constant 5.000000e-01 : f32
    %199 = vector.broadcast %cst_91 : f32 to vector<8x128xf32>
    %200 = arith.addf %198, %199 : vector<8x128xf32>
    %201 = vector.extract_strided_slice %192 {offsets = [0, 128], sizes = [8, 128], strides = [1, 1]} : vector<8x512xf32> to vector<8x128xf32>
    %cst_92 = arith.constant 5.000000e-01 : f32
    %202 = vector.broadcast %cst_92 : f32 to vector<8x128xf32>
    %203 = arith.mulf %202, %201 : vector<8x128xf32>
    %204 = math.tanh %203 : vector<8x128xf32>
    %cst_93 = arith.constant 5.000000e-01 : f32
    %205 = vector.broadcast %cst_93 : f32 to vector<8x128xf32>
    %206 = arith.mulf %205, %204 : vector<8x128xf32>
    %cst_94 = arith.constant 5.000000e-01 : f32
    %207 = vector.broadcast %cst_94 : f32 to vector<8x128xf32>
    %208 = arith.addf %206, %207 : vector<8x128xf32>
    %209 = vector.extract_strided_slice %192 {offsets = [0, 256], sizes = [8, 128], strides = [1, 1]} : vector<8x512xf32> to vector<8x128xf32>
    %210 = math.tanh %209 : vector<8x128xf32>
    %211 = vector.extract_strided_slice %192 {offsets = [0, 384], sizes = [8, 128], strides = [1, 1]} : vector<8x512xf32> to vector<8x128xf32>
    %cst_95 = arith.constant 5.000000e-01 : f32
    %212 = vector.broadcast %cst_95 : f32 to vector<8x128xf32>
    %213 = arith.mulf %212, %211 : vector<8x128xf32>
    %214 = math.tanh %213 : vector<8x128xf32>
    %cst_96 = arith.constant 5.000000e-01 : f32
    %215 = vector.broadcast %cst_96 : f32 to vector<8x128xf32>
    %216 = arith.mulf %215, %214 : vector<8x128xf32>
    %cst_97 = arith.constant 5.000000e-01 : f32
    %217 = vector.broadcast %cst_97 : f32 to vector<8x128xf32>
    %218 = arith.addf %216, %217 : vector<8x128xf32>
    %219 = arith.mulf %208, %185 : vector<8x128xf32>
    %220 = arith.mulf %200, %210 : vector<8x128xf32>
    %221 = arith.addf %219, %220 : vector<8x128xf32>
    %222 = math.tanh %221 : vector<8x128xf32>
    %223 = arith.mulf %218, %222 : vector<8x128xf32>
    %c40_98 = arith.constant 40 : index
    %c0_99 = arith.constant 0 : index
    %224 = vector.load %arg14[%c40_98, %c0_99] : memref<64x128xf32, #tpu.memory_space<vmem>>, vector<8x128xf32>
    tpu.vector_store %arg14[%c40_98, %c0_99], %223 {strides = array<i32>} : memref<64x128xf32, #tpu.memory_space<vmem>>, vector<8x128xf32>,
    %c48 = arith.constant 48 : index
    %c0_100 = arith.constant 0 : index
    %225 = vector.load %arg13[%c48, %c0_100] : memref<64x512xf32, #tpu.memory_space<vmem>>, vector<8x512xf32>
    %c0_101 = arith.constant 0 : index
    %c0_102 = arith.constant 0 : index
    %226 = vector.load %arg3[%c0_101, %c0_102] : memref<128x512xf32, #tpu.memory_space<vmem>>, vector<128x512xf32>
    %cst_103 = arith.constant dense<0.000000e+00> : vector<8x512xf32>
    %227 = tpu.matmul %223, %226, %cst_103 {dimension_numbers = #tpu.dot_dimension_numbers<[1], [0], [0], [1], [0, 0, 1, 1], [], []>} : vector<8x128xf32>, vector<128x512xf32>, vector<8x512xf32> -> vector<8x512xf32>
    %228 = arith.addf %225, %227 : vector<8x512xf32>
    %229 = vector.extract_strided_slice %228 {offsets = [0, 0], sizes = [8, 128], strides = [1, 1]} : vector<8x512xf32> to vector<8x128xf32>
    %cst_104 = arith.constant 5.000000e-01 : f32
    %230 = vector.broadcast %cst_104 : f32 to vector<8x128xf32>
    %231 = arith.mulf %230, %229 : vector<8x128xf32>
    %232 = math.tanh %231 : vector<8x128xf32>
    %cst_105 = arith.constant 5.000000e-01 : f32
    %233 = vector.broadcast %cst_105 : f32 to vector<8x128xf32>
    %234 = arith.mulf %233, %232 : vector<8x128xf32>
    %cst_106 = arith.constant 5.000000e-01 : f32
    %235 = vector.broadcast %cst_106 : f32 to vector<8x128xf32>
    %236 = arith.addf %234, %235 : vector<8x128xf32>
    %237 = vector.extract_strided_slice %228 {offsets = [0, 128], sizes = [8, 128], strides = [1, 1]} : vector<8x512xf32> to vector<8x128xf32>
    %cst_107 = arith.constant 5.000000e-01 : f32
    %238 = vector.broadcast %cst_107 : f32 to vector<8x128xf32>
    %239 = arith.mulf %238, %237 : vector<8x128xf32>
    %240 = math.tanh %239 : vector<8x128xf32>
    %cst_108 = arith.constant 5.000000e-01 : f32
    %241 = vector.broadcast %cst_108 : f32 to vector<8x128xf32>
    %242 = arith.mulf %241, %240 : vector<8x128xf32>
    %cst_109 = arith.constant 5.000000e-01 : f32
    %243 = vector.broadcast %cst_109 : f32 to vector<8x128xf32>
    %244 = arith.addf %242, %243 : vector<8x128xf32>
    %245 = vector.extract_strided_slice %228 {offsets = [0, 256], sizes = [8, 128], strides = [1, 1]} : vector<8x512xf32> to vector<8x128xf32>
    %246 = math.tanh %245 : vector<8x128xf32>
    %247 = vector.extract_strided_slice %228 {offsets = [0, 384], sizes = [8, 128], strides = [1, 1]} : vector<8x512xf32> to vector<8x128xf32>
    %cst_110 = arith.constant 5.000000e-01 : f32
    %248 = vector.broadcast %cst_110 : f32 to vector<8x128xf32>
    %249 = arith.mulf %248, %247 : vector<8x128xf32>
    %250 = math.tanh %249 : vector<8x128xf32>
    %cst_111 = arith.constant 5.000000e-01 : f32
    %251 = vector.broadcast %cst_111 : f32 to vector<8x128xf32>
    %252 = arith.mulf %251, %250 : vector<8x128xf32>
    %cst_112 = arith.constant 5.000000e-01 : f32
    %253 = vector.broadcast %cst_112 : f32 to vector<8x128xf32>
    %254 = arith.addf %252, %253 : vector<8x128xf32>
    %255 = arith.mulf %244, %221 : vector<8x128xf32>
    %256 = arith.mulf %236, %246 : vector<8x128xf32>
    %257 = arith.addf %255, %256 : vector<8x128xf32>
    %258 = math.tanh %257 : vector<8x128xf32>
    %259 = arith.mulf %254, %258 : vector<8x128xf32>
    %c48_113 = arith.constant 48 : index
    %c0_114 = arith.constant 0 : index
    %260 = vector.load %arg14[%c48_113, %c0_114] : memref<64x128xf32, #tpu.memory_space<vmem>>, vector<8x128xf32>
    tpu.vector_store %arg14[%c48_113, %c0_114], %259 {strides = array<i32>} : memref<64x128xf32, #tpu.memory_space<vmem>>, vector<8x128xf32>,
    %c56 = arith.constant 56 : index
    %c0_115 = arith.constant 0 : index
    %261 = vector.load %arg13[%c56, %c0_115] : memref<64x512xf32, #tpu.memory_space<vmem>>, vector<8x512xf32>
    %c0_116 = arith.constant 0 : index
    %c0_117 = arith.constant 0 : index
    %262 = vector.load %arg3[%c0_116, %c0_117] : memref<128x512xf32, #tpu.memory_space<vmem>>, vector<128x512xf32>
    %cst_118 = arith.constant dense<0.000000e+00> : vector<8x512xf32>
    %263 = tpu.matmul %259, %262, %cst_118 {dimension_numbers = #tpu.dot_dimension_numbers<[1], [0], [0], [1], [0, 0, 1, 1], [], []>} : vector<8x128xf32>, vector<128x512xf32>, vector<8x512xf32> -> vector<8x512xf32>
    %264 = arith.addf %261, %263 : vector<8x512xf32>
    %265 = vector.extract_strided_slice %264 {offsets = [0, 0], sizes = [8, 128], strides = [1, 1]} : vector<8x512xf32> to vector<8x128xf32>
    %cst_119 = arith.constant 5.000000e-01 : f32
    %266 = vector.broadcast %cst_119 : f32 to vector<8x128xf32>
    %267 = arith.mulf %266, %265 : vector<8x128xf32>
    %268 = math.tanh %267 : vector<8x128xf32>
    %cst_120 = arith.constant 5.000000e-01 : f32
    %269 = vector.broadcast %cst_120 : f32 to vector<8x128xf32>
    %270 = arith.mulf %269, %268 : vector<8x128xf32>
    %cst_121 = arith.constant 5.000000e-01 : f32
    %271 = vector.broadcast %cst_121 : f32 to vector<8x128xf32>
    %272 = arith.addf %270, %271 : vector<8x128xf32>
    %273 = vector.extract_strided_slice %264 {offsets = [0, 128], sizes = [8, 128], strides = [1, 1]} : vector<8x512xf32> to vector<8x128xf32>
    %cst_122 = arith.constant 5.000000e-01 : f32
    %274 = vector.broadcast %cst_122 : f32 to vector<8x128xf32>
    %275 = arith.mulf %274, %273 : vector<8x128xf32>
    %276 = math.tanh %275 : vector<8x128xf32>
    %cst_123 = arith.constant 5.000000e-01 : f32
    %277 = vector.broadcast %cst_123 : f32 to vector<8x128xf32>
    %278 = arith.mulf %277, %276 : vector<8x128xf32>
    %cst_124 = arith.constant 5.000000e-01 : f32
    %279 = vector.broadcast %cst_124 : f32 to vector<8x128xf32>
    %280 = arith.addf %278, %279 : vector<8x128xf32>
    %281 = vector.extract_strided_slice %264 {offsets = [0, 256], sizes = [8, 128], strides = [1, 1]} : vector<8x512xf32> to vector<8x128xf32>
    %282 = math.tanh %281 : vector<8x128xf32>
    %283 = vector.extract_strided_slice %264 {offsets = [0, 384], sizes = [8, 128], strides = [1, 1]} : vector<8x512xf32> to vector<8x128xf32>
    %cst_125 = arith.constant 5.000000e-01 : f32
    %284 = vector.broadcast %cst_125 : f32 to vector<8x128xf32>
    %285 = arith.mulf %284, %283 : vector<8x128xf32>
    %286 = math.tanh %285 : vector<8x128xf32>
    %cst_126 = arith.constant 5.000000e-01 : f32
    %287 = vector.broadcast %cst_126 : f32 to vector<8x128xf32>
    %288 = arith.mulf %287, %286 : vector<8x128xf32>
    %cst_127 = arith.constant 5.000000e-01 : f32
    %289 = vector.broadcast %cst_127 : f32 to vector<8x128xf32>
    %290 = arith.addf %288, %289 : vector<8x128xf32>
    %291 = arith.mulf %280, %257 : vector<8x128xf32>
    %292 = arith.mulf %272, %282 : vector<8x128xf32>
    %293 = arith.addf %291, %292 : vector<8x128xf32>
    %294 = math.tanh %293 : vector<8x128xf32>
    %295 = arith.mulf %290, %294 : vector<8x128xf32>
    %c56_128 = arith.constant 56 : index
    %c0_129 = arith.constant 0 : index
    %296 = vector.load %arg14[%c56_128, %c0_129] : memref<64x128xf32, #tpu.memory_space<vmem>>, vector<8x128xf32>
    tpu.vector_store %arg14[%c56_128, %c0_129], %295 {strides = array<i32>} : memref<64x128xf32, #tpu.memory_space<vmem>>, vector<8x128xf32>,
    %c0_130 = arith.constant 0 : index
    %c0_131 = arith.constant 0 : index
    %297 = vector.load %arg14[%c0_130, %c0_131] : memref<64x128xf32, #tpu.memory_space<vmem>>, vector<64x128xf32>
    %c0_132 = arith.constant 0 : index
    %c0_133 = arith.constant 0 : index
    %298 = vector.load %arg5[%c0_132, %c0_133] : memref<128x512xf32, #tpu.memory_space<vmem>>, vector<128x512xf32>
    %cst_134 = arith.constant dense<0.000000e+00> : vector<64x512xf32>
    %299 = tpu.matmul %297, %298, %cst_134 {dimension_numbers = #tpu.dot_dimension_numbers<[1], [0], [0], [1], [0, 0, 1, 1], [], []>} : vector<64x128xf32>, vector<128x512xf32>, vector<64x512xf32> -> vector<64x512xf32>
    %c0_135 = arith.constant 0 : index
    %c0_136 = arith.constant 0 : index
    %300 = vector.load %arg7[%c0_135, %c0_136] : memref<1x512xf32, #tpu.memory_space<vmem>>, vector<1x512xf32>
    %301 = vector.broadcast %300 : vector<1x512xf32> to vector<64x512xf32>
    %302 = arith.addf %299, %301 : vector<64x512xf32>
    %c0_137 = arith.constant 0 : index
    %c0_138 = arith.constant 0 : index
    %303 = vector.load %arg13[%c0_137, %c0_138] : memref<64x512xf32, #tpu.memory_space<vmem>>, vector<64x512xf32>
    tpu.vector_store %arg13[%c0_137, %c0_138], %302 {strides = array<i32>} : memref<64x512xf32, #tpu.memory_space<vmem>>, vector<64x512xf32>,
    %cst_139 = arith.constant 0.000000e+00 : f32
    %304 = vector.broadcast %cst_139 : f32 to vector<8x128xf32>
    %cst_140 = arith.constant 0.000000e+00 : f32
    %305 = vector.broadcast %cst_140 : f32 to vector<8x128xf32>
    %c0_141 = arith.constant 0 : index
    %c0_142 = arith.constant 0 : index
    %306 = vector.load %arg13[%c0_141, %c0_142] : memref<64x512xf32, #tpu.memory_space<vmem>>, vector<8x512xf32>
    %c0_143 = arith.constant 0 : index
    %c0_144 = arith.constant 0 : index
    %307 = vector.load %arg6[%c0_143, %c0_144] : memref<128x512xf32, #tpu.memory_space<vmem>>, vector<128x512xf32>
    %cst_145 = arith.constant dense<0.000000e+00> : vector<8x512xf32>
    %308 = tpu.matmul %304, %307, %cst_145 {dimension_numbers = #tpu.dot_dimension_numbers<[1], [0], [0], [1], [0, 0, 1, 1], [], []>} : vector<8x128xf32>, vector<128x512xf32>, vector<8x512xf32> -> vector<8x512xf32>
    %309 = arith.addf %306, %308 : vector<8x512xf32>
    %310 = vector.extract_strided_slice %309 {offsets = [0, 0], sizes = [8, 128], strides = [1, 1]} : vector<8x512xf32> to vector<8x128xf32>
    %cst_146 = arith.constant 5.000000e-01 : f32
    %311 = vector.broadcast %cst_146 : f32 to vector<8x128xf32>
    %312 = arith.mulf %311, %310 : vector<8x128xf32>
    %313 = math.tanh %312 : vector<8x128xf32>
    %cst_147 = arith.constant 5.000000e-01 : f32
    %314 = vector.broadcast %cst_147 : f32 to vector<8x128xf32>
    %315 = arith.mulf %314, %313 : vector<8x128xf32>
    %cst_148 = arith.constant 5.000000e-01 : f32
    %316 = vector.broadcast %cst_148 : f32 to vector<8x128xf32>
    %317 = arith.addf %315, %316 : vector<8x128xf32>
    %318 = vector.extract_strided_slice %309 {offsets = [0, 128], sizes = [8, 128], strides = [1, 1]} : vector<8x512xf32> to vector<8x128xf32>
    %cst_149 = arith.constant 5.000000e-01 : f32
    %319 = vector.broadcast %cst_149 : f32 to vector<8x128xf32>
    %320 = arith.mulf %319, %318 : vector<8x128xf32>
    %321 = math.tanh %320 : vector<8x128xf32>
    %cst_150 = arith.constant 5.000000e-01 : f32
    %322 = vector.broadcast %cst_150 : f32 to vector<8x128xf32>
    %323 = arith.mulf %322, %321 : vector<8x128xf32>
    %cst_151 = arith.constant 5.000000e-01 : f32
    %324 = vector.broadcast %cst_151 : f32 to vector<8x128xf32>
    %325 = arith.addf %323, %324 : vector<8x128xf32>
    %326 = vector.extract_strided_slice %309 {offsets = [0, 256], sizes = [8, 128], strides = [1, 1]} : vector<8x512xf32> to vector<8x128xf32>
    %327 = math.tanh %326 : vector<8x128xf32>
    %328 = vector.extract_strided_slice %309 {offsets = [0, 384], sizes = [8, 128], strides = [1, 1]} : vector<8x512xf32> to vector<8x128xf32>
    %cst_152 = arith.constant 5.000000e-01 : f32
    %329 = vector.broadcast %cst_152 : f32 to vector<8x128xf32>
    %330 = arith.mulf %329, %328 : vector<8x128xf32>
    %331 = math.tanh %330 : vector<8x128xf32>
    %cst_153 = arith.constant 5.000000e-01 : f32
    %332 = vector.broadcast %cst_153 : f32 to vector<8x128xf32>
    %333 = arith.mulf %332, %331 : vector<8x128xf32>
    %cst_154 = arith.constant 5.000000e-01 : f32
    %334 = vector.broadcast %cst_154 : f32 to vector<8x128xf32>
    %335 = arith.addf %333, %334 : vector<8x128xf32>
    %336 = arith.mulf %325, %305 : vector<8x128xf32>
    %337 = arith.mulf %317, %327 : vector<8x128xf32>
    %338 = arith.addf %336, %337 : vector<8x128xf32>
    %339 = math.tanh %338 : vector<8x128xf32>
    %340 = arith.mulf %335, %339 : vector<8x128xf32>
    %c8_155 = arith.constant 8 : index
    %c0_156 = arith.constant 0 : index
    %341 = vector.load %arg13[%c8_155, %c0_156] : memref<64x512xf32, #tpu.memory_space<vmem>>, vector<8x512xf32>
    %c0_157 = arith.constant 0 : index
    %c0_158 = arith.constant 0 : index
    %342 = vector.load %arg6[%c0_157, %c0_158] : memref<128x512xf32, #tpu.memory_space<vmem>>, vector<128x512xf32>
    %cst_159 = arith.constant dense<0.000000e+00> : vector<8x512xf32>
    %343 = tpu.matmul %340, %342, %cst_159 {dimension_numbers = #tpu.dot_dimension_numbers<[1], [0], [0], [1], [0, 0, 1, 1], [], []>} : vector<8x128xf32>, vector<128x512xf32>, vector<8x512xf32> -> vector<8x512xf32>
    %344 = arith.addf %341, %343 : vector<8x512xf32>
    %345 = vector.extract_strided_slice %344 {offsets = [0, 0], sizes = [8, 128], strides = [1, 1]} : vector<8x512xf32> to vector<8x128xf32>
    %cst_160 = arith.constant 5.000000e-01 : f32
    %346 = vector.broadcast %cst_160 : f32 to vector<8x128xf32>
    %347 = arith.mulf %346, %345 : vector<8x128xf32>
    %348 = math.tanh %347 : vector<8x128xf32>
    %cst_161 = arith.constant 5.000000e-01 : f32
    %349 = vector.broadcast %cst_161 : f32 to vector<8x128xf32>
    %350 = arith.mulf %349, %348 : vector<8x128xf32>
    %cst_162 = arith.constant 5.000000e-01 : f32
    %351 = vector.broadcast %cst_162 : f32 to vector<8x128xf32>
    %352 = arith.addf %350, %351 : vector<8x128xf32>
    %353 = vector.extract_strided_slice %344 {offsets = [0, 128], sizes = [8, 128], strides = [1, 1]} : vector<8x512xf32> to vector<8x128xf32>
    %cst_163 = arith.constant 5.000000e-01 : f32
    %354 = vector.broadcast %cst_163 : f32 to vector<8x128xf32>
    %355 = arith.mulf %354, %353 : vector<8x128xf32>
    %356 = math.tanh %355 : vector<8x128xf32>
    %cst_164 = arith.constant 5.000000e-01 : f32
    %357 = vector.broadcast %cst_164 : f32 to vector<8x128xf32>
    %358 = arith.mulf %357, %356 : vector<8x128xf32>
    %cst_165 = arith.constant 5.000000e-01 : f32
    %359 = vector.broadcast %cst_165 : f32 to vector<8x128xf32>
    %360 = arith.addf %358, %359 : vector<8x128xf32>
    %361 = vector.extract_strided_slice %344 {offsets = [0, 256], sizes = [8, 128], strides = [1, 1]} : vector<8x512xf32> to vector<8x128xf32>
    %362 = math.tanh %361 : vector<8x128xf32>
    %363 = vector.extract_strided_slice %344 {offsets = [0, 384], sizes = [8, 128], strides = [1, 1]} : vector<8x512xf32> to vector<8x128xf32>
    %cst_166 = arith.constant 5.000000e-01 : f32
    %364 = vector.broadcast %cst_166 : f32 to vector<8x128xf32>
    %365 = arith.mulf %364, %363 : vector<8x128xf32>
    %366 = math.tanh %365 : vector<8x128xf32>
    %cst_167 = arith.constant 5.000000e-01 : f32
    %367 = vector.broadcast %cst_167 : f32 to vector<8x128xf32>
    %368 = arith.mulf %367, %366 : vector<8x128xf32>
    %cst_168 = arith.constant 5.000000e-01 : f32
    %369 = vector.broadcast %cst_168 : f32 to vector<8x128xf32>
    %370 = arith.addf %368, %369 : vector<8x128xf32>
    %371 = arith.mulf %360, %338 : vector<8x128xf32>
    %372 = arith.mulf %352, %362 : vector<8x128xf32>
    %373 = arith.addf %371, %372 : vector<8x128xf32>
    %374 = math.tanh %373 : vector<8x128xf32>
    %375 = arith.mulf %370, %374 : vector<8x128xf32>
    %c16_169 = arith.constant 16 : index
    %c0_170 = arith.constant 0 : index
    %376 = vector.load %arg13[%c16_169, %c0_170] : memref<64x512xf32, #tpu.memory_space<vmem>>, vector<8x512xf32>
    %c0_171 = arith.constant 0 : index
    %c0_172 = arith.constant 0 : index
    %377 = vector.load %arg6[%c0_171, %c0_172] : memref<128x512xf32, #tpu.memory_space<vmem>>, vector<128x512xf32>
    %cst_173 = arith.constant dense<0.000000e+00> : vector<8x512xf32>
    %378 = tpu.matmul %375, %377, %cst_173 {dimension_numbers = #tpu.dot_dimension_numbers<[1], [0], [0], [1], [0, 0, 1, 1], [], []>} : vector<8x128xf32>, vector<128x512xf32>, vector<8x512xf32> -> vector<8x512xf32>
    %379 = arith.addf %376, %378 : vector<8x512xf32>
    %380 = vector.extract_strided_slice %379 {offsets = [0, 0], sizes = [8, 128], strides = [1, 1]} : vector<8x512xf32> to vector<8x128xf32>
    %cst_174 = arith.constant 5.000000e-01 : f32
    %381 = vector.broadcast %cst_174 : f32 to vector<8x128xf32>
    %382 = arith.mulf %381, %380 : vector<8x128xf32>
    %383 = math.tanh %382 : vector<8x128xf32>
    %cst_175 = arith.constant 5.000000e-01 : f32
    %384 = vector.broadcast %cst_175 : f32 to vector<8x128xf32>
    %385 = arith.mulf %384, %383 : vector<8x128xf32>
    %cst_176 = arith.constant 5.000000e-01 : f32
    %386 = vector.broadcast %cst_176 : f32 to vector<8x128xf32>
    %387 = arith.addf %385, %386 : vector<8x128xf32>
    %388 = vector.extract_strided_slice %379 {offsets = [0, 128], sizes = [8, 128], strides = [1, 1]} : vector<8x512xf32> to vector<8x128xf32>
    %cst_177 = arith.constant 5.000000e-01 : f32
    %389 = vector.broadcast %cst_177 : f32 to vector<8x128xf32>
    %390 = arith.mulf %389, %388 : vector<8x128xf32>
    %391 = math.tanh %390 : vector<8x128xf32>
    %cst_178 = arith.constant 5.000000e-01 : f32
    %392 = vector.broadcast %cst_178 : f32 to vector<8x128xf32>
    %393 = arith.mulf %392, %391 : vector<8x128xf32>
    %cst_179 = arith.constant 5.000000e-01 : f32
    %394 = vector.broadcast %cst_179 : f32 to vector<8x128xf32>
    %395 = arith.addf %393, %394 : vector<8x128xf32>
    %396 = vector.extract_strided_slice %379 {offsets = [0, 256], sizes = [8, 128], strides = [1, 1]} : vector<8x512xf32> to vector<8x128xf32>
    %397 = math.tanh %396 : vector<8x128xf32>
    %398 = vector.extract_strided_slice %379 {offsets = [0, 384], sizes = [8, 128], strides = [1, 1]} : vector<8x512xf32> to vector<8x128xf32>
    %cst_180 = arith.constant 5.000000e-01 : f32
    %399 = vector.broadcast %cst_180 : f32 to vector<8x128xf32>
    %400 = arith.mulf %399, %398 : vector<8x128xf32>
    %401 = math.tanh %400 : vector<8x128xf32>
    %cst_181 = arith.constant 5.000000e-01 : f32
    %402 = vector.broadcast %cst_181 : f32 to vector<8x128xf32>
    %403 = arith.mulf %402, %401 : vector<8x128xf32>
    %cst_182 = arith.constant 5.000000e-01 : f32
    %404 = vector.broadcast %cst_182 : f32 to vector<8x128xf32>
    %405 = arith.addf %403, %404 : vector<8x128xf32>
    %406 = arith.mulf %395, %373 : vector<8x128xf32>
    %407 = arith.mulf %387, %397 : vector<8x128xf32>
    %408 = arith.addf %406, %407 : vector<8x128xf32>
    %409 = math.tanh %408 : vector<8x128xf32>
    %410 = arith.mulf %405, %409 : vector<8x128xf32>
    %c24_183 = arith.constant 24 : index
    %c0_184 = arith.constant 0 : index
    %411 = vector.load %arg13[%c24_183, %c0_184] : memref<64x512xf32, #tpu.memory_space<vmem>>, vector<8x512xf32>
    %c0_185 = arith.constant 0 : index
    %c0_186 = arith.constant 0 : index
    %412 = vector.load %arg6[%c0_185, %c0_186] : memref<128x512xf32, #tpu.memory_space<vmem>>, vector<128x512xf32>
    %cst_187 = arith.constant dense<0.000000e+00> : vector<8x512xf32>
    %413 = tpu.matmul %410, %412, %cst_187 {dimension_numbers = #tpu.dot_dimension_numbers<[1], [0], [0], [1], [0, 0, 1, 1], [], []>} : vector<8x128xf32>, vector<128x512xf32>, vector<8x512xf32> -> vector<8x512xf32>
    %414 = arith.addf %411, %413 : vector<8x512xf32>
    %415 = vector.extract_strided_slice %414 {offsets = [0, 0], sizes = [8, 128], strides = [1, 1]} : vector<8x512xf32> to vector<8x128xf32>
    %cst_188 = arith.constant 5.000000e-01 : f32
    %416 = vector.broadcast %cst_188 : f32 to vector<8x128xf32>
    %417 = arith.mulf %416, %415 : vector<8x128xf32>
    %418 = math.tanh %417 : vector<8x128xf32>
    %cst_189 = arith.constant 5.000000e-01 : f32
    %419 = vector.broadcast %cst_189 : f32 to vector<8x128xf32>
    %420 = arith.mulf %419, %418 : vector<8x128xf32>
    %cst_190 = arith.constant 5.000000e-01 : f32
    %421 = vector.broadcast %cst_190 : f32 to vector<8x128xf32>
    %422 = arith.addf %420, %421 : vector<8x128xf32>
    %423 = vector.extract_strided_slice %414 {offsets = [0, 128], sizes = [8, 128], strides = [1, 1]} : vector<8x512xf32> to vector<8x128xf32>
    %cst_191 = arith.constant 5.000000e-01 : f32
    %424 = vector.broadcast %cst_191 : f32 to vector<8x128xf32>
    %425 = arith.mulf %424, %423 : vector<8x128xf32>
    %426 = math.tanh %425 : vector<8x128xf32>
    %cst_192 = arith.constant 5.000000e-01 : f32
    %427 = vector.broadcast %cst_192 : f32 to vector<8x128xf32>
    %428 = arith.mulf %427, %426 : vector<8x128xf32>
    %cst_193 = arith.constant 5.000000e-01 : f32
    %429 = vector.broadcast %cst_193 : f32 to vector<8x128xf32>
    %430 = arith.addf %428, %429 : vector<8x128xf32>
    %431 = vector.extract_strided_slice %414 {offsets = [0, 256], sizes = [8, 128], strides = [1, 1]} : vector<8x512xf32> to vector<8x128xf32>
    %432 = math.tanh %431 : vector<8x128xf32>
    %433 = vector.extract_strided_slice %414 {offsets = [0, 384], sizes = [8, 128], strides = [1, 1]} : vector<8x512xf32> to vector<8x128xf32>
    %cst_194 = arith.constant 5.000000e-01 : f32
    %434 = vector.broadcast %cst_194 : f32 to vector<8x128xf32>
    %435 = arith.mulf %434, %433 : vector<8x128xf32>
    %436 = math.tanh %435 : vector<8x128xf32>
    %cst_195 = arith.constant 5.000000e-01 : f32
    %437 = vector.broadcast %cst_195 : f32 to vector<8x128xf32>
    %438 = arith.mulf %437, %436 : vector<8x128xf32>
    %cst_196 = arith.constant 5.000000e-01 : f32
    %439 = vector.broadcast %cst_196 : f32 to vector<8x128xf32>
    %440 = arith.addf %438, %439 : vector<8x128xf32>
    %441 = arith.mulf %430, %408 : vector<8x128xf32>
    %442 = arith.mulf %422, %432 : vector<8x128xf32>
    %443 = arith.addf %441, %442 : vector<8x128xf32>
    %444 = math.tanh %443 : vector<8x128xf32>
    %445 = arith.mulf %440, %444 : vector<8x128xf32>
    %c32_197 = arith.constant 32 : index
    %c0_198 = arith.constant 0 : index
    %446 = vector.load %arg13[%c32_197, %c0_198] : memref<64x512xf32, #tpu.memory_space<vmem>>, vector<8x512xf32>
    %c0_199 = arith.constant 0 : index
    %c0_200 = arith.constant 0 : index
    %447 = vector.load %arg6[%c0_199, %c0_200] : memref<128x512xf32, #tpu.memory_space<vmem>>, vector<128x512xf32>
    %cst_201 = arith.constant dense<0.000000e+00> : vector<8x512xf32>
    %448 = tpu.matmul %445, %447, %cst_201 {dimension_numbers = #tpu.dot_dimension_numbers<[1], [0], [0], [1], [0, 0, 1, 1], [], []>} : vector<8x128xf32>, vector<128x512xf32>, vector<8x512xf32> -> vector<8x512xf32>
    %449 = arith.addf %446, %448 : vector<8x512xf32>
    %450 = vector.extract_strided_slice %449 {offsets = [0, 0], sizes = [8, 128], strides = [1, 1]} : vector<8x512xf32> to vector<8x128xf32>
    %cst_202 = arith.constant 5.000000e-01 : f32
    %451 = vector.broadcast %cst_202 : f32 to vector<8x128xf32>
    %452 = arith.mulf %451, %450 : vector<8x128xf32>
    %453 = math.tanh %452 : vector<8x128xf32>
    %cst_203 = arith.constant 5.000000e-01 : f32
    %454 = vector.broadcast %cst_203 : f32 to vector<8x128xf32>
    %455 = arith.mulf %454, %453 : vector<8x128xf32>
    %cst_204 = arith.constant 5.000000e-01 : f32
    %456 = vector.broadcast %cst_204 : f32 to vector<8x128xf32>
    %457 = arith.addf %455, %456 : vector<8x128xf32>
    %458 = vector.extract_strided_slice %449 {offsets = [0, 128], sizes = [8, 128], strides = [1, 1]} : vector<8x512xf32> to vector<8x128xf32>
    %cst_205 = arith.constant 5.000000e-01 : f32
    %459 = vector.broadcast %cst_205 : f32 to vector<8x128xf32>
    %460 = arith.mulf %459, %458 : vector<8x128xf32>
    %461 = math.tanh %460 : vector<8x128xf32>
    %cst_206 = arith.constant 5.000000e-01 : f32
    %462 = vector.broadcast %cst_206 : f32 to vector<8x128xf32>
    %463 = arith.mulf %462, %461 : vector<8x128xf32>
    %cst_207 = arith.constant 5.000000e-01 : f32
    %464 = vector.broadcast %cst_207 : f32 to vector<8x128xf32>
    %465 = arith.addf %463, %464 : vector<8x128xf32>
    %466 = vector.extract_strided_slice %449 {offsets = [0, 256], sizes = [8, 128], strides = [1, 1]} : vector<8x512xf32> to vector<8x128xf32>
    %467 = math.tanh %466 : vector<8x128xf32>
    %468 = vector.extract_strided_slice %449 {offsets = [0, 384], sizes = [8, 128], strides = [1, 1]} : vector<8x512xf32> to vector<8x128xf32>
    %cst_208 = arith.constant 5.000000e-01 : f32
    %469 = vector.broadcast %cst_208 : f32 to vector<8x128xf32>
    %470 = arith.mulf %469, %468 : vector<8x128xf32>
    %471 = math.tanh %470 : vector<8x128xf32>
    %cst_209 = arith.constant 5.000000e-01 : f32
    %472 = vector.broadcast %cst_209 : f32 to vector<8x128xf32>
    %473 = arith.mulf %472, %471 : vector<8x128xf32>
    %cst_210 = arith.constant 5.000000e-01 : f32
    %474 = vector.broadcast %cst_210 : f32 to vector<8x128xf32>
    %475 = arith.addf %473, %474 : vector<8x128xf32>
    %476 = arith.mulf %465, %443 : vector<8x128xf32>
    %477 = arith.mulf %457, %467 : vector<8x128xf32>
    %478 = arith.addf %476, %477 : vector<8x128xf32>
    %479 = math.tanh %478 : vector<8x128xf32>
    %480 = arith.mulf %475, %479 : vector<8x128xf32>
    %c40_211 = arith.constant 40 : index
    %c0_212 = arith.constant 0 : index
    %481 = vector.load %arg13[%c40_211, %c0_212] : memref<64x512xf32, #tpu.memory_space<vmem>>, vector<8x512xf32>
    %c0_213 = arith.constant 0 : index
    %c0_214 = arith.constant 0 : index
    %482 = vector.load %arg6[%c0_213, %c0_214] : memref<128x512xf32, #tpu.memory_space<vmem>>, vector<128x512xf32>
    %cst_215 = arith.constant dense<0.000000e+00> : vector<8x512xf32>
    %483 = tpu.matmul %480, %482, %cst_215 {dimension_numbers = #tpu.dot_dimension_numbers<[1], [0], [0], [1], [0, 0, 1, 1], [], []>} : vector<8x128xf32>, vector<128x512xf32>, vector<8x512xf32> -> vector<8x512xf32>
    %484 = arith.addf %481, %483 : vector<8x512xf32>
    %485 = vector.extract_strided_slice %484 {offsets = [0, 0], sizes = [8, 128], strides = [1, 1]} : vector<8x512xf32> to vector<8x128xf32>
    %cst_216 = arith.constant 5.000000e-01 : f32
    %486 = vector.broadcast %cst_216 : f32 to vector<8x128xf32>
    %487 = arith.mulf %486, %485 : vector<8x128xf32>
    %488 = math.tanh %487 : vector<8x128xf32>
    %cst_217 = arith.constant 5.000000e-01 : f32
    %489 = vector.broadcast %cst_217 : f32 to vector<8x128xf32>
    %490 = arith.mulf %489, %488 : vector<8x128xf32>
    %cst_218 = arith.constant 5.000000e-01 : f32
    %491 = vector.broadcast %cst_218 : f32 to vector<8x128xf32>
    %492 = arith.addf %490, %491 : vector<8x128xf32>
    %493 = vector.extract_strided_slice %484 {offsets = [0, 128], sizes = [8, 128], strides = [1, 1]} : vector<8x512xf32> to vector<8x128xf32>
    %cst_219 = arith.constant 5.000000e-01 : f32
    %494 = vector.broadcast %cst_219 : f32 to vector<8x128xf32>
    %495 = arith.mulf %494, %493 : vector<8x128xf32>
    %496 = math.tanh %495 : vector<8x128xf32>
    %cst_220 = arith.constant 5.000000e-01 : f32
    %497 = vector.broadcast %cst_220 : f32 to vector<8x128xf32>
    %498 = arith.mulf %497, %496 : vector<8x128xf32>
    %cst_221 = arith.constant 5.000000e-01 : f32
    %499 = vector.broadcast %cst_221 : f32 to vector<8x128xf32>
    %500 = arith.addf %498, %499 : vector<8x128xf32>
    %501 = vector.extract_strided_slice %484 {offsets = [0, 256], sizes = [8, 128], strides = [1, 1]} : vector<8x512xf32> to vector<8x128xf32>
    %502 = math.tanh %501 : vector<8x128xf32>
    %503 = vector.extract_strided_slice %484 {offsets = [0, 384], sizes = [8, 128], strides = [1, 1]} : vector<8x512xf32> to vector<8x128xf32>
    %cst_222 = arith.constant 5.000000e-01 : f32
    %504 = vector.broadcast %cst_222 : f32 to vector<8x128xf32>
    %505 = arith.mulf %504, %503 : vector<8x128xf32>
    %506 = math.tanh %505 : vector<8x128xf32>
    %cst_223 = arith.constant 5.000000e-01 : f32
    %507 = vector.broadcast %cst_223 : f32 to vector<8x128xf32>
    %508 = arith.mulf %507, %506 : vector<8x128xf32>
    %cst_224 = arith.constant 5.000000e-01 : f32
    %509 = vector.broadcast %cst_224 : f32 to vector<8x128xf32>
    %510 = arith.addf %508, %509 : vector<8x128xf32>
    %511 = arith.mulf %500, %478 : vector<8x128xf32>
    %512 = arith.mulf %492, %502 : vector<8x128xf32>
    %513 = arith.addf %511, %512 : vector<8x128xf32>
    %514 = math.tanh %513 : vector<8x128xf32>
    %515 = arith.mulf %510, %514 : vector<8x128xf32>
    %c48_225 = arith.constant 48 : index
    %c0_226 = arith.constant 0 : index
    %516 = vector.load %arg13[%c48_225, %c0_226] : memref<64x512xf32, #tpu.memory_space<vmem>>, vector<8x512xf32>
    %c0_227 = arith.constant 0 : index
    %c0_228 = arith.constant 0 : index
    %517 = vector.load %arg6[%c0_227, %c0_228] : memref<128x512xf32, #tpu.memory_space<vmem>>, vector<128x512xf32>
    %cst_229 = arith.constant dense<0.000000e+00> : vector<8x512xf32>
    %518 = tpu.matmul %515, %517, %cst_229 {dimension_numbers = #tpu.dot_dimension_numbers<[1], [0], [0], [1], [0, 0, 1, 1], [], []>} : vector<8x128xf32>, vector<128x512xf32>, vector<8x512xf32> -> vector<8x512xf32>
    %519 = arith.addf %516, %518 : vector<8x512xf32>
    %520 = vector.extract_strided_slice %519 {offsets = [0, 0], sizes = [8, 128], strides = [1, 1]} : vector<8x512xf32> to vector<8x128xf32>
    %cst_230 = arith.constant 5.000000e-01 : f32
    %521 = vector.broadcast %cst_230 : f32 to vector<8x128xf32>
    %522 = arith.mulf %521, %520 : vector<8x128xf32>
    %523 = math.tanh %522 : vector<8x128xf32>
    %cst_231 = arith.constant 5.000000e-01 : f32
    %524 = vector.broadcast %cst_231 : f32 to vector<8x128xf32>
    %525 = arith.mulf %524, %523 : vector<8x128xf32>
    %cst_232 = arith.constant 5.000000e-01 : f32
    %526 = vector.broadcast %cst_232 : f32 to vector<8x128xf32>
    %527 = arith.addf %525, %526 : vector<8x128xf32>
    %528 = vector.extract_strided_slice %519 {offsets = [0, 128], sizes = [8, 128], strides = [1, 1]} : vector<8x512xf32> to vector<8x128xf32>
    %cst_233 = arith.constant 5.000000e-01 : f32
    %529 = vector.broadcast %cst_233 : f32 to vector<8x128xf32>
    %530 = arith.mulf %529, %528 : vector<8x128xf32>
    %531 = math.tanh %530 : vector<8x128xf32>
    %cst_234 = arith.constant 5.000000e-01 : f32
    %532 = vector.broadcast %cst_234 : f32 to vector<8x128xf32>
    %533 = arith.mulf %532, %531 : vector<8x128xf32>
    %cst_235 = arith.constant 5.000000e-01 : f32
    %534 = vector.broadcast %cst_235 : f32 to vector<8x128xf32>
    %535 = arith.addf %533, %534 : vector<8x128xf32>
    %536 = vector.extract_strided_slice %519 {offsets = [0, 256], sizes = [8, 128], strides = [1, 1]} : vector<8x512xf32> to vector<8x128xf32>
    %537 = math.tanh %536 : vector<8x128xf32>
    %538 = vector.extract_strided_slice %519 {offsets = [0, 384], sizes = [8, 128], strides = [1, 1]} : vector<8x512xf32> to vector<8x128xf32>
    %cst_236 = arith.constant 5.000000e-01 : f32
    %539 = vector.broadcast %cst_236 : f32 to vector<8x128xf32>
    %540 = arith.mulf %539, %538 : vector<8x128xf32>
    %541 = math.tanh %540 : vector<8x128xf32>
    %cst_237 = arith.constant 5.000000e-01 : f32
    %542 = vector.broadcast %cst_237 : f32 to vector<8x128xf32>
    %543 = arith.mulf %542, %541 : vector<8x128xf32>
    %cst_238 = arith.constant 5.000000e-01 : f32
    %544 = vector.broadcast %cst_238 : f32 to vector<8x128xf32>
    %545 = arith.addf %543, %544 : vector<8x128xf32>
    %546 = arith.mulf %535, %513 : vector<8x128xf32>
    %547 = arith.mulf %527, %537 : vector<8x128xf32>
    %548 = arith.addf %546, %547 : vector<8x128xf32>
    %549 = math.tanh %548 : vector<8x128xf32>
    %550 = arith.mulf %545, %549 : vector<8x128xf32>
    %c56_239 = arith.constant 56 : index
    %c0_240 = arith.constant 0 : index
    %551 = vector.load %arg13[%c56_239, %c0_240] : memref<64x512xf32, #tpu.memory_space<vmem>>, vector<8x512xf32>
    %c0_241 = arith.constant 0 : index
    %c0_242 = arith.constant 0 : index
    %552 = vector.load %arg6[%c0_241, %c0_242] : memref<128x512xf32, #tpu.memory_space<vmem>>, vector<128x512xf32>
    %cst_243 = arith.constant dense<0.000000e+00> : vector<8x512xf32>
    %553 = tpu.matmul %550, %552, %cst_243 {dimension_numbers = #tpu.dot_dimension_numbers<[1], [0], [0], [1], [0, 0, 1, 1], [], []>} : vector<8x128xf32>, vector<128x512xf32>, vector<8x512xf32> -> vector<8x512xf32>
    %554 = arith.addf %551, %553 : vector<8x512xf32>
    %555 = vector.extract_strided_slice %554 {offsets = [0, 0], sizes = [8, 128], strides = [1, 1]} : vector<8x512xf32> to vector<8x128xf32>
    %cst_244 = arith.constant 5.000000e-01 : f32
    %556 = vector.broadcast %cst_244 : f32 to vector<8x128xf32>
    %557 = arith.mulf %556, %555 : vector<8x128xf32>
    %558 = math.tanh %557 : vector<8x128xf32>
    %cst_245 = arith.constant 5.000000e-01 : f32
    %559 = vector.broadcast %cst_245 : f32 to vector<8x128xf32>
    %560 = arith.mulf %559, %558 : vector<8x128xf32>
    %cst_246 = arith.constant 5.000000e-01 : f32
    %561 = vector.broadcast %cst_246 : f32 to vector<8x128xf32>
    %562 = arith.addf %560, %561 : vector<8x128xf32>
    %563 = vector.extract_strided_slice %554 {offsets = [0, 128], sizes = [8, 128], strides = [1, 1]} : vector<8x512xf32> to vector<8x128xf32>
    %cst_247 = arith.constant 5.000000e-01 : f32
    %564 = vector.broadcast %cst_247 : f32 to vector<8x128xf32>
    %565 = arith.mulf %564, %563 : vector<8x128xf32>
    %566 = math.tanh %565 : vector<8x128xf32>
    %cst_248 = arith.constant 5.000000e-01 : f32
    %567 = vector.broadcast %cst_248 : f32 to vector<8x128xf32>
    %568 = arith.mulf %567, %566 : vector<8x128xf32>
    %cst_249 = arith.constant 5.000000e-01 : f32
    %569 = vector.broadcast %cst_249 : f32 to vector<8x128xf32>
    %570 = arith.addf %568, %569 : vector<8x128xf32>
    %571 = vector.extract_strided_slice %554 {offsets = [0, 256], sizes = [8, 128], strides = [1, 1]} : vector<8x512xf32> to vector<8x128xf32>
    %572 = math.tanh %571 : vector<8x128xf32>
    %573 = vector.extract_strided_slice %554 {offsets = [0, 384], sizes = [8, 128], strides = [1, 1]} : vector<8x512xf32> to vector<8x128xf32>
    %cst_250 = arith.constant 5.000000e-01 : f32
    %574 = vector.broadcast %cst_250 : f32 to vector<8x128xf32>
    %575 = arith.mulf %574, %573 : vector<8x128xf32>
    %576 = math.tanh %575 : vector<8x128xf32>
    %cst_251 = arith.constant 5.000000e-01 : f32
    %577 = vector.broadcast %cst_251 : f32 to vector<8x128xf32>
    %578 = arith.mulf %577, %576 : vector<8x128xf32>
    %cst_252 = arith.constant 5.000000e-01 : f32
    %579 = vector.broadcast %cst_252 : f32 to vector<8x128xf32>
    %580 = arith.addf %578, %579 : vector<8x128xf32>
    %581 = arith.mulf %570, %548 : vector<8x128xf32>
    %582 = arith.mulf %562, %572 : vector<8x128xf32>
    %583 = arith.addf %581, %582 : vector<8x128xf32>
    %584 = math.tanh %583 : vector<8x128xf32>
    %585 = arith.mulf %580, %584 : vector<8x128xf32>
    %c0_253 = arith.constant 0 : index
    %c0_254 = arith.constant 0 : index
    %586 = vector.load %arg8[%c0_253, %c0_254] : memref<128x128xf32, #tpu.memory_space<vmem>>, vector<128x128xf32>
    %cst_255 = arith.constant dense<0.000000e+00> : vector<8x128xf32>
    %587 = tpu.matmul %585, %586, %cst_255 {dimension_numbers = #tpu.dot_dimension_numbers<[1], [0], [0], [1], [0, 0, 1, 1], [], []>} : vector<8x128xf32>, vector<128x128xf32>, vector<8x128xf32> -> vector<8x128xf32>
    %c0_256 = arith.constant 0 : index
    %c0_257 = arith.constant 0 : index
    %588 = vector.load %arg9[%c0_256, %c0_257] : memref<1x128xf32, #tpu.memory_space<vmem>>, vector<1x128xf32>
    %589 = vector.broadcast %588 : vector<1x128xf32> to vector<8x128xf32>
    %590 = arith.addf %587, %589 : vector<8x128xf32>
    %cst_258 = arith.constant 0.000000e+00 : f32
    %591 = vector.broadcast %cst_258 : f32 to vector<8x128xf32>
    %592 = arith.maximumf %590, %591 : vector<8x128xf32>
    %c0_259 = arith.constant 0 : index
    %c0_260 = arith.constant 0 : index
    %593 = vector.load %arg10[%c0_259, %c0_260] : memref<128x128xf32, #tpu.memory_space<vmem>>, vector<128x128xf32>
    %cst_261 = arith.constant dense<0.000000e+00> : vector<8x128xf32>
    %594 = tpu.matmul %592, %593, %cst_261 {dimension_numbers = #tpu.dot_dimension_numbers<[1], [0], [0], [1], [0, 0, 1, 1], [], []>} : vector<8x128xf32>, vector<128x128xf32>, vector<8x128xf32> -> vector<8x128xf32>
    %c0_262 = arith.constant 0 : index
    %c0_263 = arith.constant 0 : index
    %595 = vector.load %arg11[%c0_262, %c0_263] : memref<1x128xf32, #tpu.memory_space<vmem>>, vector<1x128xf32>
    %596 = vector.broadcast %595 : vector<1x128xf32> to vector<8x128xf32>
    %597 = arith.addf %594, %596 : vector<8x128xf32>
    %598 = arith.negf %597 : vector<8x128xf32>
    %599 = math.exp %598 : vector<8x128xf32>
    %cst_264 = arith.constant 1.000000e+00 : f32
    %600 = vector.broadcast %cst_264 : f32 to vector<8x128xf32>
    %601 = arith.addf %600, %599 : vector<8x128xf32>
    %602 = arith.divf %600, %601 : vector<8x128xf32>
    %c0_265 = arith.constant 0 : index
    %c0_266 = arith.constant 0 : index
    %603 = vector.load %arg12[%c0_265, %c0_266] : memref<8x128xf32, #tpu.memory_space<vmem>>, vector<8x128xf32>
    tpu.vector_store %arg12[%c0_265, %c0_266], %602 {strides = array<i32>} : memref<8x128xf32, #tpu.memory_space<vmem>>, vector<8x128xf32>,
    return
  }
  func.func @transform_0(%arg0: i32) -> (i32, i32) {
    %c0_i32 = arith.constant 0 : i32
    %c0_i32_0 = arith.constant 0 : i32
    return %arg0, %c0_i32 : i32, i32
  }
  func.func @transform_1(%arg0: i32) -> (i32, i32) {
    %c0_i32 = arith.constant 0 : i32
    %c0_i32_0 = arith.constant 0 : i32
    %c0_i32_1 = arith.constant 0 : i32
    return %c0_i32, %c0_i32_0 : i32, i32
  }
  func.func @transform_2(%arg0: i32) -> (i32, i32) {
    %c0_i32 = arith.constant 0 : i32
    %c0_i32_0 = arith.constant 0 : i32
    %c0_i32_1 = arith.constant 0 : i32
    return %c0_i32, %c0_i32_0 : i32, i32
  }
  func.func @transform_3(%arg0: i32) -> (i32, i32) {
    %c0_i32 = arith.constant 0 : i32
    %c0_i32_0 = arith.constant 0 : i32
    %c0_i32_1 = arith.constant 0 : i32
    return %c0_i32, %c0_i32_0 : i32, i32
  }
  func.func @transform_4(%arg0: i32) -> (i32, i32) {
    %c0_i32 = arith.constant 0 : i32
    %c0_i32_0 = arith.constant 0 : i32
    %c0_i32_1 = arith.constant 0 : i32
    return %c0_i32, %c0_i32_0 : i32, i32
  }
  func.func @transform_5(%arg0: i32) -> (i32, i32) {
    %c0_i32 = arith.constant 0 : i32
    %c0_i32_0 = arith.constant 0 : i32
    %c0_i32_1 = arith.constant 0 : i32
    return %c0_i32, %c0_i32_0 : i32, i32
  }
  func.func @transform_6(%arg0: i32) -> (i32, i32) {
    %c0_i32 = arith.constant 0 : i32
    %c0_i32_0 = arith.constant 0 : i32
    %c0_i32_1 = arith.constant 0 : i32
    return %c0_i32, %c0_i32_0 : i32, i32
  }
  func.func @transform_7(%arg0: i32) -> (i32, i32) {
    %c0_i32 = arith.constant 0 : i32
    %c0_i32_0 = arith.constant 0 : i32
    %c0_i32_1 = arith.constant 0 : i32
    return %c0_i32, %c0_i32_0 : i32, i32
  }
  func.func @transform_8(%arg0: i32) -> (i32, i32) {
    %c0_i32 = arith.constant 0 : i32
    %c0_i32_0 = arith.constant 0 : i32
    %c0_i32_1 = arith.constant 0 : i32
    return %c0_i32, %c0_i32_0 : i32, i32
  }
  func.func @transform_9(%arg0: i32) -> (i32, i32) {
    %c0_i32 = arith.constant 0 : i32
    %c0_i32_0 = arith.constant 0 : i32
    %c0_i32_1 = arith.constant 0 : i32
    return %c0_i32, %c0_i32_0 : i32, i32
  }
  func.func @transform_10(%arg0: i32) -> (i32, i32) {
    %c0_i32 = arith.constant 0 : i32
    %c0_i32_0 = arith.constant 0 : i32
    %c0_i32_1 = arith.constant 0 : i32
    return %c0_i32, %c0_i32_0 : i32, i32
  }
  func.func @transform_11(%arg0: i32) -> (i32, i32) {
    %c0_i32 = arith.constant 0 : i32
    %c0_i32_0 = arith.constant 0 : i32
    return %arg0, %c0_i32 : i32, i32
  }
}

</mosaic_0001>

<bundles_post_ra>
// kernel: lstm_model_forward.1
= control target key start
LH: loop header
LB: loop body
LE: loop exit
PB: predicated region body
PF: predicated region fallthrough
CT: control target
= control target key end

     0   :  { %16 = vsyncpa [#allocation5], 0  ;;  %s6829_s0 = inlined_call_operand.vmem [shape: f32[64,16], index: 0, kind: input, shape index: {}]   ;;  %s6830_s1 = inlined_call_operand.vmem [shape: f32[16,512], index: 1, kind: input, shape index: {}]   ;;  %s6831_s2 = inlined_call_operand.hbm [shape: f32[128,512], index: 2, kind: input, shape index: {}]   ;;  %s6832_s3 = inlined_call_operand.vmem [shape: f32[1,512], index: 3, kind: input, shape index: {}]   ;;  %s6833_s4 = inlined_call_operand.hbm [shape: f32[128,512], index: 4, kind: input, shape index: {}]   ;;  %s6834_s5 = inlined_call_operand.hbm [shape: f32[128,512], index: 5, kind: input, shape index: {}]   ;;  %s6835_s6 = inlined_call_operand.vmem [shape: f32[1,512], index: 6, kind: input, shape index: {}]   ;;  %s6836_s7 = inlined_call_operand.vmem [shape: f32[128,128], index: 7, kind: input, shape index: {}]   ;;  %s6837_s8 = inlined_call_operand.vmem [shape: f32[1,128], index: 8, kind: input, shape index: {}]   ;;  %s6838_s9 = inlined_call_operand.hbm [shape: f32[128,128], index: 9, kind: input, shape index: {}]   ;;  %s6839_s10 = inlined_call_operand.vmem [shape: f32[1,128], index: 10, kind: input, shape index: {}]   ;;  %s6840_s11 = inlined_call_operand.vmem [shape: f32[8,128], index: 11, kind: output, shape index: {}]  }
   0x1   :  { %17 = vsyncpa [#allocation7], 0 }
   0x2   :  { %18 = vsyncpa [#allocation10], 0  ;;  %s4686_s17 = smov [#allocation6]   ;;  %s4687_s19 = smov [#allocation4]  }
   0x3   :  { %s42_s18 = sshll.u32 %s4686_s17, 4  ;;  %s28_s20 = sshll.u32 %s4687_s19, 4  ;;  %s43_s18 = int_to_ptr.vmem [resolvable:$true] %s42_s18  ;;  %s29_s20 = int_to_ptr.vmem [resolvable:$true] %s28_s20 }
   0x4   :  { %s4608_s21 = scalar_lea.vmem %s43_s18, 8192  ;;  %p4613_p1 = scmp.lt.s32.totalorder %s43_s18, %s43_s18 }
   0x5   :  { %p4609_p0 = scmp.ne.s32.totalorder %s43_s18, %s4608_s21  ;;  %p4614_p2 = scmp.lt.s32.totalorder %s4608_s21, %s4608_s21 }
   0x7   :  { %p4615_p3 = por %p4614_p2, %p4613_p1 }
   0x9   :  { %p4616_p4 = pnand %p4615_p3, %p4609_p0 }
   0xb   :  { %4619 = shalt.err (!%p4616_p4)
}
   0xc   :  { %s4688_s22 = smov 512   ;;  %s4689_s23 = smov 32  }
   0xd   :  { %48 = dma.hbm_to_vmem [thread:$0]  %s6833_s4, 8192, %s43_s18, [#allocation7], %s4688_s22, %s4688_s22, %s4689_s23  }
   0xe   :  { %s4628_s26 = scalar_lea.vmem %s29_s20, 8192  ;;  %p4633_p6 = scmp.lt.s32.totalorder %s29_s20, %s29_s20 }
   0xf   :  { %p4629_p5 = scmp.ne.s32.totalorder %s29_s20, %s4628_s26  ;;  %p4634_p7 = scmp.lt.s32.totalorder %s4628_s26, %s4628_s26 }
  0x11   :  { %p4635_p8 = por %p4634_p7, %p4633_p6 }
  0x13   :  { %p4636_p9 = pnand %p4635_p8, %p4629_p5 }
  0x15   :  { %4639 = shalt.err (!%p4636_p9)
}
  0x16   :  { %34 = dma.hbm_to_vmem [thread:$0]  %s6831_s2, 8192, %s29_s20, [#allocation5], %s4688_s22, %s4688_s22, %s4689_s23  }
  0x17   :  { %s4690_s29 = smov [#allocation8]   ;;  %s4691_s12 = smov [#allocation9]  }
  0x18   :  { %s54_s30 = sshll.u32 %s4690_s29, 4  ;;  %s72_s13 = sshll.u32 %s4691_s12, 4  ;;  %s55_s30 = int_to_ptr.vmem [resolvable:$true] %s54_s30  ;;  %s73_s13 = int_to_ptr.vmem [resolvable:$true] %s72_s13 }
  0x19   :  { %s4648_s14 = scalar_lea.vmem %s55_s30, 8192  ;;  %p4653_p11 = scmp.lt.s32.totalorder %s55_s30, %s55_s30 }
  0x1a   :  { %p4649_p10 = scmp.ne.s32.totalorder %s55_s30, %s4648_s14  ;;  %p4654_p12 = scmp.lt.s32.totalorder %s4648_s14, %s4648_s14 }
  0x1c   :  { %p4655_p13 = por %p4654_p12, %p4653_p11 }
  0x1e   :  { %p4656_p0 = pnand %p4655_p13, %p4649_p10 }
  0x20   :  { %4659 = shalt.err (!%p4656_p0)
}
  0x21   :  { %60 = dma.hbm_to_vmem [thread:$0]  %s6834_s5, 8192, %s55_s30, [#allocation7], %s4688_s22, %s4688_s22, %s4689_s23  }
  0x22   :  { %s4668_s16 = scalar_lea.vmem %s73_s13, 2048  ;;  %p4673_p2 = scmp.lt.s32.totalorder %s73_s13, %s73_s13 }
  0x23   :  { %p4669_p1 = scmp.ne.s32.totalorder %s73_s13, %s4668_s16  ;;  %p4674_p3 = scmp.lt.s32.totalorder %s4668_s16, %s4668_s16 }
  0x25   :  { %p4675_p4 = por %p4674_p3, %p4673_p2 }
  0x27   :  { %p4676_p5 = pnand %p4675_p4, %p4669_p1 }
  0x29   :  { %4679 = shalt.err (!%p4676_p5)
}
  0x2a   :  { %s4692_s2 = smov 128   ;;  %s4693_s17 = smov 8  }
  0x2b   :  { %78 = dma.hbm_to_vmem [thread:$0]  %s6838_s9, 2048, %s73_s13, [#allocation10], %s4692_s2, %s4692_s2, %s4693_s17  }
  0x2c   :  { %4680 = dma.done.wait [#allocation5], 8192  }
  0x2d   :  { %4681 = vsyncadd [#allocation5], 4294959104 }
  0x2e   :  { %4682 = dma.done.wait [#allocation7], 16384  }
  0x2f   :  { %4683 = vsyncadd [#allocation7], 4294950912 }
  0x30   :  { %4684 = dma.done.wait [#allocation10], 2048  }
  0x31   :  { %4685 = vsyncadd [#allocation10], 4294965248  ;;  %v6841_v0 = vmov 0.0   ;;  %v106_v1 = vld [vmem:[%s6830_s1 + $0x28] sm:$0xff]  ;;  %v108_v2 = vld [vmem:[%s6830_s1 + $0x38] sm:$0xff]  ;;  %vm131_vm0 = vcmask 130048  }
  0x32   :  { %220 = vmatprep.mubr.f32.mxu0 %v6841_v0  ;;  %333 = vmatprep.mubr.f32.mxu1 %v6841_v0  ;;  %v105_v3 = vld [vmem:[%s6830_s1 + $0x20] sm:$0xff]  ;;  %v107_v4 = vld [vmem:[%s6830_s1 + $0x30] sm:$0xff]  ;;  %v102_v5 = vld [vmem:[%s6830_s1 + $0x8] sm:$0xff]  ;;  %vm4695_vm1 = vmmov 0  }
  0x33   :  { %184 = vmatprep.subr.mxu0 %v106_v1  ;;  %297 = vmatprep.subr.mxu1 %v108_v2  ;;  %v104_v6 = vld [vmem:[%s6830_s1 + $0x18] sm:$0xff]  ;;  %v101_v7 = vld [vmem:[%s6830_s1] sm:$0xff]  ;;  %v103_v8 = vld [vmem:[%s6830_s1 + $0x10] sm:$0xff] }
  0x34   :  { %185 = vmatpush1.msra.mxu0 %v105_v3  ;;  %298 = vmatpush1.msra.mxu1 %v107_v4  ;;  %v93_v9 = vld [vmem:[%s6829_s0] sm:$0xff]  ;;  %v4797_v10 = vld [vmem:[#allocation4 + $0x1e8] sm:$0xff]  ;;  %v4799_v11 = vld [vmem:[#allocation4 + $0x1f8] sm:$0xff] }
  0x35   :  { %186 = vmatprep.subr.mxu0 %v102_v5  ;;  %299 = vmatprep.subr.mxu1 %v104_v6  ;;  %v4801_v12 = vld [vmem:[#allocation4 + $0x1e0] sm:$0xff]  ;;  %v4803_v13 = vld [vmem:[#allocation4 + $0x1f0] sm:$0xff]  ;;  %v4807_v14 = vld [vmem:[#allocation4 + $0x1c8] sm:$0xff] }
  0x36   :  { %187 = vmatpush1.msra.mxu0 %v101_v7  ;;  %300 = vmatpush1.msra.mxu1 %v103_v8  ;;  %v4809_v15 = vld [vmem:[#allocation4 + $0x1d8] sm:$0xff]  ;;  %v4815_v16 = vld [vmem:[#allocation4 + $0x1c0] sm:$0xff]  ;;  %v4817_v17 = vld [vmem:[#allocation4 + $0x1d0] sm:$0xff] }
  0x37   :  { %4239 = vmatmul.mubr.msk.f32.vlgmr.msra.gmra.mxu0 %vm131_vm0, %v93_v9  ;;  %4247 = vmatmul.mubr.msk.f32.vlgmr.msra.gmra.mxu1 %vm131_vm0, %v93_v9  ;;  %v94_v18 = vld [vmem:[%s6829_s0 + $0x8] sm:$0xff]  ;;  %v4828_v20 = vld [vmem:[#allocation4 + $0x1b8] sm:$0xff]  ;;  %v4832_v21 = vld [vmem:[#allocation4 + $0x1a0] sm:$0xff] }
  0x38   :  { %482 = vmatprep.subr.mxu0 %v4797_v10  ;;  %553 = vmatprep.subr.mxu1 %v4799_v11  ;;  %v4826_v19 = vld [vmem:[#allocation4 + $0x1a8] sm:$0xff]  ;;  %v4834_v22 = vld [vmem:[#allocation4 + $0x1b0] sm:$0xff]  ;;  %v4840_v24 = vld [vmem:[#allocation4 + $0x198] sm:$0xff] }
  0x39   :  { %483 = vmatpush1.msra.mxu0 %v4801_v12  ;;  %554 = vmatpush1.msra.mxu1 %v4803_v13  ;;  %v4838_v23 = vld [vmem:[#allocation4 + $0x188] sm:$0xff]  ;;  %v4846_v25 = vld [vmem:[#allocation4 + $0x180] sm:$0xff]  ;;  %v4848_v26 = vld [vmem:[#allocation4 + $0x190] sm:$0xff] }
  0x3a   :  { %484 = vmatprep.subr.mxu0 %v4807_v14  ;;  %555 = vmatprep.subr.mxu1 %v4809_v15  ;;  %v95_v27 = vld [vmem:[%s6829_s0 + $0x10] sm:$0xff]  ;;  %v4857_v28 = vld [vmem:[#allocation4 + $0x168] sm:$0xff]  ;;  %v4859_v29 = vld [vmem:[#allocation4 + $0x178] sm:$0xff] }
  0x3b   :  { %226 = vmatprep.mubr.f32.mxu0 %v6841_v0  ;;  %339 = vmatprep.mubr.f32.mxu1 %v6841_v0  ;;  %v4863_v30 = vld [vmem:[#allocation4 + $0x160] sm:$0xff]  ;;  %v4865_v31 = vld [vmem:[#allocation4 + $0x170] sm:$0xff]  ;;  %v4869_v32 = vld [vmem:[#allocation4 + $0x148] sm:$0xff] }
  0x3c   :  { %485 = vmatpush1.msra.mxu0 %v4815_v16  ;;  %556 = vmatpush1.msra.mxu1 %v4817_v17  ;;  %v4871_v33 = vld [vmem:[#allocation4 + $0x158] sm:$0xff]  ;;  %v4877_v34 = vld [vmem:[#allocation4 + $0x140] sm:$0xff]  ;;  %v4879_v35 = vld [vmem:[#allocation4 + $0x150] sm:$0xff] }
  0x3d   :  { %4240 = vmatmul.mubr.msk.f32.gmra.mxu0 %vm131_vm0, %v94_v18  ;;  %4248 = vmatmul.mubr.msk.f32.gmra.mxu1 %vm131_vm0, %v94_v18  ;;  %v96_v36 = vld [vmem:[%s6829_s0 + $0x18] sm:$0xff]  ;;  %v4888_v37 = vld [vmem:[#allocation4 + $0x128] sm:$0xff]  ;;  %v4894_v39 = vld [vmem:[#allocation4 + $0x120] sm:$0xff] }
  0x3e   :  { %486 = vmatprep.subr.mxu0 %v4826_v19  ;;  %557 = vmatprep.subr.mxu1 %v4828_v20  ;;  %v4890_v38 = vld [vmem:[#allocation4 + $0x138] sm:$0xff]  ;;  %v4896_v40 = vld [vmem:[#allocation4 + $0x130] sm:$0xff]  ;;  %v4900_v41 = vld [vmem:[#allocation4 + $0x108] sm:$0xff] }
  0x3f   :  { %487 = vmatpush1.msra.mxu0 %v4832_v21  ;;  %558 = vmatpush1.msra.mxu1 %v4834_v22  ;;  %v4902_v42 = vld [vmem:[#allocation4 + $0x118] sm:$0xff]  ;;  %v4908_v43 = vld [vmem:[#allocation4 + $0x100] sm:$0xff]  ;;  %v4910_v44 = vld [vmem:[#allocation4 + $0x110] sm:$0xff] }
  0x40   :  { %488 = vmatprep.subr.mxu0 %v4838_v23  ;;  %559 = vmatprep.subr.mxu1 %v4840_v24  ;;  %v97_v45 = vld [vmem:[%s6829_s0 + $0x20] sm:$0xff]  ;;  %v4919_v46 = vld [vmem:[#allocation4 + $0xe8] sm:$0xff]  ;;  %v4921_v47 = vld [vmem:[#allocation4 + $0xf8] sm:$0xff] }
  0x41   :  { %232 = vmatprep.mubr.f32.mxu0 %v6841_v0  ;;  %345 = vmatprep.mubr.f32.mxu1 %v6841_v0  ;;  %v4925_v48 = vld [vmem:[#allocation4 + $0xe0] sm:$0xff]  ;;  %v4927_v49 = vld [vmem:[#allocation4 + $0xf0] sm:$0xff]  ;;  %v4931_v50 = vld [vmem:[#allocation4 + $0xc8] sm:$0xff] }
  0x42   :  { %489 = vmatpush1.msra.mxu0 %v4846_v25  ;;  %560 = vmatpush1.msra.mxu1 %v4848_v26  ;;  %v4933_v51 = vld [vmem:[#allocation4 + $0xd8] sm:$0xff]  ;;  %v4939_v52 = vld [vmem:[#allocation4 + $0xc0] sm:$0xff]  ;;  %v4941_v53 = vld [vmem:[#allocation4 + $0xd0] sm:$0xff] }
  0x43   :  { %4241 = vmatmul.mubr.msk.f32.gmra.mxu0 %vm131_vm0, %v95_v27  ;;  %4249 = vmatmul.mubr.msk.f32.gmra.mxu1 %vm131_vm0, %v95_v27  ;;  %v98_v54 = vld [vmem:[%s6829_s0 + $0x28] sm:$0xff]  ;;  %v4952_v56 = vld [vmem:[#allocation4 + $0xb8] sm:$0xff]  ;;  %v4956_v57 = vld [vmem:[#allocation4 + $0xa0] sm:$0xff] }
  0x44   :  { %490 = vmatprep.subr.mxu0 %v4857_v28  ;;  %561 = vmatprep.subr.mxu1 %v4859_v29  ;;  %v4950_v55 = vld [vmem:[#allocation4 + $0xa8] sm:$0xff]  ;;  %v4958_v58 = vld [vmem:[#allocation4 + $0xb0] sm:$0xff]  ;;  %v4964_v60 = vld [vmem:[#allocation4 + $0x98] sm:$0xff] }
  0x45   :  { %491 = vmatpush1.msra.mxu0 %v4863_v30  ;;  %562 = vmatpush1.msra.mxu1 %v4865_v31  ;;  %7026 = vst [vmem:[#allocation14_spill] sm:$0xff] %v4958_v58  ;;  %v4962_v59 = vld [vmem:[#allocation4 + $0x88] sm:$0xff]  ;;  %7028 = vst [vmem:[#allocation16_spill] sm:$0xff] %v4964_v60  ;;  %v4970_v61 = vld [vmem:[#allocation4 + $0x80] sm:$0xff] }
  0x46   :  { %492 = vmatprep.subr.mxu0 %v4869_v32  ;;  %563 = vmatprep.subr.mxu1 %v4871_v33  ;;  %7027 = vst [vmem:[#allocation15_spill] sm:$0xff] %v4962_v59  ;;  %7029 = vst [vmem:[#allocation17_spill] sm:$0xff] %v4970_v61  ;;  %v4972_v62 = vld [vmem:[#allocation4 + $0x90] sm:$0xff]  ;;  %v4981_v1 = vld [vmem:[#allocation4 + $0x68] sm:$0xff] }
  0x47   :  { %238 = vmatprep.mubr.f32.mxu0 %v6841_v0  ;;  %351 = vmatprep.mubr.f32.mxu1 %v6841_v0  ;;  %7030 = vst [vmem:[#allocation18_spill] sm:$0xff] %v4972_v62  ;;  %v99_v63 = vld [vmem:[%s6829_s0 + $0x30] sm:$0xff]  ;;  %7031 = vst [vmem:[#allocation19_spill] sm:$0xff] %v4981_v1  ;;  %v4983_v2 = vld [vmem:[#allocation4 + $0x78] sm:$0xff] }
  0x48   :  { %493 = vmatpush1.msra.mxu0 %v4877_v34  ;;  %564 = vmatpush1.msra.mxu1 %v4879_v35  ;;  %7032 = vst [vmem:[#allocation20_spill] sm:$0xff] %v4983_v2  ;;  %v4987_v3 = vld [vmem:[#allocation4 + $0x60] sm:$0xff]  ;;  %v4989_v4 = vld [vmem:[#allocation4 + $0x70] sm:$0xff]  ;;  %v4993_v5 = vld [vmem:[#allocation4 + $0x48] sm:$0xff] }
  0x49   :  { %4242 = vmatmul.mubr.msk.f32.gmra.mxu0 %vm131_vm0, %v96_v36  ;;  %4250 = vmatmul.mubr.msk.f32.gmra.mxu1 %vm131_vm0, %v96_v36  ;;  %7033 = vst [vmem:[#allocation21_spill] sm:$0xff] %v4987_v3  ;;  %7034 = vst [vmem:[#allocation22_spill] sm:$0xff] %v4989_v4  ;;  %v4995_v6 = vld [vmem:[#allocation4 + $0x58] sm:$0xff]  ;;  %v5001_v7 = vld [vmem:[#allocation4 + $0x40] sm:$0xff] }
  0x4a   :  { %494 = vmatprep.subr.mxu0 %v4888_v37  ;;  %565 = vmatprep.subr.mxu1 %v4890_v38  ;;  %7035 = vst [vmem:[#allocation23_spill] sm:$0xff] %v4993_v5  ;;  %7036 = vst [vmem:[#allocation24_spill] sm:$0xff] %v4995_v6  ;;  %v5003_v8 = vld [vmem:[#allocation4 + $0x50] sm:$0xff]  ;;  %v100_v9 = vld [vmem:[%s6829_s0 + $0x38] sm:$0xff] }
  0x4b   :  { %495 = vmatpush1.msra.mxu0 %v4894_v39  ;;  %566 = vmatpush1.msra.mxu1 %v4896_v40  ;;  %7037 = vst [vmem:[#allocation25_spill] sm:$0xff] %v5001_v7  ;;  %7038 = vst [vmem:[#allocation26_spill] sm:$0xff] %v5003_v8  ;;  %v5012_v18 = vld [vmem:[#allocation4 + $0x28] sm:$0xff]  ;;  %v5014_v27 = vld [vmem:[#allocation4 + $0x38] sm:$0xff] }
  0x4c   :  { %496 = vmatprep.subr.mxu0 %v4900_v41  ;;  %567 = vmatprep.subr.mxu1 %v4902_v42  ;;  %7039 = vst [vmem:[#allocation27_spill] sm:$0xff] %v5012_v18  ;;  %7040 = vst [vmem:[#allocation28_spill] sm:$0xff] %v5014_v27  ;;  %v5018_v36 = vld [vmem:[#allocation4 + $0x20] sm:$0xff] }
  0x4d   :  { %244 = vmatprep.mubr.f32.mxu0 %v6841_v0  ;;  %357 = vmatprep.mubr.f32.mxu1 %v6841_v0  ;;  %7041 = vst [vmem:[#allocation29_spill] sm:$0xff] %v5018_v36 }
  0x4e   :  { %497 = vmatpush1.msra.mxu0 %v4908_v43  ;;  %568 = vmatpush1.msra.mxu1 %v4910_v44 }
  0x4f   :  { %4243 = vmatmul.mubr.msk.f32.gmra.mxu0 %vm131_vm0, %v97_v45  ;;  %4251 = vmatmul.mubr.msk.f32.gmra.mxu1 %vm131_vm0, %v97_v45  ;;  %v5020_v45 = vld [vmem:[#allocation4 + $0x30] sm:$0xff] }
  0x50   :  { %498 = vmatprep.subr.mxu0 %v4919_v46  ;;  %569 = vmatprep.subr.mxu1 %v4921_v47  ;;  %7042 = vst [vmem:[#allocation30_spill] sm:$0xff] %v5020_v45 }
  0x51   :  { %499 = vmatpush1.msra.mxu0 %v4925_v48  ;;  %570 = vmatpush1.msra.mxu1 %v4927_v49 }
  0x52   :  { %500 = vmatprep.subr.mxu0 %v4931_v50  ;;  %571 = vmatprep.subr.mxu1 %v4933_v51 }
  0x53   :  { %250 = vmatprep.mubr.f32.mxu0 %v6841_v0  ;;  %363 = vmatprep.mubr.f32.mxu1 %v6841_v0 }
  0x54   :  { %501 = vmatpush1.msra.mxu0 %v4939_v52  ;;  %572 = vmatpush1.msra.mxu1 %v4941_v53 }
  0x55   :  { %4244 = vmatmul.mubr.msk.f32.gmra.mxu0 %vm131_vm0, %v98_v54  ;;  %4252 = vmatmul.mubr.msk.f32.gmra.mxu1 %vm131_vm0, %v98_v54  ;;  %v5024_v54 = vld [vmem:[#allocation4 + $0x8] sm:$0xff] }
  0x56   :  { %502 = vmatprep.subr.mxu0 %v4950_v55  ;;  %573 = vmatprep.subr.mxu1 %v4952_v56  ;;  %7043 = vst [vmem:[#allocation31_spill] sm:$0xff] %v5024_v54 }
  0x57   :  { %503 = vmatpush1.msra.mxu0 %v4956_v57  ;;  %574 = vmatpush1.msra.mxu1 %v4958_v58 }
  0x58   :  { %504 = vmatprep.subr.mxu0 %v4962_v59  ;;  %575 = vmatprep.subr.mxu1 %v4964_v60 }
  0x59   :  { %256 = vmatprep.mubr.f32.mxu0 %v6841_v0  ;;  %369 = vmatprep.mubr.f32.mxu1 %v6841_v0 }
  0x5a   :  { %505 = vmatpush1.msra.mxu0 %v4970_v61  ;;  %576 = vmatpush1.msra.mxu1 %v4972_v62 }
  0x5b   :  { %4245 = vmatmul.mubr.msk.f32.gmra.mxu0 %vm131_vm0, %v99_v63  ;;  %4253 = vmatmul.mubr.msk.f32.gmra.mxu1 %vm131_vm0, %v99_v63  ;;  %v5026_v63 = vld [vmem:[#allocation4 + $0x18] sm:$0xff] }
  0x5c   :  { %506 = vmatprep.subr.mxu0 %v4981_v1  ;;  %577 = vmatprep.subr.mxu1 %v4983_v2  ;;  %7044 = vst [vmem:[#allocation32_spill] sm:$0xff] %v5026_v63 }
  0x5d   :  { %507 = vmatpush1.msra.mxu0 %v4987_v3  ;;  %578 = vmatpush1.msra.mxu1 %v4989_v4 }
  0x5e   :  { %508 = vmatprep.subr.mxu0 %v4993_v5  ;;  %579 = vmatprep.subr.mxu1 %v4995_v6 }
  0x5f   :  { %262 = vmatprep.mubr.f32.mxu0 %v6841_v0  ;;  %375 = vmatprep.mubr.f32.mxu1 %v6841_v0  ;;  %v5030_v0 = vld [vmem:[#allocation4] sm:$0xff] }
  0x60   :  { %509 = vmatpush1.msra.mxu0 %v5001_v7  ;;  %580 = vmatpush1.msra.mxu1 %v5003_v8  ;;  %7045 = vst [vmem:[#allocation33_spill] sm:$0xff] %v5030_v0  ;;  %v5034_v8 = vld [vmem:[#allocation4 + $0x10] sm:$0xff] }
  0x61   :  { %4246 = vmatmul.mubr.msk.f32.gmra.mxu0 %vm131_vm0, %v100_v9  ;;  %4254 = vmatmul.mubr.msk.f32.gmra.mxu1 %vm131_vm0, %v100_v9  ;;  %7046 = vst [vmem:[#allocation34_spill] sm:$0xff] %v5034_v8  ;;  %v7047_v9 = vmov 0.0  }
  0x62   :  { %510 = vmatprep.subr.mxu0 %v5012_v18  ;;  %581 = vmatprep.subr.mxu1 %v5014_v27 }
  0x63   :  { %511 = vmatpush1.msra.mxu0 %v5018_v36  ;;  %582 = vmatpush1.msra.mxu1 %v5020_v45 }
  0x64   :  { %512 = vmatprep.subr.mxu0 %v5024_v54  ;;  %583 = vmatprep.subr.mxu1 %v5026_v63 }
  0x65   :  { %513 = vmatpush1.msra.mxu0 %v5030_v0  ;;  %546 = vmatprep.mubr.f32.mxu0 %v7047_v9 }
  0x66   :  { %584 = vmatpush1.msra.mxu1 %v5034_v8  ;;  %617 = vmatprep.mubr.f32.mxu1 %v7047_v9 }
  0x67   :  { %547 = vmatmul.mubr.f32.vlgmr.msra.gmra.mxu0 %v7047_v9  ;;  %618 = vmatmul.mubr.f32.vlgmr.msra.gmra.mxu1 %v7047_v9 }
  0x68   :  { %715 = vmatprep.subr.mxu0 %v4797_v10  ;;  %786 = vmatprep.subr.mxu1 %v4799_v11 }
  0x69   :  { %716 = vmatpush1.msra.mxu0 %v4801_v12  ;;  %787 = vmatpush1.msra.mxu1 %v4803_v13 }
  0x6a   :  { %717 = vmatprep.subr.mxu0 %v4807_v14  ;;  %788 = vmatprep.subr.mxu1 %v4809_v15 }
  0x6b   :  { %718 = vmatpush1.msra.mxu0 %v4815_v16  ;;  %789 = vmatpush1.msra.mxu1 %v4817_v17 }
  0x6c   :  { %719 = vmatprep.subr.mxu0 %v4826_v19  ;;  %790 = vmatprep.subr.mxu1 %v4828_v20 }
  0x6d   :  { %720 = vmatpush1.msra.mxu0 %v4832_v21  ;;  %791 = vmatpush1.msra.mxu1 %v4834_v22 }
  0x6e   :  { %721 = vmatprep.subr.mxu0 %v4838_v23  ;;  %792 = vmatprep.subr.mxu1 %v4840_v24 }
  0x6f   :  { %722 = vmatpush1.msra.mxu0 %v4846_v25  ;;  %793 = vmatpush1.msra.mxu1 %v4848_v26 }
  0x70   :  { %723 = vmatprep.subr.mxu0 %v4857_v28  ;;  %794 = vmatprep.subr.mxu1 %v4859_v29 }
  0x71   :  { %724 = vmatpush1.msra.mxu0 %v4863_v30  ;;  %795 = vmatpush1.msra.mxu1 %v4865_v31 }
  0x72   :  { %725 = vmatprep.subr.mxu0 %v4869_v32  ;;  %796 = vmatprep.subr.mxu1 %v4871_v33 }
  0x73   :  { %726 = vmatpush1.msra.mxu0 %v4877_v34  ;;  %797 = vmatpush1.msra.mxu1 %v4879_v35 }
  0x74   :  { %727 = vmatprep.subr.mxu0 %v4888_v37  ;;  %798 = vmatprep.subr.mxu1 %v4890_v38 }
  0x75   :  { %728 = vmatpush1.msra.mxu0 %v4894_v39  ;;  %799 = vmatpush1.msra.mxu1 %v4896_v40 }
  0x76   :  { %729 = vmatprep.subr.mxu0 %v4900_v41  ;;  %800 = vmatprep.subr.mxu1 %v4902_v42 }
  0x77   :  { %730 = vmatpush1.msra.mxu0 %v4908_v43  ;;  %801 = vmatpush1.msra.mxu1 %v4910_v44 }
  0x78   :  { %731 = vmatprep.subr.mxu0 %v4919_v46  ;;  %802 = vmatprep.subr.mxu1 %v4921_v47 }
  0x79   :  { %732 = vmatpush1.msra.mxu0 %v4925_v48  ;;  %803 = vmatpush1.msra.mxu1 %v4927_v49 }
  0x7a   :  { %733 = vmatprep.subr.mxu0 %v4931_v50  ;;  %804 = vmatprep.subr.mxu1 %v4933_v51 }
  0x7b   :  { %734 = vmatpush1.msra.mxu0 %v4939_v52  ;;  %805 = vmatpush1.msra.mxu1 %v4941_v53 }
  0x7c   :  { %735 = vmatprep.subr.mxu0 %v4950_v55  ;;  %806 = vmatprep.subr.mxu1 %v4952_v56 }
  0x7d   :  { %736 = vmatpush1.msra.mxu0 %v4956_v57  ;;  %807 = vmatpush1.msra.mxu1 %v4958_v58 }
  0x7e   :  { %737 = vmatprep.subr.mxu0 %v4962_v59  ;;  %808 = vmatprep.subr.mxu1 %v4964_v60  ;;  %v7048_v59 = vld [vmem:[#allocation26_spill] sm:$0xff] }
  0x7f   :  { %738 = vmatpush1.msra.mxu0 %v4970_v61  ;;  %809 = vmatpush1.msra.mxu1 %v4972_v62 }
  0x80   :  { %739 = vmatprep.subr.mxu0 %v4981_v1  ;;  %810 = vmatprep.subr.mxu1 %v4983_v2 }
  0x81   :  { %740 = vmatpush1.msra.mxu0 %v4987_v3  ;;  %811 = vmatpush1.msra.mxu1 %v4989_v4 }
  0x82   :  { %741 = vmatprep.subr.mxu0 %v4993_v5  ;;  %812 = vmatprep.subr.mxu1 %v4995_v6 }
  0x83   :  { %742 = vmatpush1.msra.mxu0 %v5001_v7  ;;  %813 = vmatpush1.msra.mxu1 %v7048_v59 }
  0x84   :  { %743 = vmatprep.subr.mxu0 %v5012_v18  ;;  %814 = vmatprep.subr.mxu1 %v5014_v27  ;;  %v111_v27 = vlaneseq }
  0x85   :  { %744 = vmatpush1.msra.mxu0 %v5018_v36  ;;  %815 = vmatpush1.msra.mxu1 %v5020_v45 }
  0x86   :  { %745 = vmatprep.subr.mxu0 %v5024_v54  ;;  %816 = vmatprep.subr.mxu1 %v5026_v63  ;;  %v5112_v36 = vshrl.u32 %v111_v27, 7 }
  0x87   :  { %746 = vmatpush1.msra.mxu0 %v5030_v0  ;;  %779 = vmatprep.mubr.f32.mxu0 %v7047_v9 }
  0x88   :  { %817 = vmatpush1.msra.mxu1 %v5034_v8  ;;  %850 = vmatprep.mubr.f32.mxu1 %v7047_v9  ;;  %7049 = vst [vmem:[#allocation35_spill] sm:$0xff] %v5112_v36  ;;  %v6862_v63 = vsub.s32 0, %v5112_v36  ;;  %v6864_v0 = vsub.s32 2, %v5112_v36  ;;  %v109_v8 = vld [vmem:[%s6832_s3] sm:$0xf]  ;;  %v6869_v27 = vsub.s32 3, %v5112_v36 }
  0x89   :  { %948 = vmatprep.subr.mxu0 %v4797_v10  ;;  %1019 = vmatprep.subr.mxu1 %v4799_v11  ;;  %v6868_v11 = vsub.s32 1, %v5112_v36 }
  0x8a   :  { %v114_v18 = vrot.slane %v109_v8, %v6862_v63  ;;  %v5133_v59 = vrot.slane %v109_v8, %v6864_v0  ;;  %v5139_v4 = vrot.slane %v109_v8, %v6869_v27 }
  0x8b   :  { %v118_v5 = vrot.slane %v109_v8, %v6868_v11 }
  0xf7   :  { %v5114_v45 = vpop.f32.mrf.mxu0  ;;  %v5116_v54 = vpop.f32.mrf.mxu1 }
  0xf9   :  { %v5123_v9 = vpop.f32.mrf.mxu0  ;;  %v5125_v10 = vpop.f32.mrf.mxu1 }
  0xfd   :  { %v228_v7 = vpop.f32.mrf.mxu0  ;;  %v341_v6 = vpop.f32.mrf.mxu1 }
  0xfe   :  { %v5141_v3 = vadd.f32 %v228_v7, %v114_v18  ;;  %v5144_v2 = vadd.f32 %v341_v6, %v5133_v59 }
  0xff   :  { %v230_v1 = vpop.f32.mrf.mxu0  ;;  %v343_v63 = vpop.f32.mrf.mxu1 }
 0x100   :  { %7050 = vst [vmem:[#allocation36_spill] sm:$0xff] %v5144_v2  ;;  %v5146_v62 = vadd.f32 %v230_v1, %v118_v5  ;;  %v5149_v0 = vadd.f32 %v343_v63, %v5139_v4 }
 0x102   :  { %7051 = vst [vmem:[#allocation37_spill] sm:$0xff] %v5146_v62  ;;  %7052 = vst [vmem:[#allocation38_spill] sm:$0xff] %v5149_v0 }
 0x103   :  { %v234_v61 = vpop.f32.mrf.mxu0  ;;  %v347_v60 = vpop.f32.mrf.mxu1 }
 0x104   :  { %v5151_v58 = vadd.f32 %v234_v61, %v114_v18  ;;  %v5154_v11 = vadd.f32 %v347_v60, %v5133_v59 }
 0x105   :  { %v236_v8 = vpop.f32.mrf.mxu0  ;;  %v349_v7 = vpop.f32.mrf.mxu1 }
 0x106   :  { %7053 = vst [vmem:[#allocation39_spill] sm:$0xff] %v5151_v58  ;;  %7054 = vst [vmem:[#allocation40_spill] sm:$0xff] %v5154_v11  ;;  %v5156_v27 = vadd.f32 %v236_v8, %v118_v5  ;;  %v5159_v6 = vadd.f32 %v349_v7, %v5139_v4 }
 0x108   :  { %7055 = vst [vmem:[#allocation41_spill] sm:$0xff] %v5156_v27  ;;  %7056 = vst [vmem:[#allocation42_spill] sm:$0xff] %v5159_v6 }
 0x109   :  { %v240_v36 = vpop.f32.mrf.mxu0  ;;  %v353_v1 = vpop.f32.mrf.mxu1 }
 0x10a   :  { %v5161_v2 = vadd.f32 %v240_v36, %v114_v18  ;;  %v5164_v63 = vadd.f32 %v353_v1, %v5133_v59 }
 0x10b   :  { %v242_v0 = vpop.f32.mrf.mxu0  ;;  %v355_v61 = vpop.f32.mrf.mxu1 }
 0x10c   :  { %7057 = vst [vmem:[#allocation43_spill] sm:$0xff] %v5161_v2  ;;  %7058 = vst [vmem:[#allocation44_spill] sm:$0xff] %v5164_v63  ;;  %v5166_v58 = vadd.f32 %v242_v0, %v118_v5  ;;  %v5169_v60 = vadd.f32 %v355_v61, %v5139_v4 }
 0x10e   :  { %7059 = vst [vmem:[#allocation45_spill] sm:$0xff] %v5166_v58  ;;  %7060 = vst [vmem:[#allocation46_spill] sm:$0xff] %v5169_v60 }
 0x10f   :  { %v246_v11 = vpop.f32.mrf.mxu0  ;;  %v359_v8 = vpop.f32.mrf.mxu1 }
 0x110   :  { %v5171_v27 = vadd.f32 %v246_v11, %v114_v18  ;;  %v5174_v7 = vadd.f32 %v359_v8, %v5133_v59 }
 0x111   :  { %v248_v6 = vpop.f32.mrf.mxu0  ;;  %v361_v36 = vpop.f32.mrf.mxu1 }
 0x112   :  { %7061 = vst [vmem:[#allocation47_spill] sm:$0xff] %v5171_v27  ;;  %7062 = vst [vmem:[#allocation48_spill] sm:$0xff] %v5174_v7  ;;  %v5176_v2 = vadd.f32 %v248_v6, %v118_v5  ;;  %v5179_v1 = vadd.f32 %v361_v36, %v5139_v4 }
 0x114   :  { %7063 = vst [vmem:[#allocation49_spill] sm:$0xff] %v5176_v2  ;;  %7064 = vst [vmem:[#allocation50_spill] sm:$0xff] %v5179_v1 }
 0x115   :  { %v252_v63 = vpop.f32.mrf.mxu0  ;;  %v365_v0 = vpop.f32.mrf.mxu1 }
 0x116   :  { %v5181_v58 = vadd.f32 %v252_v63, %v114_v18  ;;  %v5184_v61 = vadd.f32 %v365_v0, %v5133_v59 }
 0x117   :  { %v254_v60 = vpop.f32.mrf.mxu0  ;;  %v367_v11 = vpop.f32.mrf.mxu1 }
 0x118   :  { %7065 = vst [vmem:[#allocation51_spill] sm:$0xff] %v5181_v58  ;;  %7066 = vst [vmem:[#allocation52_spill] sm:$0xff] %v5184_v61  ;;  %v5186_v27 = vadd.f32 %v254_v60, %v118_v5  ;;  %v5189_v8 = vadd.f32 %v367_v11, %v5139_v4 }
 0x11a   :  { %7067 = vst [vmem:[#allocation53_spill] sm:$0xff] %v5186_v27  ;;  %7068 = vst [vmem:[#allocation54_spill] sm:$0xff] %v5189_v8 }
 0x11b   :  { %v258_v7 = vpop.f32.mrf.mxu0  ;;  %v371_v6 = vpop.f32.mrf.mxu1 }
 0x11c   :  { %v5191_v2 = vadd.f32 %v258_v7, %v114_v18  ;;  %v5194_v36 = vadd.f32 %v371_v6, %v5133_v59 }
 0x11d   :  { %v260_v1 = vpop.f32.mrf.mxu0  ;;  %v373_v63 = vpop.f32.mrf.mxu1 }
 0x11e   :  { %7069 = vst [vmem:[#allocation55_spill] sm:$0xff] %v5191_v2  ;;  %7070 = vst [vmem:[#allocation56_spill] sm:$0xff] %v5194_v36  ;;  %v5196_v58 = vadd.f32 %v260_v1, %v118_v5  ;;  %v5199_v0 = vadd.f32 %v373_v63, %v5139_v4  ;;  %v223_v1 = vadd.f32 %v5114_v45, %v114_v18 }
 0x11f   :  { %v225_v63 = vadd.f32 %v5123_v9, %v118_v5 }
 0x120   :  { %7071 = vst [vmem:[#allocation57_spill] sm:$0xff] %v5196_v58  ;;  %7072 = vst [vmem:[#allocation58_spill] sm:$0xff] %v5199_v0 }
 0x121   :  { %v264_v61 = vpop.f32.mrf.mxu0  ;;  %v377_v60 = vpop.f32.mrf.mxu1 }
 0x122   :  { %v5201_v27 = vadd.f32 %v264_v61, %v114_v18  ;;  %v5204_v11 = vadd.f32 %v377_v60, %v5133_v59  ;;  %v336_v60 = vadd.f32 %v5116_v54, %v5133_v59 }
 0x123   :  { %v266_v8 = vpop.f32.mrf.mxu0  ;;  %v379_v7 = vpop.f32.mrf.mxu1 }
 0x124   :  { %7073 = vst [vmem:[#allocation59_spill] sm:$0xff] %v5201_v27  ;;  %7074 = vst [vmem:[#allocation60_spill] sm:$0xff] %v5204_v11  ;;  %v5206_v2 = vadd.f32 %v266_v8, %v118_v5  ;;  %v5209_v6 = vadd.f32 %v379_v7, %v5139_v4  ;;  %v338_v7 = vadd.f32 %v5125_v10, %v5139_v4 }
 0x126   :  { %7075 = vst [vmem:[#allocation61_spill] sm:$0xff] %v5206_v2  ;;  %7076 = vst [vmem:[#allocation62_spill] sm:$0xff] %v5209_v6  ;;  %v5474_v6 = vld [vmem:[#allocation4 + $0x30] sm:$0xff] }
 0x127   :  { %v548_v36 = vpop.f32.mrf.mxu0  ;;  %v619_v27 = vpop.f32.mrf.mxu1 }
 0x128   :  { %v624_v0 = vadd.f32 %v548_v36, %v223_v1  ;;  %v626_v8 = vadd.f32 %v619_v27, %v336_v60 }
 0x129   :  { %v550_v58 = vpop.f32.mrf.mxu0  ;;  %v621_v2 = vpop.f32.mrf.mxu1 }
 0x12a   :  { %v628_v62 = vmul.f32 0.5, %v624_v0  ;;  %v625_v61 = vadd.f32 %v550_v58, %v225_v63  ;;  %v627_v18 = vadd.f32 %v621_v2, %v338_v7 }
 0x12c   :  { %4372 = vtanh.f32 %v628_v62  ;;  %v632_v11 = vmul.f32 0.5, %v625_v61  ;;  %v637_v45 = vmul.f32 0.5, %v627_v18 }
 0x12e   :  { %4374 = vtanh.f32 %v632_v11 }
 0x12f   :  { %4376 = vtanh.f32 %v626_v8 }
 0x130   :  { %4378 = vtanh.f32 %v637_v45 }
 0x139   :  { %v4373_v5 = vpop.eup %4372 }
 0x13a   :  { %v630_v9 = vmul.f32 0.5, %v4373_v5 }
 0x13b   :  { %v4375_v36 = vpop.eup %4374 }
 0x13c   :  { %v631_v0 = vadd.f32 0.5, %v630_v9  ;;  %v634_v58 = vmul.f32 0.5, %v4375_v36  ;;  %v4377_v63 = vpop.eup %4376 }
 0x13d   :  { %v4379_v27 = vpop.eup %4378 }
 0x13e   :  { %v635_v1 = vadd.f32 0.5, %v634_v58  ;;  %v642_v62 = vmul.f32 %v4377_v63, %v631_v0  ;;  %v639_v11 = vmul.f32 0.5, %v4379_v27  ;;  %v5302_v0 = vld [vmem:[#allocation4 + $0x1e8] sm:$0xff]  ;;  %v5304_v58 = vld [vmem:[#allocation4 + $0x1f8] sm:$0xff]  ;;  %v5310_v63 = vld [vmem:[#allocation4 + $0x1f0] sm:$0xff] }
 0x13f   :  { %v5322_v27 = vld [vmem:[#allocation4 + $0x1d0] sm:$0xff] }
 0x140   :  { %v641_v59 = vmul.f32 0.0, %v635_v1  ;;  %v640_v4 = vadd.f32 0.5, %v639_v11  ;;  %v5308_v1 = vld [vmem:[#allocation4 + $0x1e0] sm:$0xff]  ;;  %v5326_v11 = vld [vmem:[#allocation4 + $0x1a8] sm:$0xff] }
 0x142   :  { %v5217_v54 = vadd.f32 %v642_v62, %v641_v59  ;;  %v5314_v59 = vld [vmem:[#allocation4 + $0x1c8] sm:$0xff]  ;;  %v5316_v62 = vld [vmem:[#allocation4 + $0x1d8] sm:$0xff] }
 0x144   :  { %4380 = vtanh.f32 %v5217_v54 }
 0x151   :  { %v4381_v10 = vpop.eup %4380 }
 0x152   :  { %v5220_v2 = vmul.f32 %v4381_v10, %v640_v4  ;;  %v5328_v4 = vld [vmem:[#allocation4 + $0x1b8] sm:$0xff]  ;;  %v5332_v10 = vld [vmem:[#allocation4 + $0x1a0] sm:$0xff] }
 0x154   :  { %7077 = vst [vmem:[#allocation63_spill] sm:$0xff] %v5220_v2  ;;  %780 = vmatmul.mubr.f32.vlgmr.msra.gmra.mxu0 %v5220_v2  ;;  %851 = vmatmul.mubr.f32.vlgmr.msra.gmra.mxu1 %v5220_v2  ;;  %v5480_v2 = vld [vmem:[#allocation4 + $0x18] sm:$0xff] }
 0x155   :  { %949 = vmatpush1.msra.mxu0 %v4801_v12  ;;  %1020 = vmatpush1.msra.mxu1 %v4803_v13  ;;  %v7078_v12 = vld [vmem:[#allocation14_spill] sm:$0xff]  ;;  %v7079_v13 = vld [vmem:[#allocation15_spill] sm:$0xff] }
 0x156   :  { %950 = vmatprep.subr.mxu0 %v4807_v14  ;;  %1021 = vmatprep.subr.mxu1 %v4809_v15  ;;  %v7080_v14 = vld [vmem:[#allocation16_spill] sm:$0xff]  ;;  %v7081_v15 = vld [vmem:[#allocation17_spill] sm:$0xff]  ;;  %7104 = vst [vmem:[#allocation15_spill] sm:$0xff] %v5302_v0 }
 0x157   :  { %951 = vmatpush1.msra.mxu0 %v4815_v16  ;;  %1022 = vmatpush1.msra.mxu1 %v4817_v17  ;;  %v7082_v16 = vld [vmem:[#allocation18_spill] sm:$0xff]  ;;  %v7083_v17 = vld [vmem:[#allocation19_spill] sm:$0xff]  ;;  %7105 = vst [vmem:[#allocation16_spill] sm:$0xff] %v5304_v58 }
 0x158   :  { %952 = vmatprep.subr.mxu0 %v4826_v19  ;;  %1023 = vmatprep.subr.mxu1 %v4828_v20  ;;  %v7084_v19 = vld [vmem:[#allocation20_spill] sm:$0xff]  ;;  %v7085_v20 = vld [vmem:[#allocation21_spill] sm:$0xff] }
 0x159   :  { %953 = vmatpush1.msra.mxu0 %v4832_v21  ;;  %1024 = vmatpush1.msra.mxu1 %v4834_v22  ;;  %v7086_v21 = vld [vmem:[#allocation22_spill] sm:$0xff]  ;;  %v7087_v22 = vld [vmem:[#allocation23_spill] sm:$0xff] }
 0x15a   :  { %954 = vmatprep.subr.mxu0 %v4838_v23  ;;  %1025 = vmatprep.subr.mxu1 %v4840_v24  ;;  %v7088_v23 = vld [vmem:[#allocation24_spill] sm:$0xff]  ;;  %v7089_v24 = vld [vmem:[#allocation25_spill] sm:$0xff] }
 0x15b   :  { %955 = vmatpush1.msra.mxu0 %v4846_v25  ;;  %1026 = vmatpush1.msra.mxu1 %v4848_v26  ;;  %v7090_v25 = vld [vmem:[#allocation26_spill] sm:$0xff]  ;;  %v7091_v26 = vld [vmem:[#allocation27_spill] sm:$0xff] }
 0x15c   :  { %956 = vmatprep.subr.mxu0 %v4857_v28  ;;  %1027 = vmatprep.subr.mxu1 %v4859_v29  ;;  %v7092_v28 = vld [vmem:[#allocation28_spill] sm:$0xff]  ;;  %v7093_v29 = vld [vmem:[#allocation29_spill] sm:$0xff] }
 0x15d   :  { %957 = vmatpush1.msra.mxu0 %v4863_v30  ;;  %1028 = vmatpush1.msra.mxu1 %v4865_v31  ;;  %v7094_v30 = vld [vmem:[#allocation30_spill] sm:$0xff]  ;;  %v7095_v31 = vld [vmem:[#allocation31_spill] sm:$0xff] }
 0x15e   :  { %958 = vmatprep.subr.mxu0 %v4869_v32  ;;  %1029 = vmatprep.subr.mxu1 %v4871_v33  ;;  %v7096_v32 = vld [vmem:[#allocation32_spill] sm:$0xff]  ;;  %v7097_v33 = vld [vmem:[#allocation33_spill] sm:$0xff]  ;;  %7120 = vst [vmem:[#allocation31_spill] sm:$0xff] %v5474_v6 }
 0x15f   :  { %959 = vmatpush1.msra.mxu0 %v4877_v34  ;;  %1030 = vmatpush1.msra.mxu1 %v4879_v35  ;;  %v7098_v34 = vmov 0.0   ;;  %v7099_v35 = vld [vmem:[#allocation34_spill] sm:$0xff]  ;;  %7122 = vst [vmem:[#allocation33_spill] sm:$0xff] %v5480_v2 }
 0x160   :  { %960 = vmatprep.subr.mxu0 %v4888_v37  ;;  %1031 = vmatprep.subr.mxu1 %v4890_v38 }
 0x161   :  { %961 = vmatpush1.msra.mxu0 %v4894_v39  ;;  %1032 = vmatpush1.msra.mxu1 %v4896_v40 }
 0x162   :  { %962 = vmatprep.subr.mxu0 %v4900_v41  ;;  %1033 = vmatprep.subr.mxu1 %v4902_v42  ;;  %v7100_v42 = vld [vmem:[#allocation37_spill] sm:$0xff] }
 0x163   :  { %963 = vmatpush1.msra.mxu0 %v4908_v43  ;;  %1034 = vmatpush1.msra.mxu1 %v4910_v44  ;;  %v7101_v44 = vld [vmem:[#allocation36_spill] sm:$0xff] }
 0x164   :  { %964 = vmatprep.subr.mxu0 %v4919_v46  ;;  %1035 = vmatprep.subr.mxu1 %v4921_v47 }
 0x165   :  { %965 = vmatpush1.msra.mxu0 %v4925_v48  ;;  %1036 = vmatpush1.msra.mxu1 %v4927_v49  ;;  %v7102_v49 = vld [vmem:[#allocation38_spill] sm:$0xff] }
 0x166   :  { %966 = vmatprep.subr.mxu0 %v4931_v50  ;;  %1037 = vmatprep.subr.mxu1 %v4933_v51 }
 0x167   :  { %967 = vmatpush1.msra.mxu0 %v4939_v52  ;;  %1038 = vmatpush1.msra.mxu1 %v4941_v53 }
 0x168   :  { %968 = vmatprep.subr.mxu0 %v4950_v55  ;;  %1039 = vmatprep.subr.mxu1 %v4952_v56 }
 0x169   :  { %969 = vmatpush1.msra.mxu0 %v4956_v57  ;;  %1040 = vmatpush1.msra.mxu1 %v7078_v12  ;;  %v5334_v12 = vld [vmem:[#allocation4 + $0x1b0] sm:$0xff] }
 0x16a   :  { %970 = vmatprep.subr.mxu0 %v7079_v13  ;;  %1041 = vmatprep.subr.mxu1 %v7080_v14  ;;  %v5338_v13 = vld [vmem:[#allocation4 + $0x188] sm:$0xff]  ;;  %v5340_v14 = vld [vmem:[#allocation4 + $0x198] sm:$0xff] }
 0x16b   :  { %971 = vmatpush1.msra.mxu0 %v7081_v15  ;;  %1042 = vmatpush1.msra.mxu1 %v7082_v16  ;;  %v5344_v15 = vld [vmem:[#allocation4 + $0x180] sm:$0xff]  ;;  %v5346_v16 = vld [vmem:[#allocation4 + $0x190] sm:$0xff] }
 0x16c   :  { %972 = vmatprep.subr.mxu0 %v7083_v17  ;;  %1043 = vmatprep.subr.mxu1 %v7084_v19  ;;  %v5350_v17 = vld [vmem:[#allocation4 + $0x168] sm:$0xff]  ;;  %v5352_v19 = vld [vmem:[#allocation4 + $0x178] sm:$0xff] }
 0x16d   :  { %973 = vmatpush1.msra.mxu0 %v7085_v20  ;;  %1044 = vmatpush1.msra.mxu1 %v7086_v21  ;;  %v5356_v20 = vld [vmem:[#allocation4 + $0x160] sm:$0xff]  ;;  %v5358_v21 = vld [vmem:[#allocation4 + $0x170] sm:$0xff] }
 0x16e   :  { %974 = vmatprep.subr.mxu0 %v7087_v22  ;;  %1045 = vmatprep.subr.mxu1 %v7088_v23  ;;  %v5362_v22 = vld [vmem:[#allocation4 + $0x148] sm:$0xff]  ;;  %v5364_v23 = vld [vmem:[#allocation4 + $0x158] sm:$0xff] }
 0x16f   :  { %975 = vmatpush1.msra.mxu0 %v7089_v24  ;;  %1046 = vmatpush1.msra.mxu1 %v7090_v25  ;;  %v5368_v24 = vld [vmem:[#allocation4 + $0x140] sm:$0xff]  ;;  %v5370_v25 = vld [vmem:[#allocation4 + $0x150] sm:$0xff] }
 0x170   :  { %976 = vmatprep.subr.mxu0 %v7091_v26  ;;  %1047 = vmatprep.subr.mxu1 %v7092_v28  ;;  %v5374_v26 = vld [vmem:[#allocation4 + $0x128] sm:$0xff]  ;;  %v5376_v28 = vld [vmem:[#allocation4 + $0x138] sm:$0xff] }
 0x171   :  { %977 = vmatpush1.msra.mxu0 %v7093_v29  ;;  %1048 = vmatpush1.msra.mxu1 %v7094_v30  ;;  %v5380_v29 = vld [vmem:[#allocation4 + $0x120] sm:$0xff]  ;;  %v5382_v30 = vld [vmem:[#allocation4 + $0x130] sm:$0xff] }
 0x172   :  { %978 = vmatprep.subr.mxu0 %v7095_v31  ;;  %1049 = vmatprep.subr.mxu1 %v7096_v32  ;;  %v5386_v31 = vld [vmem:[#allocation4 + $0x108] sm:$0xff]  ;;  %v5388_v32 = vld [vmem:[#allocation4 + $0x118] sm:$0xff] }
 0x173   :  { %979 = vmatpush1.msra.mxu0 %v7097_v33  ;;  %1012 = vmatprep.mubr.f32.mxu0 %v7098_v34  ;;  %v5392_v33 = vld [vmem:[#allocation4 + $0x100] sm:$0xff] }
 0x174   :  { %1050 = vmatpush1.msra.mxu1 %v7099_v35  ;;  %1083 = vmatprep.mubr.f32.mxu1 %v7098_v34  ;;  %v5394_v35 = vld [vmem:[#allocation4 + $0x110] sm:$0xff] }
 0x175   :  { %1181 = vmatprep.subr.mxu0 %v5302_v0  ;;  %1252 = vmatprep.subr.mxu1 %v5304_v58 }
 0x214   :  { %v781_v37 = vpop.f32.mrf.mxu0  ;;  %v852_v39 = vpop.f32.mrf.mxu1 }
 0x215   :  { %v857_v38 = vadd.f32 %v781_v37, %v5141_v3  ;;  %v859_v46 = vadd.f32 %v852_v39, %v7101_v44  ;;  %v5398_v37 = vld [vmem:[#allocation4 + $0xe8] sm:$0xff]  ;;  %v5402_v39 = vld [vmem:[#allocation4 + $0xe0] sm:$0xff]  ;;  %v5416_v44 = vld [vmem:[#allocation4 + $0xd0] sm:$0xff] }
 0x216   :  { %v783_v40 = vpop.f32.mrf.mxu0  ;;  %v854_v48 = vpop.f32.mrf.mxu1 }
 0x217   :  { %v861_v41 = vmul.f32 0.5, %v857_v38  ;;  %v858_v43 = vadd.f32 %v783_v40, %v7100_v42  ;;  %v860_v50 = vadd.f32 %v854_v48, %v7102_v49  ;;  %v5400_v38 = vld [vmem:[#allocation4 + $0xf8] sm:$0xff]  ;;  %v5406_v40 = vld [vmem:[#allocation4 + $0xf0] sm:$0xff]  ;;  %v5424_v48 = vld [vmem:[#allocation4 + $0xa0] sm:$0xff] }
 0x218   :  { %v5410_v42 = vld [vmem:[#allocation4 + $0xd8] sm:$0xff]  ;;  %v5426_v49 = vld [vmem:[#allocation4 + $0xb0] sm:$0xff] }
 0x219   :  { %4382 = vtanh.f32 %v861_v41  ;;  %v865_v47 = vmul.f32 0.5, %v858_v43  ;;  %v870_v51 = vmul.f32 0.5, %v860_v50  ;;  %v5408_v41 = vld [vmem:[#allocation4 + $0xc8] sm:$0xff]  ;;  %v5414_v43 = vld [vmem:[#allocation4 + $0xc0] sm:$0xff] }
 0x21a   :  { %v5430_v50 = vld [vmem:[#allocation4 + $0x88] sm:$0xff] }
 0x21b   :  { %4384 = vtanh.f32 %v865_v47  ;;  %v5422_v47 = vld [vmem:[#allocation4 + $0xb8] sm:$0xff] }
 0x21c   :  { %4386 = vtanh.f32 %v859_v46  ;;  %v5418_v46 = vld [vmem:[#allocation4 + $0xa8] sm:$0xff] }
 0x21d   :  { %4388 = vtanh.f32 %v870_v51  ;;  %v5432_v51 = vld [vmem:[#allocation4 + $0x98] sm:$0xff] }
 0x21e   :  { %7106 = vst [vmem:[#allocation17_spill] sm:$0xff] %v5432_v51 }
 0x226   :  { %v4383_v52 = vpop.eup %4382 }
 0x227   :  { %v863_v53 = vmul.f32 0.5, %v4383_v52  ;;  %v5436_v52 = vld [vmem:[#allocation4 + $0x80] sm:$0xff] }
 0x228   :  { %v4385_v55 = vpop.eup %4384  ;;  %7107 = vst [vmem:[#allocation18_spill] sm:$0xff] %v5436_v52 }
 0x229   :  { %v864_v56 = vadd.f32 0.5, %v863_v53  ;;  %v867_v57 = vmul.f32 0.5, %v4385_v55  ;;  %v4387_v3 = vpop.eup %4386  ;;  %v5438_v53 = vld [vmem:[#allocation4 + $0x90] sm:$0xff]  ;;  %v5442_v55 = vld [vmem:[#allocation4 + $0x68] sm:$0xff] }
 0x22a   :  { %v4389_v18 = vpop.eup %4388  ;;  %7108 = vst [vmem:[#allocation19_spill] sm:$0xff] %v5438_v53  ;;  %7109 = vst [vmem:[#allocation20_spill] sm:$0xff] %v5442_v55 }
 0x22b   :  { %v868_v61 = vadd.f32 0.5, %v867_v57  ;;  %v875_v60 = vmul.f32 %v4387_v3, %v864_v56  ;;  %v872_v45 = vmul.f32 0.5, %v4389_v18  ;;  %v5444_v56 = vld [vmem:[#allocation4 + $0x78] sm:$0xff]  ;;  %v5448_v57 = vld [vmem:[#allocation4 + $0x60] sm:$0xff]  ;;  %v5450_v3 = vld [vmem:[#allocation4 + $0x70] sm:$0xff] }
 0x22c   :  { %7110 = vst [vmem:[#allocation21_spill] sm:$0xff] %v5444_v56  ;;  %7111 = vst [vmem:[#allocation22_spill] sm:$0xff] %v5448_v57  ;;  %v5462_v18 = vld [vmem:[#allocation4 + $0x50] sm:$0xff] }
 0x22d   :  { %v874_v8 = vmul.f32 %v868_v61, %v5217_v54  ;;  %v873_v5 = vadd.f32 0.5, %v872_v45  ;;  %v5320_v54 = vld [vmem:[#allocation4 + $0x1c0] sm:$0xff]  ;;  %7112 = vst [vmem:[#allocation23_spill] sm:$0xff] %v5450_v3  ;;  %v5454_v61 = vld [vmem:[#allocation4 + $0x48] sm:$0xff]  ;;  %7116 = vst [vmem:[#allocation27_spill] sm:$0xff] %v5462_v18 }
 0x22e   :  { %7113 = vst [vmem:[#allocation24_spill] sm:$0xff] %v5454_v61  ;;  %v5466_v45 = vld [vmem:[#allocation4 + $0x28] sm:$0xff] }
 0x22f   :  { %v5293_v7 = vadd.f32 %v875_v60, %v874_v8  ;;  %v5456_v60 = vld [vmem:[#allocation4 + $0x58] sm:$0xff]  ;;  %v5460_v8 = vld [vmem:[#allocation4 + $0x40] sm:$0xff]  ;;  %7117 = vst [vmem:[#allocation28_spill] sm:$0xff] %v5466_v45 }
 0x230   :  { %7114 = vst [vmem:[#allocation25_spill] sm:$0xff] %v5456_v60  ;;  %7115 = vst [vmem:[#allocation26_spill] sm:$0xff] %v5460_v8 }
 0x231   :  { %4390 = vtanh.f32 %v5293_v7 }
 0x23e   :  { %v4391_v9 = vpop.eup %4390 }
 0x23f   :  { %v5296_v36 = vmul.f32 %v4391_v9, %v873_v5  ;;  %v5468_v5 = vld [vmem:[#allocation4 + $0x38] sm:$0xff]  ;;  %v5472_v9 = vld [vmem:[#allocation4 + $0x20] sm:$0xff] }
 0x240   :  { %7118 = vst [vmem:[#allocation29_spill] sm:$0xff] %v5468_v5  ;;  %7119 = vst [vmem:[#allocation30_spill] sm:$0xff] %v5472_v9 }
 0x241   :  { %7103 = vst [vmem:[#allocation14_spill] sm:$0xff] %v5296_v36  ;;  %1013 = vmatmul.mubr.f32.vlgmr.msra.gmra.mxu0 %v5296_v36  ;;  %1084 = vmatmul.mubr.f32.vlgmr.msra.gmra.mxu1 %v5296_v36  ;;  %v5478_v36 = vld [vmem:[#allocation4 + $0x8] sm:$0xff] }
 0x242   :  { %1245 = vmatprep.mubr.f32.mxu0 %v7098_v34  ;;  %1316 = vmatprep.mubr.f32.mxu1 %v7098_v34  ;;  %7121 = vst [vmem:[#allocation32_spill] sm:$0xff] %v5478_v36  ;;  %v5484_v34 = vld [vmem:[#allocation4] sm:$0xff] }
 0x243   :  { %1182 = vmatpush1.msra.mxu0 %v5308_v1  ;;  %1253 = vmatpush1.msra.mxu1 %v5310_v63  ;;  %7123 = vst [vmem:[#allocation34_spill] sm:$0xff] %v5484_v34 }
 0x244   :  { %1183 = vmatprep.subr.mxu0 %v5314_v59  ;;  %1254 = vmatprep.subr.mxu1 %v5316_v62 }
 0x245   :  { %1184 = vmatpush1.msra.mxu0 %v5320_v54  ;;  %1255 = vmatpush1.msra.mxu1 %v5322_v27 }
 0x246   :  { %1185 = vmatprep.subr.mxu0 %v5326_v11  ;;  %1256 = vmatprep.subr.mxu1 %v5328_v4 }
 0x247   :  { %1186 = vmatpush1.msra.mxu0 %v5332_v10  ;;  %1257 = vmatpush1.msra.mxu1 %v5334_v12 }
 0x248   :  { %1187 = vmatprep.subr.mxu0 %v5338_v13  ;;  %1258 = vmatprep.subr.mxu1 %v5340_v14 }
 0x249   :  { %1188 = vmatpush1.msra.mxu0 %v5344_v15  ;;  %1259 = vmatpush1.msra.mxu1 %v5346_v16 }
 0x24a   :  { %1189 = vmatprep.subr.mxu0 %v5350_v17  ;;  %1260 = vmatprep.subr.mxu1 %v5352_v19 }
 0x24b   :  { %1190 = vmatpush1.msra.mxu0 %v5356_v20  ;;  %1261 = vmatpush1.msra.mxu1 %v5358_v21 }
 0x24c   :  { %1191 = vmatprep.subr.mxu0 %v5362_v22  ;;  %1262 = vmatprep.subr.mxu1 %v5364_v23 }
 0x24d   :  { %1192 = vmatpush1.msra.mxu0 %v5368_v24  ;;  %1263 = vmatpush1.msra.mxu1 %v5370_v25 }
 0x24e   :  { %1193 = vmatprep.subr.mxu0 %v5374_v26  ;;  %1264 = vmatprep.subr.mxu1 %v5376_v28 }
 0x24f   :  { %1194 = vmatpush1.msra.mxu0 %v5380_v29  ;;  %1265 = vmatpush1.msra.mxu1 %v5382_v30 }
 0x250   :  { %1195 = vmatprep.subr.mxu0 %v5386_v31  ;;  %1266 = vmatprep.subr.mxu1 %v5388_v32 }
 0x251   :  { %1196 = vmatpush1.msra.mxu0 %v5392_v33  ;;  %1267 = vmatpush1.msra.mxu1 %v5394_v35 }
 0x252   :  { %1197 = vmatprep.subr.mxu0 %v5398_v37  ;;  %1268 = vmatprep.subr.mxu1 %v5400_v38 }
 0x253   :  { %1198 = vmatpush1.msra.mxu0 %v5402_v39  ;;  %1269 = vmatpush1.msra.mxu1 %v5406_v40 }
 0x254   :  { %1199 = vmatprep.subr.mxu0 %v5408_v41  ;;  %1270 = vmatprep.subr.mxu1 %v5410_v42 }
 0x255   :  { %1200 = vmatpush1.msra.mxu0 %v5414_v43  ;;  %1271 = vmatpush1.msra.mxu1 %v5416_v44 }
 0x256   :  { %1201 = vmatprep.subr.mxu0 %v5418_v46  ;;  %1272 = vmatprep.subr.mxu1 %v5422_v47 }
 0x257   :  { %1202 = vmatpush1.msra.mxu0 %v5424_v48  ;;  %1273 = vmatpush1.msra.mxu1 %v5426_v49 }
 0x258   :  { %1203 = vmatprep.subr.mxu0 %v5430_v50  ;;  %1274 = vmatprep.subr.mxu1 %v5432_v51 }
 0x259   :  { %1204 = vmatpush1.msra.mxu0 %v5436_v52  ;;  %1275 = vmatpush1.msra.mxu1 %v5438_v53 }
 0x25a   :  { %1205 = vmatprep.subr.mxu0 %v5442_v55  ;;  %1276 = vmatprep.subr.mxu1 %v5444_v56 }
 0x25b   :  { %1206 = vmatpush1.msra.mxu0 %v5448_v57  ;;  %1277 = vmatpush1.msra.mxu1 %v5450_v3  ;;  %v7126_v3 = vld [vmem:[#allocation41_spill] sm:$0xff] }
 0x25c   :  { %1207 = vmatprep.subr.mxu0 %v5454_v61  ;;  %1278 = vmatprep.subr.mxu1 %v5456_v60  ;;  %v5486_v61 = vld [vmem:[#allocation4 + $0x10] sm:$0xff] }
 0x25d   :  { %1208 = vmatpush1.msra.mxu0 %v5460_v8  ;;  %1279 = vmatpush1.msra.mxu1 %v5462_v18  ;;  %7124 = vst [vmem:[#allocation37_spill] sm:$0xff] %v5486_v61 }
 0x25e   :  { %1209 = vmatprep.subr.mxu0 %v5466_v45  ;;  %1280 = vmatprep.subr.mxu1 %v5468_v5  ;;  %v7125_v45 = vld [vmem:[#allocation39_spill] sm:$0xff] }
 0x25f   :  { %1210 = vmatpush1.msra.mxu0 %v5472_v9  ;;  %1281 = vmatpush1.msra.mxu1 %v5474_v6 }
 0x260   :  { %1211 = vmatprep.subr.mxu0 %v5478_v36  ;;  %1282 = vmatprep.subr.mxu1 %v5480_v2  ;;  %v7127_v36 = vld [vmem:[#allocation40_spill] sm:$0xff] }
 0x261   :  { %1212 = vmatpush1.msra.mxu0 %v5484_v34  ;;  %1283 = vmatpush1.msra.mxu1 %v5486_v61  ;;  %v7128_v61 = vld [vmem:[#allocation42_spill] sm:$0xff] }
 0x262   :  { %1414 = vmatprep.subr.mxu0 %v5302_v0  ;;  %1485 = vmatprep.subr.mxu1 %v5304_v58 }
 0x301   :  { %v1014_v5 = vpop.f32.mrf.mxu0  ;;  %v1085_v8 = vpop.f32.mrf.mxu1 }
 0x302   :  { %v1090_v18 = vadd.f32 %v1014_v5, %v7125_v45  ;;  %v1092_v57 = vadd.f32 %v1085_v8, %v7127_v36  ;;  %v7139_v8 = vld [vmem:[#allocation26_spill] sm:$0xff] }
 0x303   :  { %v1016_v60 = vpop.f32.mrf.mxu0  ;;  %v1087_v34 = vpop.f32.mrf.mxu1 }
 0x304   :  { %v1094_v9 = vmul.f32 0.5, %v1090_v18  ;;  %v1091_v6 = vadd.f32 %v1016_v60, %v7126_v3  ;;  %v1093_v56 = vadd.f32 %v1087_v34, %v7128_v61  ;;  %v7138_v61 = vld [vmem:[#allocation25_spill] sm:$0xff] }
 0x306   :  { %4392 = vtanh.f32 %v1094_v9  ;;  %v1098_v2 = vmul.f32 0.5, %v1091_v6  ;;  %v1103_v0 = vmul.f32 0.5, %v1093_v56  ;;  %v7140_v9 = vld [vmem:[#allocation27_spill] sm:$0xff] }
 0x308   :  { %4394 = vtanh.f32 %v1098_v2 }
 0x309   :  { %4396 = vtanh.f32 %v1092_v57  ;;  %v7137_v57 = vld [vmem:[#allocation24_spill] sm:$0xff] }
 0x30a   :  { %4398 = vtanh.f32 %v1103_v0  ;;  %v7131_v0 = vld [vmem:[#allocation18_spill] sm:$0xff] }
 0x313   :  { %v4393_v55 = vpop.eup %4392 }
 0x314   :  { %v1096_v58 = vmul.f32 0.5, %v4393_v55  ;;  %v7136_v55 = vld [vmem:[#allocation23_spill] sm:$0xff] }
 0x315   :  { %v4395_v53 = vpop.eup %4394 }
 0x316   :  { %v1097_v52 = vadd.f32 0.5, %v1096_v58  ;;  %v1100_v45 = vmul.f32 0.5, %v4395_v53  ;;  %v4397_v5 = vpop.eup %4396  ;;  %v7132_v58 = vld [vmem:[#allocation19_spill] sm:$0xff]  ;;  %v7135_v53 = vld [vmem:[#allocation22_spill] sm:$0xff] }
 0x317   :  { %v4399_v6 = vpop.eup %4398 }
 0x318   :  { %v1101_v18 = vadd.f32 0.5, %v1100_v45  ;;  %v1108_v51 = vmul.f32 %v4397_v5, %v1097_v52  ;;  %v1105_v2 = vmul.f32 0.5, %v4399_v6  ;;  %v7134_v52 = vld [vmem:[#allocation21_spill] sm:$0xff]  ;;  %v7141_v45 = vld [vmem:[#allocation28_spill] sm:$0xff] }
 0x319   :  { %v7142_v5 = vld [vmem:[#allocation29_spill] sm:$0xff]  ;;  %v7145_v6 = vld [vmem:[#allocation32_spill] sm:$0xff] }
 0x31a   :  { %v1107_v3 = vmul.f32 %v1101_v18, %v5293_v7  ;;  %v1106_v36 = vadd.f32 0.5, %v1105_v2  ;;  %v7130_v7 = vld [vmem:[#allocation17_spill] sm:$0xff]  ;;  %v7143_v18 = vld [vmem:[#allocation30_spill] sm:$0xff] }
 0x31b   :  { %v7146_v2 = vld [vmem:[#allocation33_spill] sm:$0xff] }
 0x31c   :  { %v5501_v60 = vadd.f32 %v1108_v51, %v1107_v3  ;;  %v7133_v51 = vld [vmem:[#allocation20_spill] sm:$0xff]  ;;  %v7144_v3 = vld [vmem:[#allocation31_spill] sm:$0xff] }
 0x31e   :  { %4400 = vtanh.f32 %v5501_v60 }
 0x32b   :  { %v4401_v34 = vpop.eup %4400 }
 0x32c   :  { %v5504_v56 = vmul.f32 %v4401_v34, %v1106_v36  ;;  %v7147_v36 = vld [vmem:[#allocation34_spill] sm:$0xff]  ;;  %v7148_v34 = vmov 0.0  }
 0x32e   :  { %7129 = vst [vmem:[#allocation36_spill] sm:$0xff] %v5504_v56  ;;  %1246 = vmatmul.mubr.f32.vlgmr.msra.gmra.mxu0 %v5504_v56  ;;  %1317 = vmatmul.mubr.f32.vlgmr.msra.gmra.mxu1 %v5504_v56  ;;  %v7149_v56 = vld [vmem:[#allocation37_spill] sm:$0xff] }
 0x32f   :  { %1415 = vmatpush1.msra.mxu0 %v5308_v1  ;;  %1486 = vmatpush1.msra.mxu1 %v5310_v63 }
 0x330   :  { %1416 = vmatprep.subr.mxu0 %v5314_v59  ;;  %1487 = vmatprep.subr.mxu1 %v5316_v62 }
 0x331   :  { %1417 = vmatpush1.msra.mxu0 %v5320_v54  ;;  %1488 = vmatpush1.msra.mxu1 %v5322_v27 }
 0x332   :  { %1418 = vmatprep.subr.mxu0 %v5326_v11  ;;  %1489 = vmatprep.subr.mxu1 %v5328_v4 }
 0x333   :  { %1419 = vmatpush1.msra.mxu0 %v5332_v10  ;;  %1490 = vmatpush1.msra.mxu1 %v5334_v12 }
 0x334   :  { %1420 = vmatprep.subr.mxu0 %v5338_v13  ;;  %1491 = vmatprep.subr.mxu1 %v5340_v14 }
 0x335   :  { %1421 = vmatpush1.msra.mxu0 %v5344_v15  ;;  %1492 = vmatpush1.msra.mxu1 %v5346_v16 }
 0x336   :  { %1422 = vmatprep.subr.mxu0 %v5350_v17  ;;  %1493 = vmatprep.subr.mxu1 %v5352_v19 }
 0x337   :  { %1423 = vmatpush1.msra.mxu0 %v5356_v20  ;;  %1494 = vmatpush1.msra.mxu1 %v5358_v21 }
 0x338   :  { %1424 = vmatprep.subr.mxu0 %v5362_v22  ;;  %1495 = vmatprep.subr.mxu1 %v5364_v23 }
 0x339   :  { %1425 = vmatpush1.msra.mxu0 %v5368_v24  ;;  %1496 = vmatpush1.msra.mxu1 %v5370_v25 }
 0x33a   :  { %1426 = vmatprep.subr.mxu0 %v5374_v26  ;;  %1497 = vmatprep.subr.mxu1 %v5376_v28 }
 0x33b   :  { %1427 = vmatpush1.msra.mxu0 %v5380_v29  ;;  %1498 = vmatpush1.msra.mxu1 %v5382_v30 }
 0x33c   :  { %1428 = vmatprep.subr.mxu0 %v5386_v31  ;;  %1499 = vmatprep.subr.mxu1 %v5388_v32 }
 0x33d   :  { %1429 = vmatpush1.msra.mxu0 %v5392_v33  ;;  %1500 = vmatpush1.msra.mxu1 %v5394_v35 }
 0x33e   :  { %1430 = vmatprep.subr.mxu0 %v5398_v37  ;;  %1501 = vmatprep.subr.mxu1 %v5400_v38 }
 0x33f   :  { %1431 = vmatpush1.msra.mxu0 %v5402_v39  ;;  %1502 = vmatpush1.msra.mxu1 %v5406_v40 }
 0x340   :  { %1432 = vmatprep.subr.mxu0 %v5408_v41  ;;  %1503 = vmatprep.subr.mxu1 %v5410_v42 }
 0x341   :  { %1433 = vmatpush1.msra.mxu0 %v5414_v43  ;;  %1504 = vmatpush1.msra.mxu1 %v5416_v44 }
 0x342   :  { %1434 = vmatprep.subr.mxu0 %v5418_v46  ;;  %1505 = vmatprep.subr.mxu1 %v5422_v47 }
 0x343   :  { %1435 = vmatpush1.msra.mxu0 %v5424_v48  ;;  %1506 = vmatpush1.msra.mxu1 %v5426_v49 }
 0x344   :  { %1436 = vmatprep.subr.mxu0 %v5430_v50  ;;  %1507 = vmatprep.subr.mxu1 %v7130_v7 }
 0x345   :  { %1437 = vmatpush1.msra.mxu0 %v7131_v0  ;;  %1508 = vmatpush1.msra.mxu1 %v7132_v58 }
 0x346   :  { %1438 = vmatprep.subr.mxu0 %v7133_v51  ;;  %1509 = vmatprep.subr.mxu1 %v7134_v52 }
 0x347   :  { %1439 = vmatpush1.msra.mxu0 %v7135_v53  ;;  %1510 = vmatpush1.msra.mxu1 %v7136_v55 }
 0x348   :  { %1440 = vmatprep.subr.mxu0 %v7137_v57  ;;  %1511 = vmatprep.subr.mxu1 %v7138_v61  ;;  %v7153_v57 = vld [vmem:[#allocation45_spill] sm:$0xff] }
 0x349   :  { %1441 = vmatpush1.msra.mxu0 %v7139_v8  ;;  %1512 = vmatpush1.msra.mxu1 %v7140_v9  ;;  %v7150_v9 = vld [vmem:[#allocation15_spill] sm:$0xff] }
 0x34a   :  { %1442 = vmatprep.subr.mxu0 %v7141_v45  ;;  %1513 = vmatprep.subr.mxu1 %v7142_v5  ;;  %v7151_v45 = vld [vmem:[#allocation16_spill] sm:$0xff] }
 0x34b   :  { %1443 = vmatpush1.msra.mxu0 %v7143_v18  ;;  %1514 = vmatpush1.msra.mxu1 %v7144_v3  ;;  %v7152_v18 = vld [vmem:[#allocation43_spill] sm:$0xff] }
 0x34c   :  { %1444 = vmatprep.subr.mxu0 %v7145_v6  ;;  %1515 = vmatprep.subr.mxu1 %v7146_v2 }
 0x34d   :  { %1445 = vmatpush1.msra.mxu0 %v7147_v36  ;;  %1478 = vmatprep.mubr.f32.mxu0 %v7148_v34  ;;  %v7154_v36 = vld [vmem:[#allocation44_spill] sm:$0xff] }
 0x34e   :  { %1516 = vmatpush1.msra.mxu1 %v7149_v56  ;;  %1549 = vmatprep.mubr.f32.mxu1 %v7148_v34  ;;  %v7155_v34 = vld [vmem:[#allocation46_spill] sm:$0xff] }
 0x34f   :  { %1647 = vmatprep.subr.mxu0 %v7150_v9  ;;  %1718 = vmatprep.subr.mxu1 %v7151_v45 }
 0x3ee   :  { %v1247_v5 = vpop.f32.mrf.mxu0  ;;  %v1318_v3 = vpop.f32.mrf.mxu1 }
 0x3ef   :  { %v1323_v8 = vadd.f32 %v1247_v5, %v7152_v18  ;;  %v1325_v55 = vadd.f32 %v1318_v3, %v7154_v36  ;;  %v7166_v36 = vld [vmem:[#allocation26_spill] sm:$0xff] }
 0x3f0   :  { %v1249_v61 = vpop.f32.mrf.mxu0  ;;  %v1320_v56 = vpop.f32.mrf.mxu1 }
 0x3f1   :  { %v1327_v6 = vmul.f32 0.5, %v1323_v8  ;;  %v1324_v2 = vadd.f32 %v1249_v61, %v7153_v57  ;;  %v1326_v52 = vadd.f32 %v1320_v56, %v7155_v34  ;;  %v7167_v34 = vld [vmem:[#allocation27_spill] sm:$0xff] }
 0x3f3   :  { %4402 = vtanh.f32 %v1327_v6  ;;  %v1331_v53 = vmul.f32 0.5, %v1324_v2  ;;  %v1336_v9 = vmul.f32 0.5, %v1326_v52  ;;  %v7164_v6 = vld [vmem:[#allocation24_spill] sm:$0xff]  ;;  %v7165_v2 = vld [vmem:[#allocation25_spill] sm:$0xff] }
 0x3f5   :  { %4404 = vtanh.f32 %v1331_v53 }
 0x3f6   :  { %4406 = vtanh.f32 %v1325_v55 }
 0x3f7   :  { %4408 = vtanh.f32 %v1336_v9  ;;  %v7162_v9 = vld [vmem:[#allocation22_spill] sm:$0xff] }
 0x400   :  { %v4403_v51 = vpop.eup %4402 }
 0x401   :  { %v1329_v45 = vmul.f32 0.5, %v4403_v51  ;;  %v7161_v51 = vld [vmem:[#allocation21_spill] sm:$0xff] }
 0x402   :  { %v4405_v58 = vpop.eup %4404 }
 0x403   :  { %v1330_v0 = vadd.f32 0.5, %v1329_v45  ;;  %v1333_v5 = vmul.f32 0.5, %v4405_v58  ;;  %v4407_v18 = vpop.eup %4406  ;;  %v7160_v58 = vld [vmem:[#allocation20_spill] sm:$0xff]  ;;  %v7163_v45 = vld [vmem:[#allocation23_spill] sm:$0xff] }
 0x404   :  { %v4409_v53 = vpop.eup %4408 }
 0x405   :  { %v1334_v8 = vadd.f32 0.5, %v1333_v5  ;;  %v1341_v7 = vmul.f32 %v4407_v18, %v1330_v0  ;;  %v1338_v55 = vmul.f32 0.5, %v4409_v53  ;;  %v7159_v0 = vld [vmem:[#allocation19_spill] sm:$0xff]  ;;  %v7168_v5 = vld [vmem:[#allocation28_spill] sm:$0xff]  ;;  %v7169_v18 = vld [vmem:[#allocation29_spill] sm:$0xff] }
 0x406   :  { %v7172_v53 = vld [vmem:[#allocation32_spill] sm:$0xff] }
 0x407   :  { %v1340_v57 = vmul.f32 %v1334_v8, %v5501_v60  ;;  %v1339_v3 = vadd.f32 0.5, %v1338_v55  ;;  %v7157_v60 = vld [vmem:[#allocation17_spill] sm:$0xff]  ;;  %v7170_v8 = vld [vmem:[#allocation30_spill] sm:$0xff] }
 0x408   :  { %v7173_v55 = vld [vmem:[#allocation33_spill] sm:$0xff] }
 0x409   :  { %v5579_v61 = vadd.f32 %v1341_v7, %v1340_v57  ;;  %v7158_v7 = vld [vmem:[#allocation18_spill] sm:$0xff]  ;;  %v7171_v57 = vld [vmem:[#allocation31_spill] sm:$0xff] }
 0x40b   :  { %4410 = vtanh.f32 %v5579_v61 }
 0x418   :  { %v4411_v56 = vpop.eup %4410 }
 0x419   :  { %v5582_v52 = vmul.f32 %v4411_v56, %v1339_v3  ;;  %v7174_v3 = vld [vmem:[#allocation34_spill] sm:$0xff]  ;;  %v7175_v56 = vmov 0.0  }
 0x41b   :  { %7156 = vst [vmem:[#allocation38_spill] sm:$0xff] %v5582_v52  ;;  %1479 = vmatmul.mubr.f32.vlgmr.msra.gmra.mxu0 %v5582_v52  ;;  %1550 = vmatmul.mubr.f32.vlgmr.msra.gmra.mxu1 %v5582_v52  ;;  %v7176_v52 = vld [vmem:[#allocation37_spill] sm:$0xff] }
 0x41c   :  { %1648 = vmatpush1.msra.mxu0 %v5308_v1  ;;  %1719 = vmatpush1.msra.mxu1 %v5310_v63 }
 0x41d   :  { %1649 = vmatprep.subr.mxu0 %v5314_v59  ;;  %1720 = vmatprep.subr.mxu1 %v5316_v62 }
 0x41e   :  { %1650 = vmatpush1.msra.mxu0 %v5320_v54  ;;  %1721 = vmatpush1.msra.mxu1 %v5322_v27 }
 0x41f   :  { %1651 = vmatprep.subr.mxu0 %v5326_v11  ;;  %1722 = vmatprep.subr.mxu1 %v5328_v4 }
 0x420   :  { %1652 = vmatpush1.msra.mxu0 %v5332_v10  ;;  %1723 = vmatpush1.msra.mxu1 %v5334_v12 }
 0x421   :  { %1653 = vmatprep.subr.mxu0 %v5338_v13  ;;  %1724 = vmatprep.subr.mxu1 %v5340_v14 }
 0x422   :  { %1654 = vmatpush1.msra.mxu0 %v5344_v15  ;;  %1725 = vmatpush1.msra.mxu1 %v5346_v16 }
 0x423   :  { %1655 = vmatprep.subr.mxu0 %v5350_v17  ;;  %1726 = vmatprep.subr.mxu1 %v5352_v19 }
 0x424   :  { %1656 = vmatpush1.msra.mxu0 %v5356_v20  ;;  %1727 = vmatpush1.msra.mxu1 %v5358_v21 }
 0x425   :  { %1657 = vmatprep.subr.mxu0 %v5362_v22  ;;  %1728 = vmatprep.subr.mxu1 %v5364_v23 }
 0x426   :  { %1658 = vmatpush1.msra.mxu0 %v5368_v24  ;;  %1729 = vmatpush1.msra.mxu1 %v5370_v25 }
 0x427   :  { %1659 = vmatprep.subr.mxu0 %v5374_v26  ;;  %1730 = vmatprep.subr.mxu1 %v5376_v28 }
 0x428   :  { %1660 = vmatpush1.msra.mxu0 %v5380_v29  ;;  %1731 = vmatpush1.msra.mxu1 %v5382_v30 }
 0x429   :  { %1661 = vmatprep.subr.mxu0 %v5386_v31  ;;  %1732 = vmatprep.subr.mxu1 %v5388_v32 }
 0x42a   :  { %1662 = vmatpush1.msra.mxu0 %v5392_v33  ;;  %1733 = vmatpush1.msra.mxu1 %v5394_v35 }
 0x42b   :  { %1663 = vmatprep.subr.mxu0 %v5398_v37  ;;  %1734 = vmatprep.subr.mxu1 %v5400_v38 }
 0x42c   :  { %1664 = vmatpush1.msra.mxu0 %v5402_v39  ;;  %1735 = vmatpush1.msra.mxu1 %v5406_v40 }
 0x42d   :  { %1665 = vmatprep.subr.mxu0 %v5408_v41  ;;  %1736 = vmatprep.subr.mxu1 %v5410_v42 }
 0x42e   :  { %1666 = vmatpush1.msra.mxu0 %v5414_v43  ;;  %1737 = vmatpush1.msra.mxu1 %v5416_v44 }
 0x42f   :  { %1667 = vmatprep.subr.mxu0 %v5418_v46  ;;  %1738 = vmatprep.subr.mxu1 %v5422_v47 }
 0x430   :  { %1668 = vmatpush1.msra.mxu0 %v5424_v48  ;;  %1739 = vmatpush1.msra.mxu1 %v5426_v49 }
 0x431   :  { %1669 = vmatprep.subr.mxu0 %v5430_v50  ;;  %1740 = vmatprep.subr.mxu1 %v7157_v60 }
 0x432   :  { %1670 = vmatpush1.msra.mxu0 %v7158_v7  ;;  %1741 = vmatpush1.msra.mxu1 %v7159_v0 }
 0x433   :  { %1671 = vmatprep.subr.mxu0 %v7160_v58  ;;  %1742 = vmatprep.subr.mxu1 %v7161_v51 }
 0x434   :  { %1672 = vmatpush1.msra.mxu0 %v7162_v9  ;;  %1743 = vmatpush1.msra.mxu1 %v7163_v45 }
 0x435   :  { %1673 = vmatprep.subr.mxu0 %v7164_v6  ;;  %1744 = vmatprep.subr.mxu1 %v7165_v2  ;;  %v7180_v6 = vld [vmem:[#allocation49_spill] sm:$0xff] }
 0x436   :  { %1674 = vmatpush1.msra.mxu0 %v7166_v36  ;;  %1745 = vmatpush1.msra.mxu1 %v7167_v34  ;;  %v7177_v34 = vld [vmem:[#allocation15_spill] sm:$0xff] }
 0x437   :  { %1675 = vmatprep.subr.mxu0 %v7168_v5  ;;  %1746 = vmatprep.subr.mxu1 %v7169_v18  ;;  %v7178_v5 = vld [vmem:[#allocation16_spill] sm:$0xff] }
 0x438   :  { %1676 = vmatpush1.msra.mxu0 %v7170_v8  ;;  %1747 = vmatpush1.msra.mxu1 %v7171_v57  ;;  %v7179_v8 = vld [vmem:[#allocation47_spill] sm:$0xff] }
 0x439   :  { %1677 = vmatprep.subr.mxu0 %v7172_v53  ;;  %1748 = vmatprep.subr.mxu1 %v7173_v55 }
 0x43a   :  { %1678 = vmatpush1.msra.mxu0 %v7174_v3  ;;  %1711 = vmatprep.mubr.f32.mxu0 %v7175_v56  ;;  %v7181_v3 = vld [vmem:[#allocation48_spill] sm:$0xff] }
 0x43b   :  { %1749 = vmatpush1.msra.mxu1 %v7176_v52  ;;  %1782 = vmatprep.mubr.f32.mxu1 %v7175_v56  ;;  %v7182_v56 = vld [vmem:[#allocation50_spill] sm:$0xff] }
 0x43c   :  { %1880 = vmatprep.subr.mxu0 %v7177_v34  ;;  %1951 = vmatprep.subr.mxu1 %v7178_v5 }
 0x4db   :  { %v1480_v18 = vpop.f32.mrf.mxu0  ;;  %v1551_v57 = vpop.f32.mrf.mxu1 }
 0x4dc   :  { %v1556_v36 = vadd.f32 %v1480_v18, %v7179_v8  ;;  %v1558_v45 = vadd.f32 %v1551_v57, %v7181_v3  ;;  %v2110_v3 = vld [vmem:[#allocation4 + $0x1e8] sm:$0xff] }
 0x4dd   :  { %v1482_v2 = vpop.f32.mrf.mxu0  ;;  %v1553_v52 = vpop.f32.mrf.mxu1 }
 0x4de   :  { %v1560_v53 = vmul.f32 0.5, %v1556_v36  ;;  %v1557_v55 = vadd.f32 %v1482_v2, %v7180_v6  ;;  %v1559_v51 = vadd.f32 %v1553_v52, %v7182_v56  ;;  %v2112_v56 = vld [vmem:[#allocation4 + $0x1f8] sm:$0xff] }
 0x4e0   :  { %4412 = vtanh.f32 %v1560_v53  ;;  %v1564_v9 = vmul.f32 0.5, %v1557_v55  ;;  %v1569_v34 = vmul.f32 0.5, %v1559_v51 }
 0x4e2   :  { %4414 = vtanh.f32 %v1564_v9 }
 0x4e3   :  { %4416 = vtanh.f32 %v1558_v45 }
 0x4e4   :  { %4418 = vtanh.f32 %v1569_v34  ;;  %v2109_v34 = vld [vmem:[#allocation4 + $0x1e0] sm:$0xff] }
 0x4ed   :  { %v4413_v58 = vpop.eup %4412 }
 0x4ee   :  { %v1562_v5 = vmul.f32 0.5, %v4413_v58 }
 0x4ef   :  { %v4415_v0 = vpop.eup %4414 }
 0x4f0   :  { %v1563_v7 = vadd.f32 0.5, %v1562_v5  ;;  %v1566_v18 = vmul.f32 0.5, %v4415_v0  ;;  %v4417_v8 = vpop.eup %4416  ;;  %v2111_v5 = vld [vmem:[#allocation4 + $0x1f0] sm:$0xff] }
 0x4f1   :  { %v4419_v9 = vpop.eup %4418 }
 0x4f2   :  { %v1567_v36 = vadd.f32 0.5, %v1566_v18  ;;  %v1574_v60 = vmul.f32 %v4417_v8, %v1563_v7  ;;  %v1571_v45 = vmul.f32 0.5, %v4419_v9  ;;  %v2106_v18 = vld [vmem:[#allocation4 + $0x1c8] sm:$0xff]  ;;  %v2108_v8 = vld [vmem:[#allocation4 + $0x1d8] sm:$0xff] }
 0x4f3   :  { %v2104_v9 = vld [vmem:[#allocation4 + $0x1b8] sm:$0xff] }
 0x4f4   :  { %v1573_v6 = vmul.f32 %v1567_v36, %v5579_v61  ;;  %v1572_v57 = vadd.f32 0.5, %v1571_v45  ;;  %v2105_v36 = vld [vmem:[#allocation4 + $0x1c0] sm:$0xff] }
 0x4f5   :  { %v2101_v45 = vld [vmem:[#allocation4 + $0x1a0] sm:$0xff] }
 0x4f6   :  { %v5657_v2 = vadd.f32 %v1574_v60, %v1573_v6  ;;  %v2107_v6 = vld [vmem:[#allocation4 + $0x1d0] sm:$0xff] }
 0x4f8   :  { %4420 = vtanh.f32 %v5657_v2 }
 0x505   :  { %v4421_v52 = vpop.eup %4420 }
 0x506   :  { %v5660_v51 = vmul.f32 %v4421_v52, %v1572_v57  ;;  %v2103_v57 = vld [vmem:[#allocation4 + $0x1b0] sm:$0xff]  ;;  %v2098_v52 = vld [vmem:[#allocation4 + $0x188] sm:$0xff] }
 0x508   :  { %1712 = vmatmul.mubr.f32.vlgmr.msra.gmra.mxu0 %v5660_v51  ;;  %1783 = vmatmul.mubr.f32.vlgmr.msra.gmra.mxu1 %v5660_v51 }
 0x509   :  { %1881 = vmatpush1.msra.mxu0 %v5308_v1  ;;  %1952 = vmatpush1.msra.mxu1 %v5310_v63  ;;  %v7183_v1 = vld [vmem:[#allocation17_spill] sm:$0xff]  ;;  %v7184_v63 = vld [vmem:[#allocation18_spill] sm:$0xff] }
 0x50a   :  { %1882 = vmatprep.subr.mxu0 %v5314_v59  ;;  %1953 = vmatprep.subr.mxu1 %v5316_v62  ;;  %v7185_v59 = vld [vmem:[#allocation19_spill] sm:$0xff]  ;;  %v7186_v62 = vld [vmem:[#allocation20_spill] sm:$0xff] }
 0x50b   :  { %1883 = vmatpush1.msra.mxu0 %v5320_v54  ;;  %1954 = vmatpush1.msra.mxu1 %v5322_v27  ;;  %v7187_v54 = vld [vmem:[#allocation21_spill] sm:$0xff]  ;;  %v7188_v27 = vld [vmem:[#allocation22_spill] sm:$0xff] }
 0x50c   :  { %1884 = vmatprep.subr.mxu0 %v5326_v11  ;;  %1955 = vmatprep.subr.mxu1 %v5328_v4  ;;  %v7189_v11 = vld [vmem:[#allocation23_spill] sm:$0xff]  ;;  %v7190_v4 = vld [vmem:[#allocation24_spill] sm:$0xff] }
 0x50d   :  { %1885 = vmatpush1.msra.mxu0 %v5332_v10  ;;  %1956 = vmatpush1.msra.mxu1 %v5334_v12  ;;  %v7191_v10 = vld [vmem:[#allocation25_spill] sm:$0xff]  ;;  %v7192_v12 = vld [vmem:[#allocation26_spill] sm:$0xff] }
 0x50e   :  { %1886 = vmatprep.subr.mxu0 %v5338_v13  ;;  %1957 = vmatprep.subr.mxu1 %v5340_v14  ;;  %v7193_v13 = vld [vmem:[#allocation27_spill] sm:$0xff]  ;;  %v7194_v14 = vld [vmem:[#allocation28_spill] sm:$0xff] }
 0x50f   :  { %1887 = vmatpush1.msra.mxu0 %v5344_v15  ;;  %1958 = vmatpush1.msra.mxu1 %v5346_v16  ;;  %v7195_v15 = vld [vmem:[#allocation29_spill] sm:$0xff]  ;;  %v7196_v16 = vld [vmem:[#allocation30_spill] sm:$0xff] }
 0x510   :  { %1888 = vmatprep.subr.mxu0 %v5350_v17  ;;  %1959 = vmatprep.subr.mxu1 %v5352_v19  ;;  %v7197_v17 = vld [vmem:[#allocation31_spill] sm:$0xff]  ;;  %v7198_v19 = vld [vmem:[#allocation32_spill] sm:$0xff] }
 0x511   :  { %1889 = vmatpush1.msra.mxu0 %v5356_v20  ;;  %1960 = vmatpush1.msra.mxu1 %v5358_v21  ;;  %v7199_v20 = vld [vmem:[#allocation33_spill] sm:$0xff]  ;;  %v7200_v21 = vld [vmem:[#allocation34_spill] sm:$0xff] }
 0x512   :  { %1890 = vmatprep.subr.mxu0 %v5362_v22  ;;  %1961 = vmatprep.subr.mxu1 %v5364_v23  ;;  %v7201_v22 = vmov 0.0   ;;  %v7202_v23 = vld [vmem:[#allocation37_spill] sm:$0xff] }
 0x513   :  { %1891 = vmatpush1.msra.mxu0 %v5368_v24  ;;  %1962 = vmatpush1.msra.mxu1 %v5370_v25  ;;  %v7203_v25 = vld [vmem:[#allocation51_spill] sm:$0xff] }
 0x514   :  { %1892 = vmatprep.subr.mxu0 %v5374_v26  ;;  %1963 = vmatprep.subr.mxu1 %v5376_v28 }
 0x515   :  { %1893 = vmatpush1.msra.mxu0 %v5380_v29  ;;  %1964 = vmatpush1.msra.mxu1 %v5382_v30 }
 0x516   :  { %1894 = vmatprep.subr.mxu0 %v5386_v31  ;;  %1965 = vmatprep.subr.mxu1 %v5388_v32  ;;  %v7204_v31 = vld [vmem:[#allocation53_spill] sm:$0xff] }
 0x517   :  { %1895 = vmatpush1.msra.mxu0 %v5392_v33  ;;  %1966 = vmatpush1.msra.mxu1 %v5394_v35  ;;  %v7205_v33 = vld [vmem:[#allocation52_spill] sm:$0xff] }
 0x518   :  { %1896 = vmatprep.subr.mxu0 %v5398_v37  ;;  %1967 = vmatprep.subr.mxu1 %v5400_v38 }
 0x519   :  { %1897 = vmatpush1.msra.mxu0 %v5402_v39  ;;  %1968 = vmatpush1.msra.mxu1 %v5406_v40  ;;  %v7206_v39 = vld [vmem:[#allocation54_spill] sm:$0xff] }
 0x51a   :  { %1898 = vmatprep.subr.mxu0 %v5408_v41  ;;  %1969 = vmatprep.subr.mxu1 %v5410_v42 }
 0x51b   :  { %1899 = vmatpush1.msra.mxu0 %v5414_v43  ;;  %1970 = vmatpush1.msra.mxu1 %v5416_v44 }
 0x51c   :  { %1900 = vmatprep.subr.mxu0 %v5418_v46  ;;  %1971 = vmatprep.subr.mxu1 %v5422_v47 }
 0x51d   :  { %1901 = vmatpush1.msra.mxu0 %v5424_v48  ;;  %1972 = vmatpush1.msra.mxu1 %v5426_v49 }
 0x51e   :  { %1902 = vmatprep.subr.mxu0 %v5430_v50  ;;  %1973 = vmatprep.subr.mxu1 %v7183_v1  ;;  %v2100_v1 = vld [vmem:[#allocation4 + $0x198] sm:$0xff] }
 0x51f   :  { %1903 = vmatpush1.msra.mxu0 %v7184_v63  ;;  %1974 = vmatpush1.msra.mxu1 %v7185_v59  ;;  %v2097_v63 = vld [vmem:[#allocation4 + $0x180] sm:$0xff]  ;;  %v2099_v59 = vld [vmem:[#allocation4 + $0x190] sm:$0xff] }
 0x520   :  { %1904 = vmatprep.subr.mxu0 %v7186_v62  ;;  %1975 = vmatprep.subr.mxu1 %v7187_v54  ;;  %v2094_v62 = vld [vmem:[#allocation4 + $0x168] sm:$0xff]  ;;  %v2096_v54 = vld [vmem:[#allocation4 + $0x178] sm:$0xff] }
 0x521   :  { %1905 = vmatpush1.msra.mxu0 %v7188_v27  ;;  %1976 = vmatpush1.msra.mxu1 %v7189_v11  ;;  %v2093_v27 = vld [vmem:[#allocation4 + $0x160] sm:$0xff]  ;;  %v2095_v11 = vld [vmem:[#allocation4 + $0x170] sm:$0xff] }
 0x522   :  { %1906 = vmatprep.subr.mxu0 %v7190_v4  ;;  %1977 = vmatprep.subr.mxu1 %v7191_v10  ;;  %v2090_v4 = vld [vmem:[#allocation4 + $0x148] sm:$0xff]  ;;  %v2092_v10 = vld [vmem:[#allocation4 + $0x158] sm:$0xff] }
 0x523   :  { %1907 = vmatpush1.msra.mxu0 %v7192_v12  ;;  %1978 = vmatpush1.msra.mxu1 %v7193_v13  ;;  %v2089_v12 = vld [vmem:[#allocation4 + $0x140] sm:$0xff]  ;;  %v2091_v13 = vld [vmem:[#allocation4 + $0x150] sm:$0xff] }
 0x524   :  { %1908 = vmatprep.subr.mxu0 %v7194_v14  ;;  %1979 = vmatprep.subr.mxu1 %v7195_v15  ;;  %v2086_v14 = vld [vmem:[#allocation4 + $0x128] sm:$0xff]  ;;  %v2088_v15 = vld [vmem:[#allocation4 + $0x138] sm:$0xff] }
 0x525   :  { %1909 = vmatpush1.msra.mxu0 %v7196_v16  ;;  %1980 = vmatpush1.msra.mxu1 %v7197_v17  ;;  %v2085_v16 = vld [vmem:[#allocation4 + $0x120] sm:$0xff]  ;;  %v2087_v17 = vld [vmem:[#allocation4 + $0x130] sm:$0xff] }
 0x526   :  { %1910 = vmatprep.subr.mxu0 %v7198_v19  ;;  %1981 = vmatprep.subr.mxu1 %v7199_v20  ;;  %v2082_v19 = vld [vmem:[#allocation4 + $0x108] sm:$0xff]  ;;  %v2084_v20 = vld [vmem:[#allocation4 + $0x118] sm:$0xff] }
 0x527   :  { %1911 = vmatpush1.msra.mxu0 %v7200_v21  ;;  %1944 = vmatprep.mubr.f32.mxu0 %v7201_v22  ;;  %v2081_v21 = vld [vmem:[#allocation4 + $0x100] sm:$0xff] }
 0x528   :  { %1982 = vmatpush1.msra.mxu1 %v7202_v23  ;;  %2015 = vmatprep.mubr.f32.mxu1 %v7201_v22  ;;  %v2083_v23 = vld [vmem:[#allocation4 + $0x110] sm:$0xff] }
 0x529   :  { %2113 = vmatprep.subr.mxu0 %v2110_v3  ;;  %2184 = vmatprep.subr.mxu1 %v2112_v56  ;;  %v2050_v3 = vld [vmem:[#allocation4 + $0x8] sm:$0xff]  ;;  %v2052_v56 = vld [vmem:[#allocation4 + $0x18] sm:$0xff] }
 0x5c8   :  { %v1713_v24 = vpop.f32.mrf.mxu0  ;;  %v1784_v28 = vpop.f32.mrf.mxu1 }
 0x5c9   :  { %v1789_v26 = vadd.f32 %v1713_v24, %v7203_v25  ;;  %v1791_v35 = vadd.f32 %v1784_v28, %v7205_v33  ;;  %v2078_v24 = vld [vmem:[#allocation4 + $0xe8] sm:$0xff]  ;;  %v2080_v25 = vld [vmem:[#allocation4 + $0xf8] sm:$0xff]  ;;  %v2079_v28 = vld [vmem:[#allocation4 + $0xf0] sm:$0xff] }
 0x5ca   :  { %v1715_v29 = vpop.f32.mrf.mxu0  ;;  %v1786_v38 = vpop.f32.mrf.mxu1  ;;  %v2070_v33 = vld [vmem:[#allocation4 + $0xa8] sm:$0xff] }
 0x5cb   :  { %v1793_v30 = vmul.f32 0.5, %v1789_v26  ;;  %v1790_v32 = vadd.f32 %v1715_v29, %v7204_v31  ;;  %v1792_v40 = vadd.f32 %v1786_v38, %v7206_v39  ;;  %v2077_v26 = vld [vmem:[#allocation4 + $0xe0] sm:$0xff]  ;;  %v2074_v29 = vld [vmem:[#allocation4 + $0xc8] sm:$0xff]  ;;  %v2071_v38 = vld [vmem:[#allocation4 + $0xb0] sm:$0xff] }
 0x5cc   :  { %v2073_v31 = vld [vmem:[#allocation4 + $0xc0] sm:$0xff]  ;;  %v2066_v39 = vld [vmem:[#allocation4 + $0x88] sm:$0xff] }
 0x5cd   :  { %4422 = vtanh.f32 %v1793_v30  ;;  %v1797_v37 = vmul.f32 0.5, %v1790_v32  ;;  %v1802_v41 = vmul.f32 0.5, %v1792_v40  ;;  %v2076_v30 = vld [vmem:[#allocation4 + $0xd8] sm:$0xff]  ;;  %v2075_v32 = vld [vmem:[#allocation4 + $0xd0] sm:$0xff] }
 0x5ce   :  { %v2068_v40 = vld [vmem:[#allocation4 + $0x98] sm:$0xff] }
 0x5cf   :  { %4424 = vtanh.f32 %v1797_v37  ;;  %v2069_v37 = vld [vmem:[#allocation4 + $0xa0] sm:$0xff] }
 0x5d0   :  { %4426 = vtanh.f32 %v1791_v35  ;;  %v2072_v35 = vld [vmem:[#allocation4 + $0xb8] sm:$0xff] }
 0x5d1   :  { %4428 = vtanh.f32 %v1802_v41  ;;  %v2065_v41 = vld [vmem:[#allocation4 + $0x80] sm:$0xff] }
 0x5da   :  { %v4423_v42 = vpop.eup %4422 }
 0x5db   :  { %v1795_v43 = vmul.f32 0.5, %v4423_v42  ;;  %v2067_v42 = vld [vmem:[#allocation4 + $0x90] sm:$0xff] }
 0x5dc   :  { %v4425_v44 = vpop.eup %4424 }
 0x5dd   :  { %v1796_v46 = vadd.f32 0.5, %v1795_v43  ;;  %v1799_v47 = vmul.f32 0.5, %v4425_v44  ;;  %v4427_v48 = vpop.eup %4426  ;;  %v2062_v43 = vld [vmem:[#allocation4 + $0x68] sm:$0xff]  ;;  %v2064_v44 = vld [vmem:[#allocation4 + $0x78] sm:$0xff] }
 0x5de   :  { %v4429_v7 = vpop.eup %4428 }
 0x5df   :  { %v1800_v49 = vadd.f32 0.5, %v1799_v47  ;;  %v1807_v50 = vmul.f32 %v4427_v48, %v1796_v46  ;;  %v1804_v0 = vmul.f32 0.5, %v4429_v7  ;;  %v2061_v46 = vld [vmem:[#allocation4 + $0x60] sm:$0xff]  ;;  %v2063_v47 = vld [vmem:[#allocation4 + $0x70] sm:$0xff]  ;;  %v2058_v48 = vld [vmem:[#allocation4 + $0x48] sm:$0xff] }
 0x5e0   :  { %v2054_v7 = vld [vmem:[#allocation4 + $0x28] sm:$0xff] }
 0x5e1   :  { %v1806_v61 = vmul.f32 %v1800_v49, %v5657_v2  ;;  %v1805_v58 = vadd.f32 0.5, %v1804_v0  ;;  %v2102_v2 = vld [vmem:[#allocation4 + $0x1a8] sm:$0xff]  ;;  %v2060_v49 = vld [vmem:[#allocation4 + $0x58] sm:$0xff] }
 0x5e2   :  { %v2056_v0 = vld [vmem:[#allocation4 + $0x38] sm:$0xff] }
 0x5e3   :  { %v5733_v60 = vadd.f32 %v1807_v50, %v1806_v61  ;;  %v2057_v50 = vld [vmem:[#allocation4 + $0x40] sm:$0xff]  ;;  %v2059_v61 = vld [vmem:[#allocation4 + $0x50] sm:$0xff] }
 0x5e5   :  { %4430 = vtanh.f32 %v5733_v60 }
 0x5f2   :  { %v4431_v53 = vpop.eup %4430 }
 0x5f3   :  { %v5736_v55 = vmul.f32 %v4431_v53, %v1805_v58  ;;  %v2053_v58 = vld [vmem:[#allocation4 + $0x20] sm:$0xff]  ;;  %v2055_v53 = vld [vmem:[#allocation4 + $0x30] sm:$0xff] }
 0x5f5   :  { %1945 = vmatmul.mubr.f32.vlgmr.msra.gmra.mxu0 %v5736_v55  ;;  %2016 = vmatmul.mubr.f32.vlgmr.msra.gmra.mxu1 %v5736_v55 }
 0x5f6   :  { %2177 = vmatprep.mubr.f32.mxu0 %v7201_v22  ;;  %2248 = vmatprep.mubr.f32.mxu1 %v7201_v22 }
 0x5f7   :  { %2114 = vmatpush1.msra.mxu0 %v2109_v34  ;;  %2185 = vmatpush1.msra.mxu1 %v2111_v5  ;;  %v2049_v34 = vld [vmem:[#allocation4] sm:$0xff]  ;;  %v2051_v5 = vld [vmem:[#allocation4 + $0x10] sm:$0xff] }
 0x5f8   :  { %2115 = vmatprep.subr.mxu0 %v2106_v18  ;;  %2186 = vmatprep.subr.mxu1 %v2108_v8  ;;  %v2347_v18 = vld [vmem:[#allocation6 + $0x1e8] sm:$0xff]  ;;  %v2349_v8 = vld [vmem:[#allocation6 + $0x1f8] sm:$0xff] }
 0x5f9   :  { %2116 = vmatpush1.msra.mxu0 %v2105_v36  ;;  %2187 = vmatpush1.msra.mxu1 %v2107_v6  ;;  %v7207_v6 = vld [vmem:[#allocation55_spill] sm:$0xff] }
 0x5fa   :  { %2117 = vmatprep.subr.mxu0 %v2102_v2  ;;  %2188 = vmatprep.subr.mxu1 %v2104_v9 }
 0x5fb   :  { %2118 = vmatpush1.msra.mxu0 %v2101_v45  ;;  %2189 = vmatpush1.msra.mxu1 %v2103_v57 }
 0x5fc   :  { %2119 = vmatprep.subr.mxu0 %v2098_v52  ;;  %2190 = vmatprep.subr.mxu1 %v2100_v1  ;;  %v7208_v52 = vld [vmem:[#allocation57_spill] sm:$0xff] }
 0x5fd   :  { %2120 = vmatpush1.msra.mxu0 %v2097_v63  ;;  %2191 = vmatpush1.msra.mxu1 %v2099_v59  ;;  %v7209_v63 = vld [vmem:[#allocation56_spill] sm:$0xff] }
 0x5fe   :  { %2121 = vmatprep.subr.mxu0 %v2094_v62  ;;  %2192 = vmatprep.subr.mxu1 %v2096_v54 }
 0x5ff   :  { %2122 = vmatpush1.msra.mxu0 %v2093_v27  ;;  %2193 = vmatpush1.msra.mxu1 %v2095_v11  ;;  %v7210_v27 = vld [vmem:[#allocation58_spill] sm:$0xff] }
 0x600   :  { %2123 = vmatprep.subr.mxu0 %v2090_v4  ;;  %2194 = vmatprep.subr.mxu1 %v2092_v10 }
 0x601   :  { %2124 = vmatpush1.msra.mxu0 %v2089_v12  ;;  %2195 = vmatpush1.msra.mxu1 %v2091_v13 }
 0x602   :  { %2125 = vmatprep.subr.mxu0 %v2086_v14  ;;  %2196 = vmatprep.subr.mxu1 %v2088_v15 }
 0x603   :  { %2126 = vmatpush1.msra.mxu0 %v2085_v16  ;;  %2197 = vmatpush1.msra.mxu1 %v2087_v17 }
 0x604   :  { %2127 = vmatprep.subr.mxu0 %v2082_v19  ;;  %2198 = vmatprep.subr.mxu1 %v2084_v20 }
 0x605   :  { %2128 = vmatpush1.msra.mxu0 %v2081_v21  ;;  %2199 = vmatpush1.msra.mxu1 %v2083_v23 }
 0x606   :  { %2129 = vmatprep.subr.mxu0 %v2078_v24  ;;  %2200 = vmatprep.subr.mxu1 %v2080_v25 }
 0x607   :  { %2130 = vmatpush1.msra.mxu0 %v2077_v26  ;;  %2201 = vmatpush1.msra.mxu1 %v2079_v28 }
 0x608   :  { %2131 = vmatprep.subr.mxu0 %v2074_v29  ;;  %2202 = vmatprep.subr.mxu1 %v2076_v30  ;;  %v2346_v29 = vld [vmem:[#allocation6 + $0x1e0] sm:$0xff]  ;;  %v2348_v30 = vld [vmem:[#allocation6 + $0x1f0] sm:$0xff] }
 0x609   :  { %2132 = vmatpush1.msra.mxu0 %v2073_v31  ;;  %2203 = vmatpush1.msra.mxu1 %v2075_v32  ;;  %v2343_v31 = vld [vmem:[#allocation6 + $0x1c8] sm:$0xff]  ;;  %v2345_v32 = vld [vmem:[#allocation6 + $0x1d8] sm:$0xff] }
 0x60a   :  { %2133 = vmatprep.subr.mxu0 %v2070_v33  ;;  %2204 = vmatprep.subr.mxu1 %v2072_v35  ;;  %v2342_v33 = vld [vmem:[#allocation6 + $0x1c0] sm:$0xff]  ;;  %v2339_v35 = vld [vmem:[#allocation6 + $0x1a8] sm:$0xff] }
 0x60b   :  { %2134 = vmatpush1.msra.mxu0 %v2069_v37  ;;  %2205 = vmatpush1.msra.mxu1 %v2071_v38  ;;  %v2341_v37 = vld [vmem:[#allocation6 + $0x1b8] sm:$0xff]  ;;  %v2338_v38 = vld [vmem:[#allocation6 + $0x1a0] sm:$0xff] }
 0x60c   :  { %2135 = vmatprep.subr.mxu0 %v2066_v39  ;;  %2206 = vmatprep.subr.mxu1 %v2068_v40  ;;  %v2340_v39 = vld [vmem:[#allocation6 + $0x1b0] sm:$0xff]  ;;  %v2335_v40 = vld [vmem:[#allocation6 + $0x188] sm:$0xff] }
 0x60d   :  { %2136 = vmatpush1.msra.mxu0 %v2065_v41  ;;  %2207 = vmatpush1.msra.mxu1 %v2067_v42  ;;  %v2337_v41 = vld [vmem:[#allocation6 + $0x198] sm:$0xff]  ;;  %v2334_v42 = vld [vmem:[#allocation6 + $0x180] sm:$0xff] }
 0x60e   :  { %2137 = vmatprep.subr.mxu0 %v2062_v43  ;;  %2208 = vmatprep.subr.mxu1 %v2064_v44  ;;  %v2336_v43 = vld [vmem:[#allocation6 + $0x190] sm:$0xff]  ;;  %v2331_v44 = vld [vmem:[#allocation6 + $0x168] sm:$0xff] }
 0x60f   :  { %2138 = vmatpush1.msra.mxu0 %v2061_v46  ;;  %2209 = vmatpush1.msra.mxu1 %v2063_v47  ;;  %v2333_v46 = vld [vmem:[#allocation6 + $0x178] sm:$0xff]  ;;  %v2330_v47 = vld [vmem:[#allocation6 + $0x160] sm:$0xff] }
 0x610   :  { %2139 = vmatprep.subr.mxu0 %v2058_v48  ;;  %2210 = vmatprep.subr.mxu1 %v2060_v49  ;;  %v2332_v48 = vld [vmem:[#allocation6 + $0x170] sm:$0xff]  ;;  %v2327_v49 = vld [vmem:[#allocation6 + $0x148] sm:$0xff] }
 0x611   :  { %2140 = vmatpush1.msra.mxu0 %v2057_v50  ;;  %2211 = vmatpush1.msra.mxu1 %v2059_v61  ;;  %v2329_v50 = vld [vmem:[#allocation6 + $0x158] sm:$0xff]  ;;  %v2326_v61 = vld [vmem:[#allocation6 + $0x140] sm:$0xff] }
 0x612   :  { %2141 = vmatprep.subr.mxu0 %v2054_v7  ;;  %2212 = vmatprep.subr.mxu1 %v2056_v0  ;;  %v2328_v7 = vld [vmem:[#allocation6 + $0x150] sm:$0xff]  ;;  %v2323_v0 = vld [vmem:[#allocation6 + $0x128] sm:$0xff] }
 0x613   :  { %2142 = vmatpush1.msra.mxu0 %v2053_v58  ;;  %2213 = vmatpush1.msra.mxu1 %v2055_v53  ;;  %v2325_v58 = vld [vmem:[#allocation6 + $0x138] sm:$0xff]  ;;  %v2322_v53 = vld [vmem:[#allocation6 + $0x120] sm:$0xff] }
 0x614   :  { %2143 = vmatprep.subr.mxu0 %v2050_v3  ;;  %2214 = vmatprep.subr.mxu1 %v2052_v56  ;;  %v2324_v3 = vld [vmem:[#allocation6 + $0x130] sm:$0xff]  ;;  %v2319_v56 = vld [vmem:[#allocation6 + $0x108] sm:$0xff] }
 0x615   :  { %2144 = vmatpush1.msra.mxu0 %v2049_v34  ;;  %2215 = vmatpush1.msra.mxu1 %v2051_v5  ;;  %v2321_v34 = vld [vmem:[#allocation6 + $0x118] sm:$0xff]  ;;  %v2318_v5 = vld [vmem:[#allocation6 + $0x100] sm:$0xff] }
 0x616   :  { %2372 = vmatprep.subr.mxu0 %v2347_v18  ;;  %2485 = vmatprep.subr.mxu1 %v2349_v8  ;;  %v2320_v18 = vld [vmem:[#allocation6 + $0x110] sm:$0xff]  ;;  %v2315_v8 = vld [vmem:[#allocation6 + $0xe8] sm:$0xff] }
 0x6b5   :  { %v1946_v36 = vpop.f32.mrf.mxu0  ;;  %v2017_v9 = vpop.f32.mrf.mxu1 }
 0x6b6   :  { %v2022_v2 = vadd.f32 %v1946_v36, %v7207_v6  ;;  %v2024_v59 = vadd.f32 %v2017_v9, %v7209_v63  ;;  %v2317_v36 = vld [vmem:[#allocation6 + $0xf8] sm:$0xff]  ;;  %v2314_v6 = vld [vmem:[#allocation6 + $0xe0] sm:$0xff]  ;;  %v2311_v9 = vld [vmem:[#allocation6 + $0xc8] sm:$0xff] }
 0x6b7   :  { %v1948_v45 = vpop.f32.mrf.mxu0  ;;  %v2019_v54 = vpop.f32.mrf.mxu1  ;;  %v2309_v63 = vld [vmem:[#allocation6 + $0xb8] sm:$0xff] }
 0x6b8   :  { %v2026_v57 = vmul.f32 0.5, %v2022_v2  ;;  %v2023_v1 = vadd.f32 %v1948_v45, %v7208_v52  ;;  %v2025_v11 = vadd.f32 %v2019_v54, %v7210_v27  ;;  %v2316_v2 = vld [vmem:[#allocation6 + $0xf0] sm:$0xff]  ;;  %v2313_v45 = vld [vmem:[#allocation6 + $0xd8] sm:$0xff]  ;;  %v2303_v54 = vld [vmem:[#allocation6 + $0x88] sm:$0xff] }
 0x6b9   :  { %v2312_v52 = vld [vmem:[#allocation6 + $0xd0] sm:$0xff]  ;;  %v2305_v27 = vld [vmem:[#allocation6 + $0x98] sm:$0xff] }
 0x6ba   :  { %4432 = vtanh.f32 %v2026_v57  ;;  %v2030_v62 = vmul.f32 0.5, %v2023_v1  ;;  %v2035_v4 = vmul.f32 0.5, %v2025_v11  ;;  %v2310_v57 = vld [vmem:[#allocation6 + $0xc0] sm:$0xff]  ;;  %v2307_v1 = vld [vmem:[#allocation6 + $0xa8] sm:$0xff] }
 0x6bb   :  { %v2302_v11 = vld [vmem:[#allocation6 + $0x80] sm:$0xff] }
 0x6bc   :  { %4434 = vtanh.f32 %v2030_v62  ;;  %v2308_v62 = vld [vmem:[#allocation6 + $0xb0] sm:$0xff] }
 0x6bd   :  { %4436 = vtanh.f32 %v2024_v59  ;;  %v2306_v59 = vld [vmem:[#allocation6 + $0xa0] sm:$0xff] }
 0x6be   :  { %4438 = vtanh.f32 %v2035_v4  ;;  %v2304_v4 = vld [vmem:[#allocation6 + $0x90] sm:$0xff] }
 0x6c7   :  { %v4433_v10 = vpop.eup %4432 }
 0x6c8   :  { %v2028_v12 = vmul.f32 0.5, %v4433_v10  ;;  %v2299_v10 = vld [vmem:[#allocation6 + $0x68] sm:$0xff] }
 0x6c9   :  { %v4435_v13 = vpop.eup %4434 }
 0x6ca   :  { %v2029_v14 = vadd.f32 0.5, %v2028_v12  ;;  %v2032_v15 = vmul.f32 0.5, %v4435_v13  ;;  %v4437_v16 = vpop.eup %4436  ;;  %v2301_v12 = vld [vmem:[#allocation6 + $0x78] sm:$0xff]  ;;  %v2298_v13 = vld [vmem:[#allocation6 + $0x60] sm:$0xff] }
 0x6cb   :  { %v4439_v23 = vpop.eup %4438 }
 0x6cc   :  { %v2033_v17 = vadd.f32 0.5, %v2032_v15  ;;  %v2040_v19 = vmul.f32 %v4437_v16, %v2029_v14  ;;  %v2037_v24 = vmul.f32 0.5, %v4439_v23  ;;  %v2300_v14 = vld [vmem:[#allocation6 + $0x70] sm:$0xff]  ;;  %v2295_v15 = vld [vmem:[#allocation6 + $0x48] sm:$0xff]  ;;  %v2297_v16 = vld [vmem:[#allocation6 + $0x58] sm:$0xff] }
 0x6cd   :  { %v2293_v23 = vld [vmem:[#allocation6 + $0x38] sm:$0xff] }
 0x6ce   :  { %v2039_v20 = vmul.f32 %v2033_v17, %v5733_v60  ;;  %v2038_v25 = vadd.f32 0.5, %v2037_v24  ;;  %v2344_v60 = vld [vmem:[#allocation6 + $0x1d0] sm:$0xff]  ;;  %v2294_v17 = vld [vmem:[#allocation6 + $0x40] sm:$0xff] }
 0x6cf   :  { %v2290_v24 = vld [vmem:[#allocation6 + $0x20] sm:$0xff] }
 0x6d0   :  { %v5747_v21 = vadd.f32 %v2040_v19, %v2039_v20  ;;  %v2296_v19 = vld [vmem:[#allocation6 + $0x50] sm:$0xff]  ;;  %v2291_v20 = vld [vmem:[#allocation6 + $0x28] sm:$0xff] }
 0x6d2   :  { %4440 = vtanh.f32 %v5747_v21 }
 0x6df   :  { %v4441_v26 = vpop.eup %4440 }
 0x6e0   :  { %v5750_v28 = vmul.f32 %v4441_v26, %v2038_v25  ;;  %v2292_v25 = vld [vmem:[#allocation6 + $0x30] sm:$0xff]  ;;  %v2287_v26 = vld [vmem:[#allocation6 + $0x8] sm:$0xff] }
 0x6e2   :  { %2178 = vmatmul.mubr.f32.vlgmr.msra.gmra.mxu0 %v5750_v28  ;;  %2249 = vmatmul.mubr.f32.vlgmr.msra.gmra.mxu1 %v5750_v28 }
 0x6e3   :  { %2373 = vmatpush1.msra.mxu0 %v2346_v29  ;;  %2486 = vmatpush1.msra.mxu1 %v2348_v30  ;;  %v2289_v29 = vld [vmem:[#allocation6 + $0x18] sm:$0xff]  ;;  %v2286_v30 = vld [vmem:[#allocation6] sm:$0xff] }
 0x6e4   :  { %2374 = vmatprep.subr.mxu0 %v2343_v31  ;;  %2487 = vmatprep.subr.mxu1 %v2345_v32  ;;  %v2288_v31 = vld [vmem:[#allocation6 + $0x10] sm:$0xff]  ;;  %v7211_v32 = vld [vmem:[#allocation63_spill] sm:$0xff] }
 0x6e5   :  { %2375 = vmatpush1.msra.mxu0 %v2342_v33  ;;  %2488 = vmatpush1.msra.mxu1 %v2344_v60  ;;  %v7212_v33 = vld [vmem:[#allocation14_spill] sm:$0xff]  ;;  %v7213_v60 = vld [vmem:[#allocation36_spill] sm:$0xff] }
 0x6e6   :  { %2376 = vmatprep.subr.mxu0 %v2339_v35  ;;  %2489 = vmatprep.subr.mxu1 %v2341_v37  ;;  %v7214_v35 = vld [vmem:[#allocation38_spill] sm:$0xff]  ;;  %v5786_v37 = vld [vmem:[#allocation8 + $0x1f8] sm:$0xff] }
 0x6e7   :  { %2377 = vmatpush1.msra.mxu0 %v2338_v38  ;;  %2490 = vmatpush1.msra.mxu1 %v2340_v39  ;;  %7216 = vst [vmem:[#allocation41_spill] sm:$0xff] %v5786_v37  ;;  %v5792_v38 = vld [vmem:[#allocation8 + $0x1f0] sm:$0xff]  ;;  %v5798_v39 = vld [vmem:[#allocation8 + $0x1d8] sm:$0xff] }
 0x6e8   :  { %2378 = vmatprep.subr.mxu0 %v2335_v40  ;;  %2491 = vmatprep.subr.mxu1 %v2337_v41  ;;  %v5802_v40 = vld [vmem:[#allocation8 + $0x1c0] sm:$0xff]  ;;  %v5804_v41 = vld [vmem:[#allocation8 + $0x1d0] sm:$0xff] }
 0x6e9   :  { %2379 = vmatpush1.msra.mxu0 %v2334_v42  ;;  %2492 = vmatpush1.msra.mxu1 %v2336_v43  ;;  %v5808_v42 = vld [vmem:[#allocation8 + $0x1a8] sm:$0xff]  ;;  %v5810_v43 = vld [vmem:[#allocation8 + $0x1b8] sm:$0xff] }
 0x6ea   :  { %2380 = vmatprep.subr.mxu0 %v2331_v44  ;;  %2493 = vmatprep.subr.mxu1 %v2333_v46  ;;  %v5814_v44 = vld [vmem:[#allocation8 + $0x1a0] sm:$0xff]  ;;  %v5816_v46 = vld [vmem:[#allocation8 + $0x1b0] sm:$0xff] }
 0x6eb   :  { %2381 = vmatpush1.msra.mxu0 %v2330_v47  ;;  %2494 = vmatpush1.msra.mxu1 %v2332_v48  ;;  %v5820_v47 = vld [vmem:[#allocation8 + $0x188] sm:$0xff]  ;;  %v5822_v48 = vld [vmem:[#allocation8 + $0x198] sm:$0xff] }
 0x6ec   :  { %2382 = vmatprep.subr.mxu0 %v2327_v49  ;;  %2495 = vmatprep.subr.mxu1 %v2329_v50  ;;  %v5826_v49 = vld [vmem:[#allocation8 + $0x180] sm:$0xff]  ;;  %v5828_v50 = vld [vmem:[#allocation8 + $0x190] sm:$0xff] }
 0x6ed   :  { %2383 = vmatpush1.msra.mxu0 %v2326_v61  ;;  %2496 = vmatpush1.msra.mxu1 %v2328_v7  ;;  %v5832_v61 = vld [vmem:[#allocation8 + $0x168] sm:$0xff]  ;;  %v5834_v7 = vld [vmem:[#allocation8 + $0x178] sm:$0xff] }
 0x6ee   :  { %2384 = vmatprep.subr.mxu0 %v2323_v0  ;;  %2497 = vmatprep.subr.mxu1 %v2325_v58  ;;  %v5838_v0 = vld [vmem:[#allocation8 + $0x160] sm:$0xff]  ;;  %v5840_v58 = vld [vmem:[#allocation8 + $0x170] sm:$0xff] }
 0x6ef   :  { %2385 = vmatpush1.msra.mxu0 %v2322_v53  ;;  %2498 = vmatpush1.msra.mxu1 %v2324_v3  ;;  %v5844_v53 = vld [vmem:[#allocation8 + $0x148] sm:$0xff]  ;;  %v5846_v3 = vld [vmem:[#allocation8 + $0x158] sm:$0xff] }
 0x6f0   :  { %2386 = vmatprep.subr.mxu0 %v2319_v56  ;;  %2499 = vmatprep.subr.mxu1 %v2321_v34  ;;  %v5850_v56 = vld [vmem:[#allocation8 + $0x140] sm:$0xff]  ;;  %v5852_v34 = vld [vmem:[#allocation8 + $0x150] sm:$0xff] }
 0x6f1   :  { %2387 = vmatpush1.msra.mxu0 %v2318_v5  ;;  %2500 = vmatpush1.msra.mxu1 %v2320_v18  ;;  %v5854_v5 = vld [vmem:[#allocation8 + $0x128] sm:$0xff]  ;;  %v5858_v18 = vld [vmem:[#allocation8 + $0x138] sm:$0xff] }
 0x6f2   :  { %2388 = vmatprep.subr.mxu0 %v2315_v8  ;;  %2501 = vmatprep.subr.mxu1 %v2317_v36  ;;  %v5860_v8 = vld [vmem:[#allocation8 + $0x120] sm:$0xff]  ;;  %v5862_v36 = vld [vmem:[#allocation8 + $0x130] sm:$0xff] }
 0x6f3   :  { %2389 = vmatpush1.msra.mxu0 %v2314_v6  ;;  %2502 = vmatpush1.msra.mxu1 %v2316_v2  ;;  %v5868_v6 = vld [vmem:[#allocation8 + $0x108] sm:$0xff]  ;;  %v5870_v2 = vld [vmem:[#allocation8 + $0x118] sm:$0xff] }
 0x6f4   :  { %2390 = vmatprep.subr.mxu0 %v2311_v9  ;;  %2503 = vmatprep.subr.mxu1 %v2313_v45  ;;  %v5874_v9 = vld [vmem:[#allocation8 + $0x100] sm:$0xff]  ;;  %v5876_v45 = vld [vmem:[#allocation8 + $0x110] sm:$0xff] }
 0x6f5   :  { %2391 = vmatpush1.msra.mxu0 %v2310_v57  ;;  %2504 = vmatpush1.msra.mxu1 %v2312_v52  ;;  %v5880_v57 = vld [vmem:[#allocation8 + $0xe8] sm:$0xff]  ;;  %v5882_v52 = vld [vmem:[#allocation8 + $0xf8] sm:$0xff] }
 0x6f6   :  { %2392 = vmatprep.subr.mxu0 %v2307_v1  ;;  %2505 = vmatprep.subr.mxu1 %v2309_v63  ;;  %v5886_v1 = vld [vmem:[#allocation8 + $0xe0] sm:$0xff]  ;;  %v5888_v63 = vld [vmem:[#allocation8 + $0xf0] sm:$0xff] }
 0x6f7   :  { %2393 = vmatpush1.msra.mxu0 %v2306_v59  ;;  %2506 = vmatpush1.msra.mxu1 %v2308_v62  ;;  %v5892_v59 = vld [vmem:[#allocation8 + $0xc8] sm:$0xff]  ;;  %v5894_v62 = vld [vmem:[#allocation8 + $0xd8] sm:$0xff] }
 0x6f8   :  { %2394 = vmatprep.subr.mxu0 %v2303_v54  ;;  %2507 = vmatprep.subr.mxu1 %v2305_v27  ;;  %v5898_v54 = vld [vmem:[#allocation8 + $0xc0] sm:$0xff]  ;;  %v5900_v27 = vld [vmem:[#allocation8 + $0xd0] sm:$0xff] }
 0x6f9   :  { %2395 = vmatpush1.msra.mxu0 %v2302_v11  ;;  %2508 = vmatpush1.msra.mxu1 %v2304_v4  ;;  %v5904_v11 = vld [vmem:[#allocation8 + $0xa8] sm:$0xff]  ;;  %v5906_v4 = vld [vmem:[#allocation8 + $0xb8] sm:$0xff] }
 0x6fa   :  { %2396 = vmatprep.subr.mxu0 %v2299_v10  ;;  %2509 = vmatprep.subr.mxu1 %v2301_v12  ;;  %v5910_v10 = vld [vmem:[#allocation8 + $0xa0] sm:$0xff]  ;;  %v5912_v12 = vld [vmem:[#allocation8 + $0xb0] sm:$0xff] }
 0x6fb   :  { %2397 = vmatpush1.msra.mxu0 %v2298_v13  ;;  %2510 = vmatpush1.msra.mxu1 %v2300_v14  ;;  %7217 = vst [vmem:[#allocation40_spill] sm:$0xff] %v5912_v12  ;;  %v5916_v13 = vld [vmem:[#allocation8 + $0x88] sm:$0xff]  ;;  %v5918_v14 = vld [vmem:[#allocation8 + $0x98] sm:$0xff] }
 0x6fc   :  { %2398 = vmatprep.subr.mxu0 %v2295_v15  ;;  %2511 = vmatprep.subr.mxu1 %v2297_v16  ;;  %7218 = vst [vmem:[#allocation42_spill] sm:$0xff] %v5916_v13  ;;  %7219 = vst [vmem:[#allocation43_spill] sm:$0xff] %v5918_v14  ;;  %v5922_v15 = vld [vmem:[#allocation8 + $0x80] sm:$0xff]  ;;  %v5924_v16 = vld [vmem:[#allocation8 + $0x90] sm:$0xff] }
 0x6fd   :  { %2399 = vmatpush1.msra.mxu0 %v2294_v17  ;;  %2512 = vmatpush1.msra.mxu1 %v2296_v19  ;;  %7220 = vst [vmem:[#allocation45_spill] sm:$0xff] %v5922_v15  ;;  %7221 = vst [vmem:[#allocation44_spill] sm:$0xff] %v5924_v16  ;;  %v5928_v17 = vld [vmem:[#allocation8 + $0x68] sm:$0xff]  ;;  %v5930_v19 = vld [vmem:[#allocation8 + $0x78] sm:$0xff] }
 0x6fe   :  { %2400 = vmatprep.subr.mxu0 %v2291_v20  ;;  %2513 = vmatprep.subr.mxu1 %v2293_v23  ;;  %7222 = vst [vmem:[#allocation46_spill] sm:$0xff] %v5928_v17  ;;  %7223 = vst [vmem:[#allocation15_spill] sm:$0xff] %v5930_v19  ;;  %v5934_v20 = vld [vmem:[#allocation8 + $0x60] sm:$0xff]  ;;  %v5936_v23 = vld [vmem:[#allocation8 + $0x70] sm:$0xff] }
 0x6ff   :  { %2401 = vmatpush1.msra.mxu0 %v2290_v24  ;;  %2514 = vmatpush1.msra.mxu1 %v2292_v25  ;;  %7224 = vst [vmem:[#allocation16_spill] sm:$0xff] %v5934_v20  ;;  %7225 = vst [vmem:[#allocation47_spill] sm:$0xff] %v5936_v23  ;;  %v5940_v24 = vld [vmem:[#allocation8 + $0x48] sm:$0xff]  ;;  %v5942_v25 = vld [vmem:[#allocation8 + $0x58] sm:$0xff] }
 0x700   :  { %2402 = vmatprep.subr.mxu0 %v2287_v26  ;;  %2515 = vmatprep.subr.mxu1 %v2289_v29  ;;  %7226 = vst [vmem:[#allocation49_spill] sm:$0xff] %v5940_v24  ;;  %7227 = vst [vmem:[#allocation48_spill] sm:$0xff] %v5942_v25  ;;  %v5946_v26 = vld [vmem:[#allocation8 + $0x40] sm:$0xff]  ;;  %v5948_v29 = vld [vmem:[#allocation8 + $0x50] sm:$0xff] }
 0x701   :  { %2403 = vmatpush1.msra.mxu0 %v2286_v30  ;;  %2436 = vmatprep.mubr.f32.mxu0 %v7201_v22  ;;  %7228 = vst [vmem:[#allocation50_spill] sm:$0xff] %v5946_v26  ;;  %7229 = vst [vmem:[#allocation17_spill] sm:$0xff] %v5948_v29  ;;  %v5952_v30 = vld [vmem:[#allocation8 + $0x28] sm:$0xff] }
 0x702   :  { %2516 = vmatpush1.msra.mxu1 %v2288_v31  ;;  %2549 = vmatprep.mubr.f32.mxu1 %v7201_v22  ;;  %7230 = vst [vmem:[#allocation18_spill] sm:$0xff] %v5952_v30  ;;  %v5954_v31 = vld [vmem:[#allocation8 + $0x38] sm:$0xff] }
 0x703   :  { %2437 = vmatmul.mubr.f32.vlgmr.msra.gmra.mxu0 %v7211_v32  ;;  %2550 = vmatmul.mubr.f32.vlgmr.msra.gmra.mxu1 %v7211_v32  ;;  %7231 = vst [vmem:[#allocation19_spill] sm:$0xff] %v5954_v31  ;;  %v5958_v32 = vld [vmem:[#allocation8 + $0x20] sm:$0xff] }
 0x704   :  { %2442 = vmatprep.mubr.f32.mxu0 %v7201_v22  ;;  %2555 = vmatprep.mubr.f32.mxu1 %v7201_v22  ;;  %7232 = vst [vmem:[#allocation20_spill] sm:$0xff] %v5958_v32 }
 0x705   :  { %2769 = vmatprep.subr.mxu1 %v5786_v37 }
 0x706   :  { %2770 = vmatpush1.msra.mxu1 %v5792_v38 }
 0x707   :  { %2443 = vmatmul.mubr.f32.gmra.mxu0 %v7212_v33  ;;  %2556 = vmatmul.mubr.f32.gmra.mxu1 %v7212_v33  ;;  %v5960_v33 = vld [vmem:[#allocation8 + $0x30] sm:$0xff] }
 0x708   :  { %2448 = vmatprep.mubr.f32.mxu0 %v7201_v22  ;;  %2561 = vmatprep.mubr.f32.mxu1 %v7201_v22  ;;  %7233 = vst [vmem:[#allocation21_spill] sm:$0xff] %v5960_v33 }
 0x709   :  { %2771 = vmatprep.subr.mxu1 %v5798_v39 }
 0x70a   :  { %2772 = vmatpush1.msra.mxu1 %v5804_v41 }
 0x70b   :  { %2449 = vmatmul.mubr.f32.gmra.mxu0 %v7213_v60  ;;  %2562 = vmatmul.mubr.f32.gmra.mxu1 %v7213_v60  ;;  %v5964_v60 = vld [vmem:[#allocation8 + $0x8] sm:$0xff] }
 0x70c   :  { %2454 = vmatprep.mubr.f32.mxu0 %v7201_v22  ;;  %2567 = vmatprep.mubr.f32.mxu1 %v7201_v22  ;;  %7234 = vst [vmem:[#allocation22_spill] sm:$0xff] %v5964_v60 }
 0x70d   :  { %2773 = vmatprep.subr.mxu1 %v5810_v43 }
 0x70e   :  { %2774 = vmatpush1.msra.mxu1 %v5816_v46 }
 0x70f   :  { %2455 = vmatmul.mubr.f32.gmra.mxu0 %v7214_v35  ;;  %2568 = vmatmul.mubr.f32.gmra.mxu1 %v7214_v35  ;;  %v5966_v35 = vld [vmem:[#allocation8 + $0x18] sm:$0xff] }
 0x710   :  { %2460 = vmatprep.mubr.f32.mxu0 %v7201_v22  ;;  %2573 = vmatprep.mubr.f32.mxu1 %v7201_v22  ;;  %7235 = vst [vmem:[#allocation23_spill] sm:$0xff] %v5966_v35 }
 0x711   :  { %2775 = vmatprep.subr.mxu1 %v5822_v48 }
 0x712   :  { %2776 = vmatpush1.msra.mxu1 %v5828_v50 }
 0x713   :  { %2461 = vmatmul.mubr.f32.gmra.mxu0 %v5660_v51  ;;  %2574 = vmatmul.mubr.f32.gmra.mxu1 %v5660_v51  ;;  %v5784_v51 = vld [vmem:[#allocation8 + $0x1e8] sm:$0xff] }
 0x714   :  { %2466 = vmatprep.mubr.f32.mxu0 %v7201_v22  ;;  %2579 = vmatprep.mubr.f32.mxu1 %v7201_v22  ;;  %7215 = vst [vmem:[#allocation39_spill] sm:$0xff] %v5784_v51 }
 0x715   :  { %2698 = vmatprep.subr.mxu0 %v5784_v51  ;;  %2777 = vmatprep.subr.mxu1 %v5834_v7 }
 0x716   :  { %2778 = vmatpush1.msra.mxu1 %v5840_v58 }
 0x717   :  { %2467 = vmatmul.mubr.f32.gmra.mxu0 %v5736_v55  ;;  %2580 = vmatmul.mubr.f32.gmra.mxu1 %v5736_v55  ;;  %v5790_v55 = vld [vmem:[#allocation8 + $0x1e0] sm:$0xff] }
 0x718   :  { %2472 = vmatprep.mubr.f32.mxu0 %v7201_v22  ;;  %2585 = vmatprep.mubr.f32.mxu1 %v7201_v22 }
 0x719   :  { %2699 = vmatpush1.msra.mxu0 %v5790_v55  ;;  %2779 = vmatprep.subr.mxu1 %v5846_v3 }
 0x71a   :  { %2780 = vmatpush1.msra.mxu1 %v5852_v34 }
 0x71b   :  { %2473 = vmatmul.mubr.f32.gmra.mxu0 %v5750_v28  ;;  %2586 = vmatmul.mubr.f32.gmra.mxu1 %v5750_v28  ;;  %v5796_v28 = vld [vmem:[#allocation8 + $0x1c8] sm:$0xff] }
 0x71c   :  { %2478 = vmatprep.mubr.f32.mxu0 %v7201_v22  ;;  %2591 = vmatprep.mubr.f32.mxu1 %v7201_v22 }
 0x71d   :  { %2700 = vmatprep.subr.mxu0 %v5796_v28  ;;  %2781 = vmatprep.subr.mxu1 %v5858_v18 }
 0x71e   :  { %2701 = vmatpush1.msra.mxu0 %v5802_v40  ;;  %2782 = vmatpush1.msra.mxu1 %v5862_v36 }
 0x71f   :  { %2702 = vmatprep.subr.mxu0 %v5808_v42  ;;  %2783 = vmatprep.subr.mxu1 %v5870_v2 }
 0x720   :  { %2703 = vmatpush1.msra.mxu0 %v5814_v44  ;;  %2784 = vmatpush1.msra.mxu1 %v5876_v45 }
 0x721   :  { %2704 = vmatprep.subr.mxu0 %v5820_v47  ;;  %2785 = vmatprep.subr.mxu1 %v5882_v52 }
 0x722   :  { %2705 = vmatpush1.msra.mxu0 %v5826_v49  ;;  %2786 = vmatpush1.msra.mxu1 %v5888_v63 }
 0x723   :  { %2706 = vmatprep.subr.mxu0 %v5832_v61  ;;  %2787 = vmatprep.subr.mxu1 %v5894_v62 }
 0x724   :  { %2707 = vmatpush1.msra.mxu0 %v5838_v0  ;;  %2788 = vmatpush1.msra.mxu1 %v5900_v27 }
 0x725   :  { %2708 = vmatprep.subr.mxu0 %v5844_v53  ;;  %2789 = vmatprep.subr.mxu1 %v5906_v4 }
 0x726   :  { %2709 = vmatpush1.msra.mxu0 %v5850_v56  ;;  %2790 = vmatpush1.msra.mxu1 %v5912_v12 }
 0x727   :  { %2710 = vmatprep.subr.mxu0 %v5854_v5  ;;  %2791 = vmatprep.subr.mxu1 %v5918_v14 }
 0x728   :  { %2711 = vmatpush1.msra.mxu0 %v5860_v8  ;;  %2792 = vmatpush1.msra.mxu1 %v5924_v16 }
 0x729   :  { %2712 = vmatprep.subr.mxu0 %v5868_v6  ;;  %2793 = vmatprep.subr.mxu1 %v5930_v19 }
 0x72a   :  { %2713 = vmatpush1.msra.mxu0 %v5874_v9  ;;  %2794 = vmatpush1.msra.mxu1 %v5936_v23  ;;  %v7240_v23 = vld [vmem:[#allocation60_spill] sm:$0xff] }
 0x72b   :  { %2714 = vmatprep.subr.mxu0 %v5880_v57  ;;  %2795 = vmatprep.subr.mxu1 %v5942_v25 }
 0x72c   :  { %2715 = vmatpush1.msra.mxu0 %v5886_v1  ;;  %2796 = vmatpush1.msra.mxu1 %v5948_v29  ;;  %v5970_v29 = vld [vmem:[#allocation8] sm:$0xff] }
 0x72d   :  { %2716 = vmatprep.subr.mxu0 %v5892_v59  ;;  %2797 = vmatprep.subr.mxu1 %v5954_v31  ;;  %7236 = vst [vmem:[#allocation24_spill] sm:$0xff] %v5970_v29 }
 0x72e   :  { %2717 = vmatpush1.msra.mxu0 %v5898_v54  ;;  %2798 = vmatpush1.msra.mxu1 %v5960_v33 }
 0x72f   :  { %2718 = vmatprep.subr.mxu0 %v5904_v11  ;;  %2799 = vmatprep.subr.mxu1 %v5966_v35 }
 0x730   :  { %2719 = vmatpush1.msra.mxu0 %v5910_v10 }
 0x731   :  { %2720 = vmatprep.subr.mxu0 %v5916_v13 }
 0x732   :  { %2721 = vmatpush1.msra.mxu0 %v5922_v15 }
 0x733   :  { %2722 = vmatprep.subr.mxu0 %v5928_v17 }
 0x734   :  { %2723 = vmatpush1.msra.mxu0 %v5934_v20 }
 0x735   :  { %2724 = vmatprep.subr.mxu0 %v5940_v24  ;;  %v7239_v24 = vld [vmem:[#allocation61_spill] sm:$0xff] }
 0x736   :  { %2725 = vmatpush1.msra.mxu0 %v5946_v26 }
 0x737   :  { %2726 = vmatprep.subr.mxu0 %v5952_v30  ;;  %v5972_v30 = vld [vmem:[#allocation8 + $0x10] sm:$0xff] }
 0x738   :  { %2727 = vmatpush1.msra.mxu0 %v5958_v32  ;;  %7237 = vst [vmem:[#allocation25_spill] sm:$0xff] %v5972_v30  ;;  %2800 = vmatpush1.msra.mxu1 %v5972_v30  ;;  %v7238_v32 = vld [vmem:[#allocation59_spill] sm:$0xff]  ;;  %v7241_v30 = vld [vmem:[#allocation62_spill] sm:$0xff] }
 0x739   :  { %2728 = vmatprep.subr.mxu0 %v5964_v60  ;;  %2937 = vmatprep.subr.mxu1 %v5786_v37 }
 0x73a   :  { %2729 = vmatpush1.msra.mxu0 %v5970_v29 }
 0x73b   :  { %2866 = vmatprep.subr.mxu0 %v5784_v51 }
 0x7a2   :  { %v2179_v33 = vpop.f32.mrf.mxu0  ;;  %v2250_v26 = vpop.f32.mrf.mxu1 }
 0x7a3   :  { %v2255_v31 = vadd.f32 %v2179_v33, %v7238_v32  ;;  %v2257_v20 = vadd.f32 %v2250_v26, %v7240_v23 }
 0x7a4   :  { %v2181_v25 = vpop.f32.mrf.mxu0  ;;  %v2252_v29 = vpop.f32.mrf.mxu1 }
 0x7a5   :  { %v2259_v60 = vmul.f32 0.5, %v2255_v31  ;;  %v2256_v35 = vadd.f32 %v2181_v25, %v7239_v24  ;;  %v2258_v17 = vadd.f32 %v2252_v29, %v7241_v30  ;;  %v7250_v29 = vld [vmem:[#allocation49_spill] sm:$0xff]  ;;  %v7251_v30 = vld [vmem:[#allocation48_spill] sm:$0xff] }
 0x7a7   :  { %4442 = vtanh.f32 %v2259_v60  ;;  %v2263_v19 = vmul.f32 0.5, %v2256_v35  ;;  %v2268_v51 = vmul.f32 0.5, %v2258_v17  ;;  %v7249_v17 = vld [vmem:[#allocation47_spill] sm:$0xff]  ;;  %v7252_v35 = vld [vmem:[#allocation50_spill] sm:$0xff] }
 0x7a9   :  { %4444 = vtanh.f32 %v2263_v19 }
 0x7aa   :  { %4446 = vtanh.f32 %v2257_v20 }
 0x7ab   :  { %4448 = vtanh.f32 %v2268_v51  ;;  %v7243_v51 = vld [vmem:[#allocation43_spill] sm:$0xff] }
 0x7b4   :  { %v4443_v16 = vpop.eup %4442 }
 0x7b5   :  { %v2261_v37 = vmul.f32 0.5, %v4443_v16  ;;  %v7248_v16 = vld [vmem:[#allocation16_spill] sm:$0xff] }
 0x7b6   :  { %v4445_v15 = vpop.eup %4444 }
 0x7b7   :  { %v2262_v14 = vadd.f32 0.5, %v2261_v37  ;;  %v2265_v32 = vmul.f32 0.5, %v4445_v15  ;;  %v4447_v33 = vpop.eup %4446  ;;  %v7244_v37 = vld [vmem:[#allocation45_spill] sm:$0xff]  ;;  %v7247_v15 = vld [vmem:[#allocation15_spill] sm:$0xff] }
 0x7b8   :  { %v4449_v23 = vpop.eup %4448 }
 0x7b9   :  { %v2266_v31 = vadd.f32 0.5, %v2265_v32  ;;  %v2273_v13 = vmul.f32 %v4447_v33, %v2262_v14  ;;  %v2270_v19 = vmul.f32 0.5, %v4449_v23  ;;  %v7246_v14 = vld [vmem:[#allocation46_spill] sm:$0xff]  ;;  %v7253_v32 = vld [vmem:[#allocation17_spill] sm:$0xff] }
 0x7ba   :  { %v7254_v33 = vld [vmem:[#allocation18_spill] sm:$0xff] }
 0x7bb   :  { %v2272_v24 = vmul.f32 %v2266_v31, %v5747_v21  ;;  %v2271_v20 = vadd.f32 0.5, %v2270_v19  ;;  %v7242_v21 = vld [vmem:[#allocation42_spill] sm:$0xff]  ;;  %v7255_v31 = vld [vmem:[#allocation19_spill] sm:$0xff] }
 0x7bc   :  { %v7258_v23 = vld [vmem:[#allocation22_spill] sm:$0xff]  ;;  %v7259_v19 = vld [vmem:[#allocation23_spill] sm:$0xff] }
 0x7bd   :  { %v2274_v25 = vadd.f32 %v2273_v13, %v2272_v24  ;;  %v7245_v13 = vld [vmem:[#allocation44_spill] sm:$0xff] }
 0x7be   :  { %v7256_v24 = vld [vmem:[#allocation20_spill] sm:$0xff] }
 0x7bf   :  { %4450 = vtanh.f32 %v2274_v25  ;;  %v7257_v25 = vld [vmem:[#allocation21_spill] sm:$0xff] }
 0x7cc   :  { %v4451_v26 = vpop.eup %4450 }
 0x7cd   :  { %v2276_v60 = vmul.f32 %v4451_v26, %v2271_v20  ;;  %v7260_v20 = vld [vmem:[#allocation24_spill] sm:$0xff]  ;;  %v7261_v26 = vld [vmem:[#allocation25_spill] sm:$0xff] }
 0x7cf   :  { %2479 = vmatmul.mubr.f32.gmra.mxu0 %v2276_v60  ;;  %2592 = vmatmul.mubr.f32.gmra.mxu1 %v2276_v60  ;;  %v7262_v60 = vld [vmem:[#allocation39_spill] sm:$0xff] }
 0x7d0   :  { %2762 = vmatprep.mubr.f32.mxu0 %v7201_v22  ;;  %2833 = vmatprep.mubr.f32.mxu1 %v7201_v22 }
 0x7d3   :  { %2763 = vmatmul.mubr.f32.vlgmr.msra.gmra.mxu0 %v7201_v22  ;;  %2834 = vmatmul.mubr.f32.vlgmr.msra.gmra.mxu1 %v7201_v22 }
 0x7d4   :  { %2867 = vmatpush1.msra.mxu0 %v5790_v55  ;;  %2938 = vmatpush1.msra.mxu1 %v5792_v38 }
 0x7d5   :  { %2868 = vmatprep.subr.mxu0 %v5796_v28  ;;  %2939 = vmatprep.subr.mxu1 %v5798_v39 }
 0x7d6   :  { %2869 = vmatpush1.msra.mxu0 %v5802_v40  ;;  %2940 = vmatpush1.msra.mxu1 %v5804_v41 }
 0x7d7   :  { %2870 = vmatprep.subr.mxu0 %v5808_v42  ;;  %2941 = vmatprep.subr.mxu1 %v5810_v43 }
 0x7d8   :  { %2871 = vmatpush1.msra.mxu0 %v5814_v44  ;;  %2942 = vmatpush1.msra.mxu1 %v5816_v46 }
 0x7d9   :  { %2872 = vmatprep.subr.mxu0 %v5820_v47  ;;  %2943 = vmatprep.subr.mxu1 %v5822_v48 }
 0x7da   :  { %2873 = vmatpush1.msra.mxu0 %v5826_v49  ;;  %2944 = vmatpush1.msra.mxu1 %v5828_v50 }
 0x7db   :  { %2874 = vmatprep.subr.mxu0 %v5832_v61  ;;  %2945 = vmatprep.subr.mxu1 %v5834_v7 }
 0x7dc   :  { %2875 = vmatpush1.msra.mxu0 %v5838_v0  ;;  %2946 = vmatpush1.msra.mxu1 %v5840_v58 }
 0x7dd   :  { %2876 = vmatprep.subr.mxu0 %v5844_v53  ;;  %2947 = vmatprep.subr.mxu1 %v5846_v3 }
 0x7de   :  { %2877 = vmatpush1.msra.mxu0 %v5850_v56  ;;  %2948 = vmatpush1.msra.mxu1 %v5852_v34 }
 0x7df   :  { %2878 = vmatprep.subr.mxu0 %v5854_v5  ;;  %2949 = vmatprep.subr.mxu1 %v5858_v18 }
 0x7e0   :  { %2879 = vmatpush1.msra.mxu0 %v5860_v8  ;;  %2950 = vmatpush1.msra.mxu1 %v5862_v36 }
 0x7e1   :  { %2880 = vmatprep.subr.mxu0 %v5868_v6  ;;  %2951 = vmatprep.subr.mxu1 %v5870_v2 }
 0x7e2   :  { %2881 = vmatpush1.msra.mxu0 %v5874_v9  ;;  %2952 = vmatpush1.msra.mxu1 %v5876_v45 }
 0x7e3   :  { %2882 = vmatprep.subr.mxu0 %v5880_v57  ;;  %2953 = vmatprep.subr.mxu1 %v5882_v52 }
 0x7e4   :  { %2883 = vmatpush1.msra.mxu0 %v5886_v1  ;;  %2954 = vmatpush1.msra.mxu1 %v5888_v63 }
 0x7e5   :  { %2884 = vmatprep.subr.mxu0 %v5892_v59  ;;  %2955 = vmatprep.subr.mxu1 %v5894_v62 }
 0x7e6   :  { %2885 = vmatpush1.msra.mxu0 %v5898_v54  ;;  %2956 = vmatpush1.msra.mxu1 %v5900_v27 }
 0x7e7   :  { %2886 = vmatprep.subr.mxu0 %v5904_v11  ;;  %2957 = vmatprep.subr.mxu1 %v5906_v4 }
 0x7e8   :  { %2887 = vmatpush1.msra.mxu0 %v5910_v10  ;;  %2958 = vmatpush1.msra.mxu1 %v5912_v12 }
 0x7e9   :  { %2888 = vmatprep.subr.mxu0 %v7242_v21  ;;  %2959 = vmatprep.subr.mxu1 %v7243_v51 }
 0x7ea   :  { %2889 = vmatpush1.msra.mxu0 %v7244_v37  ;;  %2960 = vmatpush1.msra.mxu1 %v7245_v13 }
 0x7eb   :  { %2890 = vmatprep.subr.mxu0 %v7246_v14  ;;  %2961 = vmatprep.subr.mxu1 %v7247_v15 }
 0x7ec   :  { %2891 = vmatpush1.msra.mxu0 %v7248_v16  ;;  %2962 = vmatpush1.msra.mxu1 %v7249_v17 }
 0x7ed   :  { %2892 = vmatprep.subr.mxu0 %v7250_v29  ;;  %2963 = vmatprep.subr.mxu1 %v7251_v30 }
 0x7ee   :  { %2893 = vmatpush1.msra.mxu0 %v7252_v35  ;;  %2964 = vmatpush1.msra.mxu1 %v7253_v32 }
 0x7ef   :  { %2894 = vmatprep.subr.mxu0 %v7254_v33  ;;  %2965 = vmatprep.subr.mxu1 %v7255_v31  ;;  %v7263_v33 = vld [vmem:[#allocation41_spill] sm:$0xff]  ;;  %v2438_v31 = vpop.f32.mrf.mxu0 }
 0x7f0   :  { %2895 = vmatpush1.msra.mxu0 %v7256_v24  ;;  %2966 = vmatpush1.msra.mxu1 %v7257_v25  ;;  %v2551_v24 = vpop.f32.mrf.mxu1 }
 0x7f1   :  { %2896 = vmatprep.subr.mxu0 %v7258_v23  ;;  %2967 = vmatprep.subr.mxu1 %v7259_v19  ;;  %v2440_v32 = vpop.f32.mrf.mxu0 }
 0x7f2   :  { %2897 = vmatpush1.msra.mxu0 %v7260_v20  ;;  %2930 = vmatprep.mubr.f32.mxu0 %v7201_v22  ;;  %v2553_v25 = vpop.f32.mrf.mxu1 }
 0x7f3   :  { %2968 = vmatpush1.msra.mxu1 %v7261_v26  ;;  %3001 = vmatprep.mubr.f32.mxu1 %v7201_v22  ;;  %v6053_v35 = vpop.f32.mrf.mxu0 }
 0x7f4   :  { %3034 = vmatprep.subr.mxu0 %v7262_v60  ;;  %3105 = vmatprep.subr.mxu1 %v7263_v33  ;;  %7264 = vst [vmem:[#allocation26_spill] sm:$0xff] %v6053_v35  ;;  %v6055_v23 = vpop.f32.mrf.mxu1 }
 0x7f5   :  { %7265 = vst [vmem:[#allocation27_spill] sm:$0xff] %v6055_v23  ;;  %v6057_v19 = vpop.f32.mrf.mxu0 }
 0x7f6   :  { %7266 = vst [vmem:[#allocation28_spill] sm:$0xff] %v6057_v19  ;;  %v6059_v20 = vpop.f32.mrf.mxu1 }
 0x7f7   :  { %7267 = vst [vmem:[#allocation29_spill] sm:$0xff] %v6059_v20  ;;  %v6061_v30 = vpop.f32.mrf.mxu0 }
 0x7f8   :  { %7268 = vst [vmem:[#allocation30_spill] sm:$0xff] %v6061_v30  ;;  %v6063_v26 = vpop.f32.mrf.mxu1 }
 0x7f9   :  { %7269 = vst [vmem:[#allocation31_spill] sm:$0xff] %v6063_v26  ;;  %v6065_v22 = vpop.f32.mrf.mxu0 }
 0x7fa   :  { %7270 = vst [vmem:[#allocation32_spill] sm:$0xff] %v6065_v22  ;;  %v6067_v60 = vpop.f32.mrf.mxu1 }
 0x7fb   :  { %7271 = vst [vmem:[#allocation33_spill] sm:$0xff] %v6067_v60  ;;  %v6069_v33 = vpop.f32.mrf.mxu0 }
 0x7fc   :  { %7272 = vst [vmem:[#allocation34_spill] sm:$0xff] %v6069_v33  ;;  %v6071_v29 = vpop.f32.mrf.mxu1 }
 0x7fd   :  { %7273 = vst [vmem:[#allocation37_spill] sm:$0xff] %v6071_v29  ;;  %v6073_v17 = vpop.f32.mrf.mxu0 }
 0x7fe   :  { %7274 = vst [vmem:[#allocation51_spill] sm:$0xff] %v6073_v17  ;;  %v6075_v35 = vpop.f32.mrf.mxu1 }
 0x7ff   :  { %7275 = vst [vmem:[#allocation53_spill] sm:$0xff] %v6075_v35  ;;  %v6077_v23 = vpop.f32.mrf.mxu0 }
 0x800   :  { %7276 = vst [vmem:[#allocation52_spill] sm:$0xff] %v6077_v23  ;;  %v6079_v19 = vpop.f32.mrf.mxu1 }
 0x801   :  { %7277 = vst [vmem:[#allocation54_spill] sm:$0xff] %v6079_v19  ;;  %v6081_v20 = vpop.f32.mrf.mxu0  ;;  %v2350_v19 = vld [vmem:[%s6835_s6] sm:$0xf] }
 0x802   :  { %7278 = vst [vmem:[#allocation55_spill] sm:$0xff] %v6081_v20  ;;  %v6083_v30 = vpop.f32.mrf.mxu1 }
 0x803   :  { %7279 = vst [vmem:[#allocation57_spill] sm:$0xff] %v6083_v30  ;;  %v6085_v26 = vpop.f32.mrf.mxu0  ;;  %v7288_v30 = vld [vmem:[#allocation35_spill] sm:$0xff] }
 0x804   :  { %7280 = vst [vmem:[#allocation56_spill] sm:$0xff] %v6085_v26  ;;  %v6087_v22 = vpop.f32.mrf.mxu1  ;;  %v7289_v26 = vsub.s32 0, %v7288_v30 }
 0x805   :  { %7281 = vst [vmem:[#allocation58_spill] sm:$0xff] %v6087_v22  ;;  %v6089_v60 = vpop.f32.mrf.mxu0 }
 0x806   :  { %7282 = vst [vmem:[#allocation63_spill] sm:$0xff] %v6089_v60  ;;  %v6091_v33 = vpop.f32.mrf.mxu1  ;;  %v6106_v35 = vrot.slane %v2350_v19, %v7289_v26 }
 0x807   :  { %7283 = vst [vmem:[#allocation14_spill] sm:$0xff] %v6091_v33  ;;  %v6093_v29 = vpop.f32.mrf.mxu0 }
 0x808   :  { %7284 = vst [vmem:[#allocation36_spill] sm:$0xff] %v6093_v29  ;;  %v6095_v17 = vpop.f32.mrf.mxu1  ;;  %7290 = vst [vmem:[#allocation60_spill] sm:$0xff] %v6106_v35  ;;  %v7293_v29 = vsub.s32 1, %v7288_v30  ;;  %v2439_v16 = vadd.f32 %v2438_v31, %v6106_v35  ;;  %v7298_v31 = vsub.s32 3, %v7288_v30 }
 0x809   :  { %7285 = vst [vmem:[#allocation38_spill] sm:$0xff] %v6095_v17  ;;  %v6100_v23 = vpop.f32.mrf.mxu0 }
 0x80a   :  { %7286 = vst [vmem:[#allocation59_spill] sm:$0xff] %v6100_v23  ;;  %v6102_v20 = vpop.f32.mrf.mxu1  ;;  %v6114_v33 = vrot.slane %v2350_v19, %v7293_v29  ;;  %v6129_v35 = vrot.slane %v2350_v19, %v7298_v31  ;;  %v7301_v31 = vld [vmem:[#allocation45_spill] sm:$0xff] }
 0x80b   :  { %7287 = vst [vmem:[#allocation61_spill] sm:$0xff] %v6102_v20  ;;  %v7297_v20 = vsub.s32 2, %v7288_v30 }
 0x80c   :  { %7294 = vst [vmem:[#allocation64_spill] sm:$0xff] %v6114_v33  ;;  %v2441_v26 = vadd.f32 %v2440_v32, %v6114_v33 }
 0x80d   :  { %v6123_v14 = vrot.slane %v2350_v19, %v7297_v20  ;;  %v2554_v20 = vadd.f32 %v2553_v25, %v6129_v35 }
 0x80f   :  { %v2552_v29 = vadd.f32 %v2551_v24, %v6123_v14 }
 0x88f   :  { %v6108_v22 = vpop.f32.mrf.mxu0  ;;  %v6110_v60 = vpop.f32.mrf.mxu1 }
 0x890   :  { %7291 = vst [vmem:[#allocation62_spill] sm:$0xff] %v6108_v22  ;;  %7292 = vst [vmem:[#allocation35_spill] sm:$0xff] %v6110_v60 }
 0x891   :  { %v6116_v17 = vpop.f32.mrf.mxu0  ;;  %v6119_v15 = vpop.f32.mrf.mxu1 }
 0x892   :  { %7295 = vst [vmem:[#allocation65_spill] sm:$0xff] %v6116_v17  ;;  %7296 = vst [vmem:[#allocation66_spill] sm:$0xff] %v6119_v15 }
 0x893   :  { %v2764_v23 = vpop.f32.mrf.mxu0  ;;  %v2835_v51 = vpop.f32.mrf.mxu1 }
 0x894   :  { %v2840_v22 = vadd.f32 %v2764_v23, %v2439_v16  ;;  %v2842_v15 = vadd.f32 %v2835_v51, %v2552_v29  ;;  %v7300_v29 = vld [vmem:[#allocation43_spill] sm:$0xff] }
 0x895   :  { %v2766_v13 = vpop.f32.mrf.mxu0  ;;  %v2837_v21 = vpop.f32.mrf.mxu1 }
 0x896   :  { %v2844_v60 = vmul.f32 0.5, %v2840_v22  ;;  %v2841_v37 = vadd.f32 %v2766_v13, %v2441_v26  ;;  %v2843_v32 = vadd.f32 %v2837_v21, %v2554_v20  ;;  %v7302_v20 = vld [vmem:[#allocation44_spill] sm:$0xff] }
 0x898   :  { %4452 = vtanh.f32 %v2844_v60  ;;  %v2848_v17 = vmul.f32 0.5, %v2841_v37  ;;  %v2853_v16 = vmul.f32 0.5, %v2843_v32  ;;  %v7303_v32 = vld [vmem:[#allocation46_spill] sm:$0xff] }
 0x89a   :  { %4454 = vtanh.f32 %v2848_v17 }
 0x89b   :  { %4456 = vtanh.f32 %v2842_v15 }
 0x89c   :  { %4458 = vtanh.f32 %v2853_v16  ;;  %v7304_v16 = vld [vmem:[#allocation15_spill] sm:$0xff] }
 0x8a5   :  { %v4453_v23 = vpop.eup %4452 }
 0x8a6   :  { %v2846_v22 = vmul.f32 0.5, %v4453_v23  ;;  %v7305_v23 = vld [vmem:[#allocation16_spill] sm:$0xff] }
 0x8a7   :  { %v4455_v13 = vpop.eup %4454 }
 0x8a8   :  { %v2847_v26 = vadd.f32 0.5, %v2846_v22  ;;  %v2850_v33 = vmul.f32 0.5, %v4455_v13  ;;  %v4457_v37 = vpop.eup %4456  ;;  %v7306_v22 = vld [vmem:[#allocation47_spill] sm:$0xff]  ;;  %v7307_v13 = vld [vmem:[#allocation49_spill] sm:$0xff] }
 0x8a9   :  { %v4459_v51 = vpop.eup %4458 }
 0x8aa   :  { %v2851_v24 = vadd.f32 0.5, %v2850_v33  ;;  %v2858_v30 = vmul.f32 %v4457_v37, %v2847_v26  ;;  %v2855_v17 = vmul.f32 0.5, %v4459_v51  ;;  %v7299_v33 = vld [vmem:[#allocation42_spill] sm:$0xff]  ;;  %v7308_v26 = vld [vmem:[#allocation48_spill] sm:$0xff]  ;;  %v7310_v37 = vld [vmem:[#allocation17_spill] sm:$0xff] }
 0x8ab   :  { %v7313_v51 = vld [vmem:[#allocation20_spill] sm:$0xff] }
 0x8ac   :  { %v2857_v60 = vmul.f32 0.0, %v2851_v24  ;;  %v2856_v25 = vadd.f32 0.5, %v2855_v17  ;;  %v7309_v24 = vld [vmem:[#allocation50_spill] sm:$0xff]  ;;  %v7314_v17 = vld [vmem:[#allocation21_spill] sm:$0xff] }
 0x8ae   :  { %v6132_v19 = vadd.f32 %v2858_v30, %v2857_v60  ;;  %v7311_v60 = vld [vmem:[#allocation18_spill] sm:$0xff]  ;;  %v7312_v30 = vld [vmem:[#allocation19_spill] sm:$0xff] }
 0x8b0   :  { %4460 = vtanh.f32 %v6132_v19 }
 0x8bd   :  { %v4461_v15 = vpop.eup %4460 }
 0x8be   :  { %v2861_v21 = vmul.f32 %v4461_v15, %v2856_v25  ;;  %v7315_v25 = vld [vmem:[#allocation22_spill] sm:$0xff]  ;;  %v7316_v15 = vld [vmem:[#allocation23_spill] sm:$0xff] }
 0x8c0   :  { %2931 = vmatmul.mubr.f32.vlgmr.msra.gmra.mxu0 %v2861_v21  ;;  %3002 = vmatmul.mubr.f32.vlgmr.msra.gmra.mxu1 %v2861_v21  ;;  %v7317_v21 = vld [vmem:[#allocation24_spill] sm:$0xff] }
 0x8c1   :  { %3035 = vmatpush1.msra.mxu0 %v5790_v55  ;;  %3106 = vmatpush1.msra.mxu1 %v5792_v38 }
 0x8c2   :  { %3036 = vmatprep.subr.mxu0 %v5796_v28  ;;  %3107 = vmatprep.subr.mxu1 %v5798_v39 }
 0x8c3   :  { %3037 = vmatpush1.msra.mxu0 %v5802_v40  ;;  %3108 = vmatpush1.msra.mxu1 %v5804_v41 }
 0x8c4   :  { %3038 = vmatprep.subr.mxu0 %v5808_v42  ;;  %3109 = vmatprep.subr.mxu1 %v5810_v43 }
 0x8c5   :  { %3039 = vmatpush1.msra.mxu0 %v5814_v44  ;;  %3110 = vmatpush1.msra.mxu1 %v5816_v46 }
 0x8c6   :  { %3040 = vmatprep.subr.mxu0 %v5820_v47  ;;  %3111 = vmatprep.subr.mxu1 %v5822_v48 }
 0x8c7   :  { %3041 = vmatpush1.msra.mxu0 %v5826_v49  ;;  %3112 = vmatpush1.msra.mxu1 %v5828_v50 }
 0x8c8   :  { %3042 = vmatprep.subr.mxu0 %v5832_v61  ;;  %3113 = vmatprep.subr.mxu1 %v5834_v7 }
 0x8c9   :  { %3043 = vmatpush1.msra.mxu0 %v5838_v0  ;;  %3114 = vmatpush1.msra.mxu1 %v5840_v58 }
 0x8ca   :  { %3044 = vmatprep.subr.mxu0 %v5844_v53  ;;  %3115 = vmatprep.subr.mxu1 %v5846_v3 }
 0x8cb   :  { %3045 = vmatpush1.msra.mxu0 %v5850_v56  ;;  %3116 = vmatpush1.msra.mxu1 %v5852_v34 }
 0x8cc   :  { %3046 = vmatprep.subr.mxu0 %v5854_v5  ;;  %3117 = vmatprep.subr.mxu1 %v5858_v18 }
 0x8cd   :  { %3047 = vmatpush1.msra.mxu0 %v5860_v8  ;;  %3118 = vmatpush1.msra.mxu1 %v5862_v36 }
 0x8ce   :  { %3048 = vmatprep.subr.mxu0 %v5868_v6  ;;  %3119 = vmatprep.subr.mxu1 %v5870_v2 }
 0x8cf   :  { %3049 = vmatpush1.msra.mxu0 %v5874_v9  ;;  %3120 = vmatpush1.msra.mxu1 %v5876_v45 }
 0x8d0   :  { %3050 = vmatprep.subr.mxu0 %v5880_v57  ;;  %3121 = vmatprep.subr.mxu1 %v5882_v52 }
 0x8d1   :  { %3051 = vmatpush1.msra.mxu0 %v5886_v1  ;;  %3122 = vmatpush1.msra.mxu1 %v5888_v63 }
 0x8d2   :  { %3052 = vmatprep.subr.mxu0 %v5892_v59  ;;  %3123 = vmatprep.subr.mxu1 %v5894_v62 }
 0x8d3   :  { %3053 = vmatpush1.msra.mxu0 %v5898_v54  ;;  %3124 = vmatpush1.msra.mxu1 %v5900_v27 }
 0x8d4   :  { %3054 = vmatprep.subr.mxu0 %v5904_v11  ;;  %3125 = vmatprep.subr.mxu1 %v5906_v4 }
 0x8d5   :  { %3055 = vmatpush1.msra.mxu0 %v5910_v10  ;;  %3126 = vmatpush1.msra.mxu1 %v5912_v12 }
 0x8d6   :  { %3056 = vmatprep.subr.mxu0 %v7299_v33  ;;  %3127 = vmatprep.subr.mxu1 %v7300_v29 }
 0x8d7   :  { %3057 = vmatpush1.msra.mxu0 %v7301_v31  ;;  %3128 = vmatpush1.msra.mxu1 %v7302_v20 }
 0x8d8   :  { %3058 = vmatprep.subr.mxu0 %v7303_v32  ;;  %3129 = vmatprep.subr.mxu1 %v7304_v16  ;;  %v7326_v32 = vld [vmem:[#allocation27_spill] sm:$0xff] }
 0x8d9   :  { %3059 = vmatpush1.msra.mxu0 %v7305_v23  ;;  %3130 = vmatpush1.msra.mxu1 %v7306_v22  ;;  %v7324_v22 = vld [vmem:[#allocation64_spill] sm:$0xff]  ;;  %v2558_v20 = vadd.f32 %v7326_v32, %v6123_v14 }
 0x8da   :  { %3060 = vmatprep.subr.mxu0 %v7307_v13  ;;  %3131 = vmatprep.subr.mxu1 %v7308_v26  ;;  %v7318_v13 = vmov 0.0   ;;  %v7319_v26 = vld [vmem:[#allocation25_spill] sm:$0xff] }
 0x8db   :  { %3061 = vmatpush1.msra.mxu0 %v7309_v24  ;;  %3132 = vmatpush1.msra.mxu1 %v7310_v37  ;;  %v7320_v37 = vld [vmem:[#allocation39_spill] sm:$0xff] }
 0x8dc   :  { %3062 = vmatprep.subr.mxu0 %v7311_v60  ;;  %3133 = vmatprep.subr.mxu1 %v7312_v30  ;;  %v7321_v60 = vld [vmem:[#allocation41_spill] sm:$0xff]  ;;  %v7322_v30 = vld [vmem:[#allocation60_spill] sm:$0xff] }
 0x8dd   :  { %3063 = vmatpush1.msra.mxu0 %v7313_v51  ;;  %3134 = vmatpush1.msra.mxu1 %v7314_v17  ;;  %v7323_v51 = vld [vmem:[#allocation26_spill] sm:$0xff] }
 0x8de   :  { %3064 = vmatprep.subr.mxu0 %v7315_v25  ;;  %3135 = vmatprep.subr.mxu1 %v7316_v15  ;;  %v2445_v24 = vadd.f32 %v7323_v51, %v7322_v30  ;;  %v7325_v25 = vld [vmem:[#allocation28_spill] sm:$0xff]  ;;  %v7327_v51 = vld [vmem:[#allocation29_spill] sm:$0xff] }
 0x8df   :  { %3065 = vmatpush1.msra.mxu0 %v7317_v21  ;;  %3098 = vmatprep.mubr.f32.mxu0 %v7318_v13  ;;  %v2447_v23 = vadd.f32 %v7325_v25, %v7324_v22  ;;  %v2560_v30 = vadd.f32 %v7327_v51, %v6129_v35  ;;  %v7335_v51 = vld [vmem:[#allocation16_spill] sm:$0xff] }
 0x8e0   :  { %3136 = vmatpush1.msra.mxu1 %v7319_v26  ;;  %3169 = vmatprep.mubr.f32.mxu1 %v7318_v13 }
 0x8e1   :  { %3202 = vmatprep.subr.mxu0 %v7320_v37  ;;  %3273 = vmatprep.subr.mxu1 %v7321_v60 }
 0x980   :  { %v2932_v17 = vpop.f32.mrf.mxu0  ;;  %v3003_v16 = vpop.f32.mrf.mxu1 }
 0x981   :  { %v3008_v15 = vadd.f32 %v2932_v17, %v2445_v24  ;;  %v3010_v13 = vadd.f32 %v3003_v16, %v2558_v20 }
 0x982   :  { %v2934_v21 = vpop.f32.mrf.mxu0  ;;  %v3005_v60 = vpop.f32.mrf.mxu1 }
 0x983   :  { %v3012_v26 = vmul.f32 0.5, %v3008_v15  ;;  %v3009_v31 = vadd.f32 %v2934_v21, %v2447_v23  ;;  %v3011_v29 = vadd.f32 %v3005_v60, %v2560_v30  ;;  %v7332_v60 = vld [vmem:[#allocation44_spill] sm:$0xff]  ;;  %v7333_v30 = vld [vmem:[#allocation46_spill] sm:$0xff]  ;;  %v7334_v21 = vld [vmem:[#allocation15_spill] sm:$0xff] }
 0x985   :  { %4462 = vtanh.f32 %v3012_v26  ;;  %v3016_v37 = vmul.f32 0.5, %v3009_v31  ;;  %v3021_v33 = vmul.f32 0.5, %v3011_v29 }
 0x987   :  { %4464 = vtanh.f32 %v3016_v37 }
 0x988   :  { %4466 = vtanh.f32 %v3010_v13 }
 0x989   :  { %4468 = vtanh.f32 %v3021_v33  ;;  %v7330_v33 = vld [vmem:[#allocation43_spill] sm:$0xff] }
 0x992   :  { %v4463_v25 = vpop.eup %4462 }
 0x993   :  { %v3014_v24 = vmul.f32 0.5, %v4463_v25  ;;  %v7336_v25 = vld [vmem:[#allocation47_spill] sm:$0xff] }
 0x994   :  { %v4465_v17 = vpop.eup %4464 }
 0x995   :  { %v3015_v22 = vadd.f32 0.5, %v3014_v24  ;;  %v3018_v12 = vmul.f32 0.5, %v4465_v17  ;;  %v4467_v32 = vpop.eup %4466  ;;  %v7337_v24 = vld [vmem:[#allocation49_spill] sm:$0xff]  ;;  %v7338_v17 = vld [vmem:[#allocation48_spill] sm:$0xff] }
 0x996   :  { %v4469_v16 = vpop.eup %4468 }
 0x997   :  { %v3019_v15 = vadd.f32 0.5, %v3018_v12  ;;  %v3026_v23 = vmul.f32 %v4467_v32, %v3015_v22  ;;  %v3023_v13 = vmul.f32 0.5, %v4469_v16  ;;  %v7328_v12 = vld [vmem:[#allocation40_spill] sm:$0xff]  ;;  %v7331_v22 = vld [vmem:[#allocation45_spill] sm:$0xff]  ;;  %v7339_v32 = vld [vmem:[#allocation50_spill] sm:$0xff] }
 0x998   :  { %v7343_v16 = vld [vmem:[#allocation20_spill] sm:$0xff] }
 0x999   :  { %v3025_v20 = vmul.f32 %v3019_v15, %v6132_v19  ;;  %v3024_v26 = vadd.f32 0.5, %v3023_v13  ;;  %v7329_v19 = vld [vmem:[#allocation42_spill] sm:$0xff]  ;;  %v7340_v15 = vld [vmem:[#allocation17_spill] sm:$0xff] }
 0x99a   :  { %v7344_v13 = vld [vmem:[#allocation21_spill] sm:$0xff] }
 0x99b   :  { %v6210_v31 = vadd.f32 %v3026_v23, %v3025_v20  ;;  %v7341_v23 = vld [vmem:[#allocation18_spill] sm:$0xff]  ;;  %v7342_v20 = vld [vmem:[#allocation19_spill] sm:$0xff] }
 0x99d   :  { %4470 = vtanh.f32 %v6210_v31 }
 0x9aa   :  { %v4471_v37 = vpop.eup %4470 }
 0x9ab   :  { %v3029_v29 = vmul.f32 %v4471_v37, %v3024_v26  ;;  %v7345_v26 = vld [vmem:[#allocation22_spill] sm:$0xff]  ;;  %v7346_v37 = vld [vmem:[#allocation23_spill] sm:$0xff] }
 0x9ad   :  { %3099 = vmatmul.mubr.f32.vlgmr.msra.gmra.mxu0 %v3029_v29  ;;  %3170 = vmatmul.mubr.f32.vlgmr.msra.gmra.mxu1 %v3029_v29  ;;  %v7347_v29 = vld [vmem:[#allocation24_spill] sm:$0xff] }
 0x9ae   :  { %3203 = vmatpush1.msra.mxu0 %v5790_v55  ;;  %3274 = vmatpush1.msra.mxu1 %v5792_v38 }
 0x9af   :  { %3204 = vmatprep.subr.mxu0 %v5796_v28  ;;  %3275 = vmatprep.subr.mxu1 %v5798_v39 }
 0x9b0   :  { %3205 = vmatpush1.msra.mxu0 %v5802_v40  ;;  %3276 = vmatpush1.msra.mxu1 %v5804_v41 }
 0x9b1   :  { %3206 = vmatprep.subr.mxu0 %v5808_v42  ;;  %3277 = vmatprep.subr.mxu1 %v5810_v43 }
 0x9b2   :  { %3207 = vmatpush1.msra.mxu0 %v5814_v44  ;;  %3278 = vmatpush1.msra.mxu1 %v5816_v46 }
 0x9b3   :  { %3208 = vmatprep.subr.mxu0 %v5820_v47  ;;  %3279 = vmatprep.subr.mxu1 %v5822_v48 }
 0x9b4   :  { %3209 = vmatpush1.msra.mxu0 %v5826_v49  ;;  %3280 = vmatpush1.msra.mxu1 %v5828_v50 }
 0x9b5   :  { %3210 = vmatprep.subr.mxu0 %v5832_v61  ;;  %3281 = vmatprep.subr.mxu1 %v5834_v7 }
 0x9b6   :  { %3211 = vmatpush1.msra.mxu0 %v5838_v0  ;;  %3282 = vmatpush1.msra.mxu1 %v5840_v58 }
 0x9b7   :  { %3212 = vmatprep.subr.mxu0 %v5844_v53  ;;  %3283 = vmatprep.subr.mxu1 %v5846_v3 }
 0x9b8   :  { %3213 = vmatpush1.msra.mxu0 %v5850_v56  ;;  %3284 = vmatpush1.msra.mxu1 %v5852_v34 }
 0x9b9   :  { %3214 = vmatprep.subr.mxu0 %v5854_v5  ;;  %3285 = vmatprep.subr.mxu1 %v5858_v18 }
 0x9ba   :  { %3215 = vmatpush1.msra.mxu0 %v5860_v8  ;;  %3286 = vmatpush1.msra.mxu1 %v5862_v36 }
 0x9bb   :  { %3216 = vmatprep.subr.mxu0 %v5868_v6  ;;  %3287 = vmatprep.subr.mxu1 %v5870_v2 }
 0x9bc   :  { %3217 = vmatpush1.msra.mxu0 %v5874_v9  ;;  %3288 = vmatpush1.msra.mxu1 %v5876_v45 }
 0x9bd   :  { %3218 = vmatprep.subr.mxu0 %v5880_v57  ;;  %3289 = vmatprep.subr.mxu1 %v5882_v52 }
 0x9be   :  { %3219 = vmatpush1.msra.mxu0 %v5886_v1  ;;  %3290 = vmatpush1.msra.mxu1 %v5888_v63 }
 0x9bf   :  { %3220 = vmatprep.subr.mxu0 %v5892_v59  ;;  %3291 = vmatprep.subr.mxu1 %v5894_v62 }
 0x9c0   :  { %3221 = vmatpush1.msra.mxu0 %v5898_v54  ;;  %3292 = vmatpush1.msra.mxu1 %v5900_v27 }
 0x9c1   :  { %3222 = vmatprep.subr.mxu0 %v5904_v11  ;;  %3293 = vmatprep.subr.mxu1 %v5906_v4 }
 0x9c2   :  { %3223 = vmatpush1.msra.mxu0 %v5910_v10  ;;  %3294 = vmatpush1.msra.mxu1 %v7328_v12 }
 0x9c3   :  { %3224 = vmatprep.subr.mxu0 %v7329_v19  ;;  %3295 = vmatprep.subr.mxu1 %v7330_v33 }
 0x9c4   :  { %3225 = vmatpush1.msra.mxu0 %v7331_v22  ;;  %3296 = vmatpush1.msra.mxu1 %v7332_v60 }
 0x9c5   :  { %3226 = vmatprep.subr.mxu0 %v7333_v30  ;;  %3297 = vmatprep.subr.mxu1 %v7334_v21  ;;  %v7356_v30 = vld [vmem:[#allocation31_spill] sm:$0xff] }
 0x9c6   :  { %3227 = vmatpush1.msra.mxu0 %v7335_v51  ;;  %3298 = vmatpush1.msra.mxu1 %v7336_v25  ;;  %v7354_v25 = vld [vmem:[#allocation64_spill] sm:$0xff]  ;;  %v2564_v60 = vadd.f32 %v7356_v30, %v6123_v14 }
 0x9c7   :  { %3228 = vmatprep.subr.mxu0 %v7337_v24  ;;  %3299 = vmatprep.subr.mxu1 %v7338_v17  ;;  %v7348_v24 = vmov 0.0   ;;  %v7349_v17 = vld [vmem:[#allocation25_spill] sm:$0xff] }
 0x9c8   :  { %3229 = vmatpush1.msra.mxu0 %v7339_v32  ;;  %3300 = vmatpush1.msra.mxu1 %v7340_v15  ;;  %v7350_v15 = vld [vmem:[#allocation39_spill] sm:$0xff] }
 0x9c9   :  { %3230 = vmatprep.subr.mxu0 %v7341_v23  ;;  %3301 = vmatprep.subr.mxu1 %v7342_v20  ;;  %v7351_v23 = vld [vmem:[#allocation41_spill] sm:$0xff]  ;;  %v7352_v20 = vld [vmem:[#allocation60_spill] sm:$0xff] }
 0x9ca   :  { %3231 = vmatpush1.msra.mxu0 %v7343_v16  ;;  %3302 = vmatpush1.msra.mxu1 %v7344_v13  ;;  %v7353_v16 = vld [vmem:[#allocation30_spill] sm:$0xff] }
 0x9cb   :  { %3232 = vmatprep.subr.mxu0 %v7345_v26  ;;  %3303 = vmatprep.subr.mxu1 %v7346_v37  ;;  %v2451_v32 = vadd.f32 %v7353_v16, %v7352_v20  ;;  %v7355_v26 = vld [vmem:[#allocation32_spill] sm:$0xff]  ;;  %v7357_v16 = vld [vmem:[#allocation33_spill] sm:$0xff] }
 0x9cc   :  { %3233 = vmatpush1.msra.mxu0 %v7347_v29  ;;  %3266 = vmatprep.mubr.f32.mxu0 %v7348_v24  ;;  %v2453_v51 = vadd.f32 %v7355_v26, %v7354_v25  ;;  %v2566_v20 = vadd.f32 %v7357_v16, %v6129_v35 }
 0x9cd   :  { %3304 = vmatpush1.msra.mxu1 %v7349_v17  ;;  %3337 = vmatprep.mubr.f32.mxu1 %v7348_v24 }
 0x9ce   :  { %3370 = vmatprep.subr.mxu0 %v7350_v15  ;;  %3441 = vmatprep.subr.mxu1 %v7351_v23 }
 0xa6d   :  { %v3100_v13 = vpop.f32.mrf.mxu0  ;;  %v3171_v21 = vpop.f32.mrf.mxu1 }
 0xa6e   :  { %v3176_v37 = vadd.f32 %v3100_v13, %v2451_v32  ;;  %v3178_v24 = vadd.f32 %v3171_v21, %v2564_v60 }
 0xa6f   :  { %v3102_v29 = vpop.f32.mrf.mxu0  ;;  %v3173_v23 = vpop.f32.mrf.mxu1 }
 0xa70   :  { %v3180_v17 = vmul.f32 0.5, %v3176_v37  ;;  %v3177_v22 = vadd.f32 %v3102_v29, %v2453_v51  ;;  %v3179_v33 = vadd.f32 %v3173_v23, %v2566_v20 }
 0xa72   :  { %4472 = vtanh.f32 %v3180_v17  ;;  %v3184_v15 = vmul.f32 0.5, %v3177_v22  ;;  %v3189_v19 = vmul.f32 0.5, %v3179_v33 }
 0xa74   :  { %4474 = vtanh.f32 %v3184_v15 }
 0xa75   :  { %4476 = vtanh.f32 %v3178_v24 }
 0xa76   :  { %4478 = vtanh.f32 %v3189_v19 }
 0xa7f   :  { %v4473_v26 = vpop.eup %4472 }
 0xa80   :  { %v3182_v32 = vmul.f32 0.5, %v4473_v26 }
 0xa81   :  { %v4475_v13 = vpop.eup %4474 }
 0xa82   :  { %v3183_v25 = vadd.f32 0.5, %v3182_v32  ;;  %v3186_v12 = vmul.f32 0.5, %v4475_v13  ;;  %v4477_v30 = vpop.eup %4476 }
 0xa83   :  { %v4479_v21 = vpop.eup %4478 }
 0xa84   :  { %v3187_v37 = vadd.f32 0.5, %v3186_v12  ;;  %v3194_v51 = vmul.f32 %v4477_v30, %v3183_v25  ;;  %v3191_v24 = vmul.f32 0.5, %v4479_v21 }
 0xa86   :  { %v3193_v60 = vmul.f32 %v3187_v37, %v6210_v31  ;;  %v3192_v17 = vadd.f32 0.5, %v3191_v24  ;;  %v7387_v31 = vld [vmem:[#allocation53_spill] sm:$0xff] }
 0xa87   :  { %v2572_v12 = vadd.f32 %v7387_v31, %v6129_v35  ;;  %v6487_v31 = vld [vmem:[#allocation8 + $0xa8] sm:$0xff] }
 0xa88   :  { %v6288_v22 = vadd.f32 %v3194_v51, %v3193_v60 }
 0xa8a   :  { %4480 = vtanh.f32 %v6288_v22 }
 0xa97   :  { %v4481_v20 = vpop.eup %4480 }
 0xa98   :  { %v3197_v33 = vmul.f32 %v4481_v20, %v3192_v17 }
 0xa9a   :  { %3267 = vmatmul.mubr.f32.vlgmr.msra.gmra.mxu0 %v3197_v33  ;;  %3338 = vmatmul.mubr.f32.vlgmr.msra.gmra.mxu1 %v3197_v33  ;;  %v6373_v33 = vld [vmem:[#allocation8 + $0x1e0] sm:$0xff] }
 0xa9b   :  { %3371 = vmatpush1.msra.mxu0 %v5790_v55  ;;  %3442 = vmatpush1.msra.mxu1 %v5792_v38  ;;  %v7358_v55 = vld [vmem:[#allocation40_spill] sm:$0xff]  ;;  %v7359_v38 = vld [vmem:[#allocation42_spill] sm:$0xff] }
 0xa9c   :  { %3372 = vmatprep.subr.mxu0 %v5796_v28  ;;  %3443 = vmatprep.subr.mxu1 %v5798_v39  ;;  %v7360_v28 = vld [vmem:[#allocation43_spill] sm:$0xff]  ;;  %v7361_v39 = vld [vmem:[#allocation45_spill] sm:$0xff] }
 0xa9d   :  { %3373 = vmatpush1.msra.mxu0 %v5802_v40  ;;  %3444 = vmatpush1.msra.mxu1 %v5804_v41  ;;  %v7362_v40 = vld [vmem:[#allocation44_spill] sm:$0xff]  ;;  %v7363_v41 = vld [vmem:[#allocation46_spill] sm:$0xff] }
 0xa9e   :  { %3374 = vmatprep.subr.mxu0 %v5808_v42  ;;  %3445 = vmatprep.subr.mxu1 %v5810_v43  ;;  %v7364_v42 = vld [vmem:[#allocation15_spill] sm:$0xff]  ;;  %v7365_v43 = vld [vmem:[#allocation16_spill] sm:$0xff] }
 0xa9f   :  { %3375 = vmatpush1.msra.mxu0 %v5814_v44  ;;  %3446 = vmatpush1.msra.mxu1 %v5816_v46  ;;  %v7366_v44 = vld [vmem:[#allocation47_spill] sm:$0xff]  ;;  %v7367_v46 = vld [vmem:[#allocation49_spill] sm:$0xff] }
 0xaa0   :  { %3376 = vmatprep.subr.mxu0 %v5820_v47  ;;  %3447 = vmatprep.subr.mxu1 %v5822_v48  ;;  %v7368_v47 = vld [vmem:[#allocation48_spill] sm:$0xff]  ;;  %v7369_v48 = vld [vmem:[#allocation50_spill] sm:$0xff] }
 0xaa1   :  { %3377 = vmatpush1.msra.mxu0 %v5826_v49  ;;  %3448 = vmatpush1.msra.mxu1 %v5828_v50  ;;  %v7370_v49 = vld [vmem:[#allocation17_spill] sm:$0xff]  ;;  %v7371_v50 = vld [vmem:[#allocation18_spill] sm:$0xff] }
 0xaa2   :  { %3378 = vmatprep.subr.mxu0 %v5832_v61  ;;  %3449 = vmatprep.subr.mxu1 %v5834_v7  ;;  %v7372_v61 = vld [vmem:[#allocation19_spill] sm:$0xff]  ;;  %v7373_v7 = vld [vmem:[#allocation20_spill] sm:$0xff] }
 0xaa3   :  { %3379 = vmatpush1.msra.mxu0 %v5838_v0  ;;  %3450 = vmatpush1.msra.mxu1 %v5840_v58  ;;  %v7374_v0 = vld [vmem:[#allocation21_spill] sm:$0xff]  ;;  %v7375_v58 = vld [vmem:[#allocation22_spill] sm:$0xff] }
 0xaa4   :  { %3380 = vmatprep.subr.mxu0 %v5844_v53  ;;  %3451 = vmatprep.subr.mxu1 %v5846_v3  ;;  %v7376_v53 = vld [vmem:[#allocation23_spill] sm:$0xff]  ;;  %v7377_v3 = vld [vmem:[#allocation24_spill] sm:$0xff] }
 0xaa5   :  { %3381 = vmatpush1.msra.mxu0 %v5850_v56  ;;  %3452 = vmatpush1.msra.mxu1 %v5852_v34  ;;  %v7378_v56 = vmov 0.0   ;;  %v7379_v34 = vld [vmem:[#allocation25_spill] sm:$0xff] }
 0xaa6   :  { %3382 = vmatprep.subr.mxu0 %v5854_v5  ;;  %3453 = vmatprep.subr.mxu1 %v5858_v18  ;;  %v6355_v5 = vld [vmem:[#allocation8 + $0x1e8] sm:$0xff]  ;;  %v6358_v18 = vld [vmem:[#allocation8 + $0x1f8] sm:$0xff] }
 0xaa7   :  { %3383 = vmatpush1.msra.mxu0 %v5860_v8  ;;  %3454 = vmatpush1.msra.mxu1 %v5862_v36  ;;  %7380 = vst [vmem:[#allocation26_spill] sm:$0xff] %v6355_v5  ;;  %7381 = vst [vmem:[#allocation28_spill] sm:$0xff] %v6358_v18  ;;  %v7382_v8 = vld [vmem:[#allocation60_spill] sm:$0xff]  ;;  %v7383_v36 = vld [vmem:[#allocation34_spill] sm:$0xff] }
 0xaa8   :  { %3384 = vmatprep.subr.mxu0 %v5868_v6  ;;  %3455 = vmatprep.subr.mxu1 %v5870_v2  ;;  %v2457_v6 = vadd.f32 %v7383_v36, %v7382_v8  ;;  %v6442_v36 = vld [vmem:[#allocation8 + $0x138] sm:$0xff] }
 0xaa9   :  { %3385 = vmatpush1.msra.mxu0 %v5874_v9  ;;  %3456 = vmatpush1.msra.mxu1 %v5876_v45  ;;  %v7384_v9 = vld [vmem:[#allocation64_spill] sm:$0xff]  ;;  %v7385_v45 = vld [vmem:[#allocation51_spill] sm:$0xff] }
 0xaaa   :  { %3386 = vmatprep.subr.mxu0 %v5880_v57  ;;  %3457 = vmatprep.subr.mxu1 %v5882_v52  ;;  %v2459_v57 = vadd.f32 %v7385_v45, %v7384_v9  ;;  %v6451_v45 = vld [vmem:[#allocation8 + $0x108] sm:$0xff] }
 0xaab   :  { %3387 = vmatpush1.msra.mxu0 %v5886_v1  ;;  %3458 = vmatpush1.msra.mxu1 %v5888_v63 }
 0xaac   :  { %3388 = vmatprep.subr.mxu0 %v5892_v59  ;;  %3459 = vmatprep.subr.mxu1 %v5894_v62  ;;  %v7386_v59 = vld [vmem:[#allocation37_spill] sm:$0xff] }
 0xaad   :  { %3389 = vmatpush1.msra.mxu0 %v5898_v54  ;;  %3460 = vmatpush1.msra.mxu1 %v5900_v27  ;;  %v2570_v62 = vadd.f32 %v7386_v59, %v6123_v14  ;;  %v6466_v59 = vld [vmem:[#allocation8 + $0xf8] sm:$0xff] }
 0xaae   :  { %3390 = vmatprep.subr.mxu0 %v5904_v11  ;;  %3461 = vmatprep.subr.mxu1 %v5906_v4 }
 0xaaf   :  { %3391 = vmatpush1.msra.mxu0 %v5910_v10  ;;  %3462 = vmatpush1.msra.mxu1 %v7358_v55  ;;  %v6376_v55 = vld [vmem:[#allocation8 + $0x1f0] sm:$0xff] }
 0xab0   :  { %3392 = vmatprep.subr.mxu0 %v7359_v38  ;;  %3463 = vmatprep.subr.mxu1 %v7360_v28  ;;  %v6382_v38 = vld [vmem:[#allocation8 + $0x1d8] sm:$0xff]  ;;  %v6385_v28 = vld [vmem:[#allocation8 + $0x1c0] sm:$0xff] }
 0xab1   :  { %3393 = vmatpush1.msra.mxu0 %v7361_v39  ;;  %3464 = vmatpush1.msra.mxu1 %v7362_v40  ;;  %v6388_v39 = vld [vmem:[#allocation8 + $0x1d0] sm:$0xff]  ;;  %v6391_v40 = vld [vmem:[#allocation8 + $0x1a8] sm:$0xff] }
 0xab2   :  { %3394 = vmatprep.subr.mxu0 %v7363_v41  ;;  %3465 = vmatprep.subr.mxu1 %v7364_v42  ;;  %v6394_v41 = vld [vmem:[#allocation8 + $0x1b8] sm:$0xff]  ;;  %v6397_v42 = vld [vmem:[#allocation8 + $0x1a0] sm:$0xff] }
 0xab3   :  { %3395 = vmatpush1.msra.mxu0 %v7365_v43  ;;  %3466 = vmatpush1.msra.mxu1 %v7366_v44  ;;  %v6400_v43 = vld [vmem:[#allocation8 + $0x1b0] sm:$0xff]  ;;  %v6403_v44 = vld [vmem:[#allocation8 + $0x188] sm:$0xff] }
 0xab4   :  { %3396 = vmatprep.subr.mxu0 %v7367_v46  ;;  %3467 = vmatprep.subr.mxu1 %v7368_v47  ;;  %v6406_v46 = vld [vmem:[#allocation8 + $0x198] sm:$0xff]  ;;  %v6409_v47 = vld [vmem:[#allocation8 + $0x180] sm:$0xff] }
 0xab5   :  { %3397 = vmatpush1.msra.mxu0 %v7369_v48  ;;  %3468 = vmatpush1.msra.mxu1 %v7370_v49  ;;  %v6412_v48 = vld [vmem:[#allocation8 + $0x190] sm:$0xff]  ;;  %v6415_v49 = vld [vmem:[#allocation8 + $0x168] sm:$0xff] }
 0xab6   :  { %3398 = vmatprep.subr.mxu0 %v7371_v50  ;;  %3469 = vmatprep.subr.mxu1 %v7372_v61  ;;  %v6418_v50 = vld [vmem:[#allocation8 + $0x178] sm:$0xff]  ;;  %v6421_v61 = vld [vmem:[#allocation8 + $0x160] sm:$0xff] }
 0xab7   :  { %3399 = vmatpush1.msra.mxu0 %v7373_v7  ;;  %3470 = vmatpush1.msra.mxu1 %v7374_v0  ;;  %v6424_v7 = vld [vmem:[#allocation8 + $0x170] sm:$0xff]  ;;  %v6427_v0 = vld [vmem:[#allocation8 + $0x148] sm:$0xff] }
 0xab8   :  { %3400 = vmatprep.subr.mxu0 %v7375_v58  ;;  %3471 = vmatprep.subr.mxu1 %v7376_v53  ;;  %v6430_v58 = vld [vmem:[#allocation8 + $0x158] sm:$0xff]  ;;  %v6433_v53 = vld [vmem:[#allocation8 + $0x140] sm:$0xff] }
 0xab9   :  { %3401 = vmatpush1.msra.mxu0 %v7377_v3  ;;  %3434 = vmatprep.mubr.f32.mxu0 %v7378_v56  ;;  %v6436_v3 = vld [vmem:[#allocation8 + $0x150] sm:$0xff] }
 0xaba   :  { %3472 = vmatpush1.msra.mxu1 %v7379_v34  ;;  %3505 = vmatprep.mubr.f32.mxu1 %v7378_v56  ;;  %v6439_v34 = vld [vmem:[#allocation8 + $0x128] sm:$0xff] }
 0xabb   :  { %3538 = vmatprep.subr.mxu0 %v6355_v5  ;;  %3609 = vmatprep.subr.mxu1 %v6358_v18 }
 0xb5a   :  { %v3268_v2 = vpop.f32.mrf.mxu0  ;;  %v3339_v1 = vpop.f32.mrf.mxu1 }
 0xb5b   :  { %v3344_v52 = vadd.f32 %v3268_v2, %v2457_v6  ;;  %v3346_v11 = vadd.f32 %v3339_v1, %v2570_v62  ;;  %v6445_v6 = vld [vmem:[#allocation8 + $0x120] sm:$0xff]  ;;  %v6448_v2 = vld [vmem:[#allocation8 + $0x130] sm:$0xff] }
 0xb5c   :  { %v3270_v63 = vpop.f32.mrf.mxu0  ;;  %v3341_v10 = vpop.f32.mrf.mxu1  ;;  %v6460_v1 = vld [vmem:[#allocation8 + $0x110] sm:$0xff]  ;;  %v6469_v62 = vld [vmem:[#allocation8 + $0xe0] sm:$0xff] }
 0xb5d   :  { %v3348_v54 = vmul.f32 0.5, %v3344_v52  ;;  %v3345_v27 = vadd.f32 %v3270_v63, %v2459_v57  ;;  %v3347_v19 = vadd.f32 %v3341_v10, %v2572_v12  ;;  %v6454_v57 = vld [vmem:[#allocation8 + $0x118] sm:$0xff]  ;;  %v6457_v52 = vld [vmem:[#allocation8 + $0x100] sm:$0xff]  ;;  %v6463_v63 = vld [vmem:[#allocation8 + $0xe8] sm:$0xff] }
 0xb5e   :  { %v6484_v10 = vld [vmem:[#allocation8 + $0xd0] sm:$0xff]  ;;  %v6490_v12 = vld [vmem:[#allocation8 + $0xb8] sm:$0xff] }
 0xb5f   :  { %4482 = vtanh.f32 %v3348_v54  ;;  %v3352_v4 = vmul.f32 0.5, %v3345_v27  ;;  %v3357_v25 = vmul.f32 0.5, %v3347_v19  ;;  %v6472_v54 = vld [vmem:[#allocation8 + $0xf0] sm:$0xff]  ;;  %v6475_v27 = vld [vmem:[#allocation8 + $0xc8] sm:$0xff]  ;;  %v6493_v19 = vld [vmem:[#allocation8 + $0xa0] sm:$0xff] }
 0xb61   :  { %4484 = vtanh.f32 %v3352_v4  ;;  %v6481_v4 = vld [vmem:[#allocation8 + $0xc0] sm:$0xff] }
 0xb62   :  { %4486 = vtanh.f32 %v3346_v11  ;;  %v6478_v11 = vld [vmem:[#allocation8 + $0xd8] sm:$0xff] }
 0xb63   :  { %4488 = vtanh.f32 %v3357_v25  ;;  %v6496_v25 = vld [vmem:[#allocation8 + $0xb0] sm:$0xff] }
 0xb64   :  { %7388 = vst [vmem:[#allocation27_spill] sm:$0xff] %v6496_v25 }
 0xb6c   :  { %v4483_v29 = vpop.eup %4482 }
 0xb6d   :  { %v3350_v15 = vmul.f32 0.5, %v4483_v29  ;;  %v6499_v29 = vld [vmem:[#allocation8 + $0x88] sm:$0xff] }
 0xb6e   :  { %v4485_v23 = vpop.eup %4484  ;;  %7389 = vst [vmem:[#allocation29_spill] sm:$0xff] %v6499_v29 }
 0xb6f   :  { %v3351_v16 = vadd.f32 0.5, %v3350_v15  ;;  %v3354_v26 = vmul.f32 0.5, %v4485_v23  ;;  %v4487_v32 = vpop.eup %4486  ;;  %v6502_v15 = vld [vmem:[#allocation8 + $0x98] sm:$0xff]  ;;  %v6505_v23 = vld [vmem:[#allocation8 + $0x80] sm:$0xff] }
 0xb70   :  { %v4489_v60 = vpop.eup %4488  ;;  %7390 = vst [vmem:[#allocation39_spill] sm:$0xff] %v6502_v15  ;;  %7391 = vst [vmem:[#allocation41_spill] sm:$0xff] %v6505_v23 }
 0xb71   :  { %v3355_v13 = vadd.f32 0.5, %v3354_v26  ;;  %v3362_v30 = vmul.f32 %v4487_v32, %v3351_v16  ;;  %v3359_v21 = vmul.f32 0.5, %v4489_v60  ;;  %v6508_v16 = vld [vmem:[#allocation8 + $0x90] sm:$0xff]  ;;  %v6511_v26 = vld [vmem:[#allocation8 + $0x68] sm:$0xff]  ;;  %v6514_v32 = vld [vmem:[#allocation8 + $0x78] sm:$0xff] }
 0xb72   :  { %7392 = vst [vmem:[#allocation30_spill] sm:$0xff] %v6508_v16  ;;  %7393 = vst [vmem:[#allocation32_spill] sm:$0xff] %v6511_v26  ;;  %v6526_v60 = vld [vmem:[#allocation8 + $0x58] sm:$0xff] }
 0xb73   :  { %v3361_v37 = vmul.f32 %v3355_v13, %v6288_v22  ;;  %v3360_v24 = vadd.f32 0.5, %v3359_v21  ;;  %v6379_v22 = vld [vmem:[#allocation8 + $0x1c8] sm:$0xff]  ;;  %7394 = vst [vmem:[#allocation31_spill] sm:$0xff] %v6514_v32  ;;  %v6517_v13 = vld [vmem:[#allocation8 + $0x60] sm:$0xff]  ;;  %7398 = vst [vmem:[#allocation43_spill] sm:$0xff] %v6526_v60 }
 0xb74   :  { %7395 = vst [vmem:[#allocation33_spill] sm:$0xff] %v6517_v13  ;;  %v6529_v21 = vld [vmem:[#allocation8 + $0x40] sm:$0xff] }
 0xb75   :  { %v6370_v51 = vadd.f32 %v3362_v30, %v3361_v37  ;;  %v6520_v30 = vld [vmem:[#allocation8 + $0x70] sm:$0xff]  ;;  %v6523_v37 = vld [vmem:[#allocation8 + $0x48] sm:$0xff]  ;;  %7399 = vst [vmem:[#allocation45_spill] sm:$0xff] %v6529_v21 }
 0xb76   :  { %7396 = vst [vmem:[#allocation40_spill] sm:$0xff] %v6520_v30  ;;  %7397 = vst [vmem:[#allocation42_spill] sm:$0xff] %v6523_v37 }
 0xb77   :  { %4490 = vtanh.f32 %v6370_v51 }
 0xb84   :  { %v4491_v17 = vpop.eup %4490 }
 0xb85   :  { %v3365_v20 = vmul.f32 %v4491_v17, %v3360_v24  ;;  %v6532_v24 = vld [vmem:[#allocation8 + $0x50] sm:$0xff]  ;;  %v6535_v17 = vld [vmem:[#allocation8 + $0x28] sm:$0xff] }
 0xb86   :  { %7400 = vst [vmem:[#allocation44_spill] sm:$0xff] %v6532_v24  ;;  %7401 = vst [vmem:[#allocation46_spill] sm:$0xff] %v6535_v17 }
 0xb87   :  { %3435 = vmatmul.mubr.f32.vlgmr.msra.gmra.mxu0 %v3365_v20  ;;  %3506 = vmatmul.mubr.f32.vlgmr.msra.gmra.mxu1 %v3365_v20  ;;  %v6538_v20 = vld [vmem:[#allocation8 + $0x38] sm:$0xff] }
 0xb88   :  { %3539 = vmatpush1.msra.mxu0 %v6373_v33  ;;  %3610 = vmatpush1.msra.mxu1 %v6376_v55  ;;  %7402 = vst [vmem:[#allocation15_spill] sm:$0xff] %v6538_v20 }
 0xb89   :  { %3540 = vmatprep.subr.mxu0 %v6379_v22  ;;  %3611 = vmatprep.subr.mxu1 %v6382_v38 }
 0xb8a   :  { %3541 = vmatpush1.msra.mxu0 %v6385_v28  ;;  %3612 = vmatpush1.msra.mxu1 %v6388_v39 }
 0xb8b   :  { %3542 = vmatprep.subr.mxu0 %v6391_v40  ;;  %3613 = vmatprep.subr.mxu1 %v6394_v41 }
 0xb8c   :  { %3543 = vmatpush1.msra.mxu0 %v6397_v42  ;;  %3614 = vmatpush1.msra.mxu1 %v6400_v43 }
 0xb8d   :  { %3544 = vmatprep.subr.mxu0 %v6403_v44  ;;  %3615 = vmatprep.subr.mxu1 %v6406_v46 }
 0xb8e   :  { %3545 = vmatpush1.msra.mxu0 %v6409_v47  ;;  %3616 = vmatpush1.msra.mxu1 %v6412_v48 }
 0xb8f   :  { %3546 = vmatprep.subr.mxu0 %v6415_v49  ;;  %3617 = vmatprep.subr.mxu1 %v6418_v50 }
 0xb90   :  { %3547 = vmatpush1.msra.mxu0 %v6421_v61  ;;  %3618 = vmatpush1.msra.mxu1 %v6424_v7 }
 0xb91   :  { %3548 = vmatprep.subr.mxu0 %v6427_v0  ;;  %3619 = vmatprep.subr.mxu1 %v6430_v58 }
 0xb92   :  { %3549 = vmatpush1.msra.mxu0 %v6433_v53  ;;  %3620 = vmatpush1.msra.mxu1 %v6436_v3 }
 0xb93   :  { %3550 = vmatprep.subr.mxu0 %v6439_v34  ;;  %3621 = vmatprep.subr.mxu1 %v6442_v36 }
 0xb94   :  { %3551 = vmatpush1.msra.mxu0 %v6445_v6  ;;  %3622 = vmatpush1.msra.mxu1 %v6448_v2 }
 0xb95   :  { %3552 = vmatprep.subr.mxu0 %v6451_v45  ;;  %3623 = vmatprep.subr.mxu1 %v6454_v57 }
 0xb96   :  { %3553 = vmatpush1.msra.mxu0 %v6457_v52  ;;  %3624 = vmatpush1.msra.mxu1 %v6460_v1 }
 0xb97   :  { %3554 = vmatprep.subr.mxu0 %v6463_v63  ;;  %3625 = vmatprep.subr.mxu1 %v6466_v59 }
 0xb98   :  { %3555 = vmatpush1.msra.mxu0 %v6469_v62  ;;  %3626 = vmatpush1.msra.mxu1 %v6472_v54 }
 0xb99   :  { %3556 = vmatprep.subr.mxu0 %v6475_v27  ;;  %3627 = vmatprep.subr.mxu1 %v6478_v11 }
 0xb9a   :  { %3557 = vmatpush1.msra.mxu0 %v6481_v4  ;;  %3628 = vmatpush1.msra.mxu1 %v6484_v10 }
 0xb9b   :  { %3558 = vmatprep.subr.mxu0 %v6487_v31  ;;  %3629 = vmatprep.subr.mxu1 %v6490_v12 }
 0xb9c   :  { %3559 = vmatpush1.msra.mxu0 %v6493_v19  ;;  %3630 = vmatpush1.msra.mxu1 %v6496_v25 }
 0xb9d   :  { %3560 = vmatprep.subr.mxu0 %v6499_v29  ;;  %3631 = vmatprep.subr.mxu1 %v6502_v15 }
 0xb9e   :  { %3561 = vmatpush1.msra.mxu0 %v6505_v23  ;;  %3632 = vmatpush1.msra.mxu1 %v6508_v16 }
 0xb9f   :  { %3562 = vmatprep.subr.mxu0 %v6511_v26  ;;  %3633 = vmatprep.subr.mxu1 %v6514_v32  ;;  %v7411_v26 = vld [vmem:[#allocation54_spill] sm:$0xff] }
 0xba0   :  { %3563 = vmatpush1.msra.mxu0 %v6517_v13  ;;  %3634 = vmatpush1.msra.mxu1 %v6520_v30  ;;  %v2576_v16 = vadd.f32 %v7411_v26, %v6123_v14 }
 0xba1   :  { %3564 = vmatprep.subr.mxu0 %v6523_v37  ;;  %3635 = vmatprep.subr.mxu1 %v6526_v60  ;;  %v6541_v37 = vld [vmem:[#allocation8 + $0x20] sm:$0xff]  ;;  %v6544_v60 = vld [vmem:[#allocation8 + $0x30] sm:$0xff] }
 0xba2   :  { %3565 = vmatpush1.msra.mxu0 %v6529_v21  ;;  %3636 = vmatpush1.msra.mxu1 %v6532_v24  ;;  %7403 = vst [vmem:[#allocation16_spill] sm:$0xff] %v6541_v37  ;;  %7404 = vst [vmem:[#allocation47_spill] sm:$0xff] %v6544_v60  ;;  %v6547_v21 = vld [vmem:[#allocation8 + $0x8] sm:$0xff]  ;;  %v6550_v24 = vld [vmem:[#allocation8 + $0x18] sm:$0xff] }
 0xba3   :  { %3566 = vmatprep.subr.mxu0 %v6535_v17  ;;  %3637 = vmatprep.subr.mxu1 %v6538_v20  ;;  %7405 = vst [vmem:[#allocation49_spill] sm:$0xff] %v6547_v21  ;;  %7406 = vst [vmem:[#allocation48_spill] sm:$0xff] %v6550_v24  ;;  %v6553_v17 = vld [vmem:[#allocation8] sm:$0xff]  ;;  %v6557_v20 = vld [vmem:[#allocation8 + $0x10] sm:$0xff] }
 0xba4   :  { %3567 = vmatpush1.msra.mxu0 %v6541_v37  ;;  %3638 = vmatpush1.msra.mxu1 %v6544_v60  ;;  %7407 = vst [vmem:[#allocation50_spill] sm:$0xff] %v6553_v17  ;;  %7408 = vst [vmem:[#allocation17_spill] sm:$0xff] %v6557_v20  ;;  %v7410_v37 = vld [vmem:[#allocation55_spill] sm:$0xff] }
 0xba5   :  { %3568 = vmatprep.subr.mxu0 %v6547_v21  ;;  %3639 = vmatprep.subr.mxu1 %v6550_v24  ;;  %v7409_v21 = vld [vmem:[#allocation52_spill] sm:$0xff]  ;;  %v2465_v30 = vadd.f32 %v7410_v37, %v7384_v9 }
 0xba6   :  { %3569 = vmatpush1.msra.mxu0 %v6553_v17  ;;  %3602 = vmatprep.mubr.f32.mxu0 %v7378_v56  ;;  %v2463_v60 = vadd.f32 %v7409_v21, %v7382_v8  ;;  %v7412_v21 = vld [vmem:[#allocation57_spill] sm:$0xff] }
 0xba7   :  { %3640 = vmatpush1.msra.mxu1 %v6557_v20  ;;  %3673 = vmatprep.mubr.f32.mxu1 %v7378_v56  ;;  %v2578_v8 = vadd.f32 %v7412_v21, %v6129_v35  ;;  %v7420_v21 = vld [vmem:[#allocation33_spill] sm:$0xff] }
 0xba8   :  { %3706 = vmatprep.subr.mxu0 %v6355_v5  ;;  %3777 = vmatprep.subr.mxu1 %v6358_v18 }
 0xc47   :  { %v3436_v24 = vpop.f32.mrf.mxu0  ;;  %v3507_v13 = vpop.f32.mrf.mxu1 }
 0xc48   :  { %v3512_v17 = vadd.f32 %v3436_v24, %v2463_v60  ;;  %v3514_v56 = vadd.f32 %v3507_v13, %v2576_v16 }
 0xc49   :  { %v3438_v32 = vpop.f32.mrf.mxu0  ;;  %v3509_v18 = vpop.f32.mrf.mxu1 }
 0xc4a   :  { %v3516_v20 = vmul.f32 0.5, %v3512_v17  ;;  %v3513_v23 = vadd.f32 %v3438_v32, %v2465_v30  ;;  %v3515_v15 = vadd.f32 %v3509_v18, %v2578_v8  ;;  %v7418_v30 = vld [vmem:[#allocation32_spill] sm:$0xff] }
 0xc4c   :  { %4492 = vtanh.f32 %v3516_v20  ;;  %v3520_v5 = vmul.f32 0.5, %v3513_v23  ;;  %v3525_v29 = vmul.f32 0.5, %v3515_v15  ;;  %v7417_v15 = vld [vmem:[#allocation30_spill] sm:$0xff]  ;;  %v7419_v20 = vld [vmem:[#allocation31_spill] sm:$0xff] }
 0xc4e   :  { %4494 = vtanh.f32 %v3520_v5 }
 0xc4f   :  { %4496 = vtanh.f32 %v3514_v56 }
 0xc50   :  { %4498 = vtanh.f32 %v3525_v29  ;;  %v7416_v29 = vld [vmem:[#allocation41_spill] sm:$0xff] }
 0xc59   :  { %v4493_v37 = vpop.eup %4492 }
 0xc5a   :  { %v3518_v60 = vmul.f32 0.5, %v4493_v37  ;;  %v7421_v37 = vld [vmem:[#allocation40_spill] sm:$0xff] }
 0xc5b   :  { %v4495_v24 = vpop.eup %4494 }
 0xc5c   :  { %v3519_v9 = vadd.f32 0.5, %v3518_v60  ;;  %v3522_v25 = vmul.f32 0.5, %v4495_v24  ;;  %v4497_v26 = vpop.eup %4496  ;;  %v7422_v60 = vld [vmem:[#allocation42_spill] sm:$0xff]  ;;  %v7423_v24 = vld [vmem:[#allocation43_spill] sm:$0xff] }
 0xc5d   :  { %v4499_v56 = vpop.eup %4498 }
 0xc5e   :  { %v3523_v17 = vadd.f32 0.5, %v3522_v25  ;;  %v3530_v32 = vmul.f32 %v4497_v26, %v3519_v9  ;;  %v3527_v5 = vmul.f32 0.5, %v4499_v56  ;;  %v7413_v9 = vld [vmem:[#allocation27_spill] sm:$0xff]  ;;  %v7424_v26 = vld [vmem:[#allocation45_spill] sm:$0xff]  ;;  %v7428_v56 = vld [vmem:[#allocation16_spill] sm:$0xff] }
 0xc5f   :  { %v7415_v25 = vld [vmem:[#allocation39_spill] sm:$0xff] }
 0xc60   :  { %v3529_v16 = vmul.f32 %v3523_v17, %v6370_v51  ;;  %v3528_v13 = vadd.f32 0.5, %v3527_v5  ;;  %v7414_v51 = vld [vmem:[#allocation29_spill] sm:$0xff]  ;;  %v7425_v17 = vld [vmem:[#allocation44_spill] sm:$0xff]  ;;  %v7429_v5 = vld [vmem:[#allocation47_spill] sm:$0xff] }
 0xc62   :  { %v6572_v23 = vadd.f32 %v3530_v32, %v3529_v16  ;;  %v7426_v32 = vld [vmem:[#allocation46_spill] sm:$0xff]  ;;  %v7427_v16 = vld [vmem:[#allocation15_spill] sm:$0xff] }
 0xc64   :  { %4500 = vtanh.f32 %v6572_v23 }
 0xc71   :  { %v4501_v18 = vpop.eup %4500 }
 0xc72   :  { %v3533_v8 = vmul.f32 %v4501_v18, %v3528_v13  ;;  %v7430_v13 = vld [vmem:[#allocation49_spill] sm:$0xff]  ;;  %v7431_v18 = vld [vmem:[#allocation48_spill] sm:$0xff] }
 0xc74   :  { %3603 = vmatmul.mubr.f32.vlgmr.msra.gmra.mxu0 %v3533_v8  ;;  %3674 = vmatmul.mubr.f32.vlgmr.msra.gmra.mxu1 %v3533_v8  ;;  %v7432_v8 = vld [vmem:[#allocation50_spill] sm:$0xff] }
 0xc75   :  { %3707 = vmatpush1.msra.mxu0 %v6373_v33  ;;  %3778 = vmatpush1.msra.mxu1 %v6376_v55 }
 0xc76   :  { %3708 = vmatprep.subr.mxu0 %v6379_v22  ;;  %3779 = vmatprep.subr.mxu1 %v6382_v38 }
 0xc77   :  { %3709 = vmatpush1.msra.mxu0 %v6385_v28  ;;  %3780 = vmatpush1.msra.mxu1 %v6388_v39 }
 0xc78   :  { %3710 = vmatprep.subr.mxu0 %v6391_v40  ;;  %3781 = vmatprep.subr.mxu1 %v6394_v41 }
 0xc79   :  { %3711 = vmatpush1.msra.mxu0 %v6397_v42  ;;  %3782 = vmatpush1.msra.mxu1 %v6400_v43 }
 0xc7a   :  { %3712 = vmatprep.subr.mxu0 %v6403_v44  ;;  %3783 = vmatprep.subr.mxu1 %v6406_v46 }
 0xc7b   :  { %3713 = vmatpush1.msra.mxu0 %v6409_v47  ;;  %3784 = vmatpush1.msra.mxu1 %v6412_v48 }
 0xc7c   :  { %3714 = vmatprep.subr.mxu0 %v6415_v49  ;;  %3785 = vmatprep.subr.mxu1 %v6418_v50 }
 0xc7d   :  { %3715 = vmatpush1.msra.mxu0 %v6421_v61  ;;  %3786 = vmatpush1.msra.mxu1 %v6424_v7 }
 0xc7e   :  { %3716 = vmatprep.subr.mxu0 %v6427_v0  ;;  %3787 = vmatprep.subr.mxu1 %v6430_v58 }
 0xc7f   :  { %3717 = vmatpush1.msra.mxu0 %v6433_v53  ;;  %3788 = vmatpush1.msra.mxu1 %v6436_v3 }
 0xc80   :  { %3718 = vmatprep.subr.mxu0 %v6439_v34  ;;  %3789 = vmatprep.subr.mxu1 %v6442_v36 }
 0xc81   :  { %3719 = vmatpush1.msra.mxu0 %v6445_v6  ;;  %3790 = vmatpush1.msra.mxu1 %v6448_v2 }
 0xc82   :  { %3720 = vmatprep.subr.mxu0 %v6451_v45  ;;  %3791 = vmatprep.subr.mxu1 %v6454_v57 }
 0xc83   :  { %3721 = vmatpush1.msra.mxu0 %v6457_v52  ;;  %3792 = vmatpush1.msra.mxu1 %v6460_v1 }
 0xc84   :  { %3722 = vmatprep.subr.mxu0 %v6463_v63  ;;  %3793 = vmatprep.subr.mxu1 %v6466_v59 }
 0xc85   :  { %3723 = vmatpush1.msra.mxu0 %v6469_v62  ;;  %3794 = vmatpush1.msra.mxu1 %v6472_v54 }
 0xc86   :  { %3724 = vmatprep.subr.mxu0 %v6475_v27  ;;  %3795 = vmatprep.subr.mxu1 %v6478_v11 }
 0xc87   :  { %3725 = vmatpush1.msra.mxu0 %v6481_v4  ;;  %3796 = vmatpush1.msra.mxu1 %v6484_v10 }
 0xc88   :  { %3726 = vmatprep.subr.mxu0 %v6487_v31  ;;  %3797 = vmatprep.subr.mxu1 %v6490_v12 }
 0xc89   :  { %3727 = vmatpush1.msra.mxu0 %v6493_v19  ;;  %3798 = vmatpush1.msra.mxu1 %v7413_v9 }
 0xc8a   :  { %3728 = vmatprep.subr.mxu0 %v7414_v51  ;;  %3799 = vmatprep.subr.mxu1 %v7415_v25 }
 0xc8b   :  { %3729 = vmatpush1.msra.mxu0 %v7416_v29  ;;  %3800 = vmatpush1.msra.mxu1 %v7417_v15 }
 0xc8c   :  { %3730 = vmatprep.subr.mxu0 %v7418_v30  ;;  %3801 = vmatprep.subr.mxu1 %v7419_v20  ;;  %v7441_v30 = vld [vmem:[#allocation58_spill] sm:$0xff] }
 0xc8d   :  { %3731 = vmatpush1.msra.mxu0 %v7420_v21  ;;  %3802 = vmatpush1.msra.mxu1 %v7421_v37  ;;  %v7439_v37 = vld [vmem:[#allocation64_spill] sm:$0xff]  ;;  %v2582_v15 = vadd.f32 %v7441_v30, %v6123_v14 }
 0xc8e   :  { %3732 = vmatprep.subr.mxu0 %v7422_v60  ;;  %3803 = vmatprep.subr.mxu1 %v7423_v24  ;;  %v7433_v60 = vmov 0.0   ;;  %v7434_v24 = vld [vmem:[#allocation17_spill] sm:$0xff] }
 0xc8f   :  { %3733 = vmatpush1.msra.mxu0 %v7424_v26  ;;  %3804 = vmatpush1.msra.mxu1 %v7425_v17  ;;  %v7435_v17 = vld [vmem:[#allocation26_spill] sm:$0xff] }
 0xc90   :  { %3734 = vmatprep.subr.mxu0 %v7426_v32  ;;  %3805 = vmatprep.subr.mxu1 %v7427_v16  ;;  %v7436_v32 = vld [vmem:[#allocation28_spill] sm:$0xff] }
 0xc91   :  { %3735 = vmatpush1.msra.mxu0 %v7428_v56  ;;  %3806 = vmatpush1.msra.mxu1 %v7429_v5  ;;  %v7437_v16 = vld [vmem:[#allocation60_spill] sm:$0xff] }
 0xc92   :  { %3736 = vmatprep.subr.mxu0 %v7430_v13  ;;  %3807 = vmatprep.subr.mxu1 %v7431_v18  ;;  %v7438_v56 = vld [vmem:[#allocation56_spill] sm:$0xff]  ;;  %v7440_v13 = vld [vmem:[#allocation63_spill] sm:$0xff] }
 0xc93   :  { %3737 = vmatpush1.msra.mxu0 %v7432_v8  ;;  %3770 = vmatprep.mubr.f32.mxu0 %v7433_v60  ;;  %v2469_v26 = vadd.f32 %v7438_v56, %v7437_v16  ;;  %v2471_v21 = vadd.f32 %v7440_v13, %v7439_v37  ;;  %v7442_v56 = vld [vmem:[#allocation14_spill] sm:$0xff] }
 0xc94   :  { %3808 = vmatpush1.msra.mxu1 %v7434_v24  ;;  %3841 = vmatprep.mubr.f32.mxu1 %v7433_v60  ;;  %v2584_v16 = vadd.f32 %v7442_v56, %v6129_v35 }
 0xc95   :  { %3874 = vmatprep.subr.mxu0 %v7435_v17  ;;  %3945 = vmatprep.subr.mxu1 %v7436_v32 }
 0xd34   :  { %v3604_v5 = vpop.f32.mrf.mxu0  ;;  %v3675_v20 = vpop.f32.mrf.mxu1 }
 0xd35   :  { %v3680_v18 = vadd.f32 %v3604_v5, %v2469_v26  ;;  %v3682_v60 = vadd.f32 %v3675_v20, %v2582_v15 }
 0xd36   :  { %v3606_v8 = vpop.f32.mrf.mxu0  ;;  %v3677_v32 = vpop.f32.mrf.mxu1 }
 0xd37   :  { %v3684_v24 = vmul.f32 0.5, %v3680_v18  ;;  %v3681_v29 = vadd.f32 %v3606_v8, %v2471_v21  ;;  %v3683_v25 = vadd.f32 %v3677_v32, %v2584_v16 }
 0xd39   :  { %4502 = vtanh.f32 %v3684_v24  ;;  %v3688_v17 = vmul.f32 0.5, %v3681_v29  ;;  %v3693_v51 = vmul.f32 0.5, %v3683_v25 }
 0xd3b   :  { %4504 = vtanh.f32 %v3688_v17 }
 0xd3c   :  { %4506 = vtanh.f32 %v3682_v60 }
 0xd3d   :  { %4508 = vtanh.f32 %v3693_v51 }
 0xd46   :  { %v4503_v13 = vpop.eup %4502 }
 0xd47   :  { %v3686_v26 = vmul.f32 0.5, %v4503_v13 }
 0xd48   :  { %v4505_v5 = vpop.eup %4504 }
 0xd49   :  { %v3687_v37 = vadd.f32 0.5, %v3686_v26  ;;  %v3690_v9 = vmul.f32 0.5, %v4505_v5  ;;  %v4507_v30 = vpop.eup %4506 }
 0xd4a   :  { %v4509_v20 = vpop.eup %4508 }
 0xd4b   :  { %v3691_v18 = vadd.f32 0.5, %v3690_v9  ;;  %v3698_v21 = vmul.f32 %v4507_v30, %v3687_v37  ;;  %v3695_v60 = vmul.f32 0.5, %v4509_v20 }
 0xd4d   :  { %v3697_v15 = vmul.f32 %v3691_v18, %v6572_v23  ;;  %v3696_v24 = vadd.f32 0.5, %v3695_v60 }
 0xd4f   :  { %v6650_v29 = vadd.f32 %v3698_v21, %v3697_v15 }
 0xd51   :  { %4510 = vtanh.f32 %v6650_v29 }
 0xd5e   :  { %v4511_v16 = vpop.eup %4510 }
 0xd5f   :  { %v3701_v25 = vmul.f32 %v4511_v16, %v3696_v24  ;;  %v4053_v24 = vld [vmem:[%s6836_s7 + $0x78] sm:$0xff]  ;;  %v4051_v16 = vld [vmem:[%s6836_s7 + $0x68] sm:$0xff] }
 0xd61   :  { %3771 = vmatmul.mubr.f32.vlgmr.msra.gmra.mxu0 %v3701_v25  ;;  %3842 = vmatmul.mubr.f32.vlgmr.msra.gmra.mxu1 %v3701_v25  ;;  %v4050_v25 = vld [vmem:[%s6836_s7 + $0x60] sm:$0xff] }
 0xd62   :  { %3875 = vmatpush1.msra.mxu0 %v6373_v33  ;;  %3946 = vmatpush1.msra.mxu1 %v6376_v55  ;;  %v7443_v33 = vld [vmem:[#allocation27_spill] sm:$0xff]  ;;  %v7444_v55 = vld [vmem:[#allocation29_spill] sm:$0xff] }
 0xd63   :  { %3876 = vmatprep.subr.mxu0 %v6379_v22  ;;  %3947 = vmatprep.subr.mxu1 %v6382_v38  ;;  %v7445_v22 = vld [vmem:[#allocation39_spill] sm:$0xff]  ;;  %v7446_v38 = vld [vmem:[#allocation41_spill] sm:$0xff] }
 0xd64   :  { %3877 = vmatpush1.msra.mxu0 %v6385_v28  ;;  %3948 = vmatpush1.msra.mxu1 %v6388_v39  ;;  %v7447_v28 = vld [vmem:[#allocation30_spill] sm:$0xff]  ;;  %v7448_v39 = vld [vmem:[#allocation32_spill] sm:$0xff] }
 0xd65   :  { %3878 = vmatprep.subr.mxu0 %v6391_v40  ;;  %3949 = vmatprep.subr.mxu1 %v6394_v41  ;;  %v7449_v40 = vld [vmem:[#allocation31_spill] sm:$0xff]  ;;  %v7450_v41 = vld [vmem:[#allocation33_spill] sm:$0xff] }
 0xd66   :  { %3879 = vmatpush1.msra.mxu0 %v6397_v42  ;;  %3950 = vmatpush1.msra.mxu1 %v6400_v43  ;;  %v7451_v42 = vld [vmem:[#allocation40_spill] sm:$0xff]  ;;  %v7452_v43 = vld [vmem:[#allocation42_spill] sm:$0xff] }
 0xd67   :  { %3880 = vmatprep.subr.mxu0 %v6403_v44  ;;  %3951 = vmatprep.subr.mxu1 %v6406_v46  ;;  %v7453_v44 = vld [vmem:[#allocation43_spill] sm:$0xff]  ;;  %v7454_v46 = vld [vmem:[#allocation45_spill] sm:$0xff] }
 0xd68   :  { %3881 = vmatpush1.msra.mxu0 %v6409_v47  ;;  %3952 = vmatpush1.msra.mxu1 %v6412_v48  ;;  %v7455_v47 = vld [vmem:[#allocation44_spill] sm:$0xff]  ;;  %v7456_v48 = vld [vmem:[#allocation46_spill] sm:$0xff] }
 0xd69   :  { %3882 = vmatprep.subr.mxu0 %v6415_v49  ;;  %3953 = vmatprep.subr.mxu1 %v6418_v50  ;;  %v7457_v49 = vld [vmem:[#allocation15_spill] sm:$0xff]  ;;  %v7458_v50 = vld [vmem:[#allocation16_spill] sm:$0xff] }
 0xd6a   :  { %3883 = vmatpush1.msra.mxu0 %v6421_v61  ;;  %3954 = vmatpush1.msra.mxu1 %v6424_v7  ;;  %v7459_v61 = vld [vmem:[#allocation47_spill] sm:$0xff]  ;;  %v7460_v7 = vld [vmem:[#allocation49_spill] sm:$0xff] }
 0xd6b   :  { %3884 = vmatprep.subr.mxu0 %v6427_v0  ;;  %3955 = vmatprep.subr.mxu1 %v6430_v58  ;;  %v7461_v0 = vld [vmem:[#allocation48_spill] sm:$0xff]  ;;  %v7462_v58 = vld [vmem:[#allocation50_spill] sm:$0xff] }
 0xd6c   :  { %3885 = vmatpush1.msra.mxu0 %v6433_v53  ;;  %3956 = vmatpush1.msra.mxu1 %v6436_v3  ;;  %v7463_v53 = vmov 0.0   ;;  %v7464_v3 = vld [vmem:[#allocation17_spill] sm:$0xff] }
 0xd6d   :  { %3886 = vmatprep.subr.mxu0 %v6439_v34  ;;  %3957 = vmatprep.subr.mxu1 %v6442_v36  ;;  %v7465_v34 = vld [vmem:[#allocation60_spill] sm:$0xff] }
 0xd6e   :  { %3887 = vmatpush1.msra.mxu0 %v6445_v6  ;;  %3958 = vmatpush1.msra.mxu1 %v6448_v2  ;;  %v7466_v36 = vld [vmem:[#allocation36_spill] sm:$0xff] }
 0xd6f   :  { %3888 = vmatprep.subr.mxu0 %v6451_v45  ;;  %3959 = vmatprep.subr.mxu1 %v6454_v57  ;;  %v2475_v6 = vadd.f32 %v7466_v36, %v7465_v34  ;;  %v7467_v45 = vld [vmem:[#allocation64_spill] sm:$0xff]  ;;  %v7468_v57 = vld [vmem:[#allocation59_spill] sm:$0xff] }
 0xd70   :  { %3889 = vmatpush1.msra.mxu0 %v6457_v52  ;;  %3960 = vmatpush1.msra.mxu1 %v6460_v1  ;;  %v2477_v52 = vadd.f32 %v7468_v57, %v7467_v45  ;;  %v4138_v36 = vld [vmem:[#allocation9 + $0x30] sm:$0xff]  ;;  %v4135_v57 = vld [vmem:[#allocation9 + $0x18] sm:$0xff] }
 0xd71   :  { %3890 = vmatprep.subr.mxu0 %v6463_v63  ;;  %3961 = vmatprep.subr.mxu1 %v6466_v59 }
 0xd72   :  { %3891 = vmatpush1.msra.mxu0 %v6469_v62  ;;  %3962 = vmatpush1.msra.mxu1 %v6472_v54  ;;  %v7469_v62 = vld [vmem:[#allocation38_spill] sm:$0xff] }
 0xd73   :  { %3892 = vmatprep.subr.mxu0 %v6475_v27  ;;  %3963 = vmatprep.subr.mxu1 %v6478_v11  ;;  %v2588_v54 = vadd.f32 %v7469_v62, %v6123_v14 }
 0xd74   :  { %3893 = vmatpush1.msra.mxu0 %v6481_v4  ;;  %3964 = vmatpush1.msra.mxu1 %v6484_v10 }
 0xd75   :  { %3894 = vmatprep.subr.mxu0 %v6487_v31  ;;  %3965 = vmatprep.subr.mxu1 %v6490_v12  ;;  %v7470_v12 = vld [vmem:[#allocation61_spill] sm:$0xff] }
 0xd76   :  { %3895 = vmatpush1.msra.mxu0 %v6493_v19  ;;  %3966 = vmatpush1.msra.mxu1 %v7443_v33  ;;  %v2590_v19 = vadd.f32 %v7470_v12, %v6129_v35  ;;  %v4049_v33 = vld [vmem:[%s6836_s7 + $0x58] sm:$0xff] }
 0xd77   :  { %3896 = vmatprep.subr.mxu0 %v7444_v55  ;;  %3967 = vmatprep.subr.mxu1 %v7445_v22  ;;  %v4048_v55 = vld [vmem:[%s6836_s7 + $0x50] sm:$0xff]  ;;  %v4047_v22 = vld [vmem:[%s6836_s7 + $0x48] sm:$0xff] }
 0xd78   :  { %3897 = vmatpush1.msra.mxu0 %v7446_v38  ;;  %3968 = vmatpush1.msra.mxu1 %v7447_v28  ;;  %v4046_v38 = vld [vmem:[%s6836_s7 + $0x40] sm:$0xff]  ;;  %v4045_v28 = vld [vmem:[%s6836_s7 + $0x38] sm:$0xff] }
 0xd79   :  { %3898 = vmatprep.subr.mxu0 %v7448_v39  ;;  %3969 = vmatprep.subr.mxu1 %v7449_v40  ;;  %v4044_v39 = vld [vmem:[%s6836_s7 + $0x30] sm:$0xff]  ;;  %v4043_v40 = vld [vmem:[%s6836_s7 + $0x28] sm:$0xff] }
 0xd7a   :  { %3899 = vmatpush1.msra.mxu0 %v7450_v41  ;;  %3970 = vmatpush1.msra.mxu1 %v7451_v42  ;;  %v4042_v41 = vld [vmem:[%s6836_s7 + $0x20] sm:$0xff]  ;;  %v4041_v42 = vld [vmem:[%s6836_s7 + $0x18] sm:$0xff] }
 0xd7b   :  { %3900 = vmatprep.subr.mxu0 %v7452_v43  ;;  %3971 = vmatprep.subr.mxu1 %v7453_v44  ;;  %v4040_v43 = vld [vmem:[%s6836_s7 + $0x10] sm:$0xff]  ;;  %v4039_v44 = vld [vmem:[%s6836_s7 + $0x8] sm:$0xff] }
 0xd7c   :  { %3901 = vmatpush1.msra.mxu0 %v7454_v46  ;;  %3972 = vmatpush1.msra.mxu1 %v7455_v47  ;;  %v4038_v46 = vld [vmem:[%s6836_s7] sm:$0xff]  ;;  %v4147_v47 = vld [vmem:[#allocation9 + $0x78] sm:$0xff] }
 0xd7d   :  { %3902 = vmatprep.subr.mxu0 %v7456_v48  ;;  %3973 = vmatprep.subr.mxu1 %v7457_v49  ;;  %v4146_v48 = vld [vmem:[#allocation9 + $0x70] sm:$0xff]  ;;  %v4145_v49 = vld [vmem:[#allocation9 + $0x68] sm:$0xff] }
 0xd7e   :  { %3903 = vmatpush1.msra.mxu0 %v7458_v50  ;;  %3974 = vmatpush1.msra.mxu1 %v7459_v61  ;;  %v4144_v50 = vld [vmem:[#allocation9 + $0x60] sm:$0xff]  ;;  %v4143_v61 = vld [vmem:[#allocation9 + $0x58] sm:$0xff] }
 0xd7f   :  { %3904 = vmatprep.subr.mxu0 %v7460_v7  ;;  %3975 = vmatprep.subr.mxu1 %v7461_v0  ;;  %v4142_v7 = vld [vmem:[#allocation9 + $0x50] sm:$0xff]  ;;  %v4141_v0 = vld [vmem:[#allocation9 + $0x48] sm:$0xff] }
 0xd80   :  { %3905 = vmatpush1.msra.mxu0 %v7462_v58  ;;  %3938 = vmatprep.mubr.f32.mxu0 %v7463_v53  ;;  %v4140_v58 = vld [vmem:[#allocation9 + $0x40] sm:$0xff] }
 0xd81   :  { %3976 = vmatpush1.msra.mxu1 %v7464_v3  ;;  %4009 = vmatprep.mubr.f32.mxu1 %v7463_v53  ;;  %v4139_v3 = vld [vmem:[#allocation9 + $0x38] sm:$0xff] }
 0xd82   :  { %4292 = vmatprep.subr.mxu0 %v7463_v53  ;;  %4327 = vmatprep.subr.mxu1 %v7463_v53 }
 0xe21   :  { %v3772_v2 = vpop.f32.mrf.mxu0  ;;  %v3843_v63 = vpop.f32.mrf.mxu1 }
 0xe22   :  { %v3848_v1 = vadd.f32 %v3772_v2, %v2475_v6  ;;  %v3850_v4 = vadd.f32 %v3843_v63, %v2588_v54  ;;  %v4137_v6 = vld [vmem:[#allocation9 + $0x28] sm:$0xff]  ;;  %v4136_v2 = vld [vmem:[#allocation9 + $0x20] sm:$0xff] }
 0xe23   :  { %v3774_v59 = vpop.f32.mrf.mxu0  ;;  %v3845_v31 = vpop.f32.mrf.mxu1 }
 0xe24   :  { %v3852_v27 = vmul.f32 0.5, %v3848_v1  ;;  %v3849_v11 = vadd.f32 %v3774_v59, %v2477_v52  ;;  %v3851_v23 = vadd.f32 %v3845_v31, %v2590_v19  ;;  %v7471_v52 = vld [vmem:[#allocation62_spill] sm:$0xff]  ;;  %v7472_v59 = vld [vmem:[#allocation65_spill] sm:$0xff] }
 0xe25   :  { %v2481_v1 = vadd.f32 %v7471_v52, %v7465_v34  ;;  %v2483_v62 = vadd.f32 %v7472_v59, %v7467_v45  ;;  %v7474_v34 = vld [vmem:[#allocation66_spill] sm:$0xff] }
 0xe26   :  { %4512 = vtanh.f32 %v3852_v27  ;;  %v3856_v10 = vmul.f32 0.5, %v3849_v11  ;;  %v3861_v9 = vmul.f32 0.5, %v3851_v23 }
 0xe28   :  { %4514 = vtanh.f32 %v3856_v10 }
 0xe29   :  { %4516 = vtanh.f32 %v3850_v4  ;;  %v7473_v4 = vld [vmem:[#allocation35_spill] sm:$0xff] }
 0xe2a   :  { %4518 = vtanh.f32 %v3861_v9  ;;  %v2594_v10 = vadd.f32 %v7473_v4, %v6123_v14 }
 0xe33   :  { %v4513_v51 = vpop.eup %4512 }
 0xe34   :  { %v3854_v37 = vmul.f32 0.5, %v4513_v51  ;;  %v2596_v51 = vadd.f32 %v7474_v34, %v6129_v35 }
 0xe35   :  { %v4515_v8 = vpop.eup %4514 }
 0xe36   :  { %v3855_v17 = vadd.f32 0.5, %v3854_v37  ;;  %v3858_v32 = vmul.f32 0.5, %v4515_v8  ;;  %v4517_v56 = vpop.eup %4516 }
 0xe37   :  { %v4519_v18 = vpop.eup %4518 }
 0xe38   :  { %v3859_v13 = vadd.f32 0.5, %v3858_v32  ;;  %v3866_v26 = vmul.f32 %v4517_v56, %v3855_v17  ;;  %v3863_v21 = vmul.f32 0.5, %v4519_v18 }
 0xe3a   :  { %v3865_v5 = vmul.f32 %v3859_v13, %v6650_v29  ;;  %v3864_v15 = vadd.f32 0.5, %v3863_v21  ;;  %v4052_v29 = vld [vmem:[%s6836_s7 + $0x70] sm:$0xff] }
 0xe3c   :  { %v6728_v30 = vadd.f32 %v3866_v26, %v3865_v5 }
 0xe3e   :  { %4520 = vtanh.f32 %v6728_v30 }
 0xe4b   :  { %v4521_v20 = vpop.eup %4520 }
 0xe4c   :  { %v3869_v60 = vmul.f32 %v4521_v20, %v3864_v15 }
 0xe4e   :  { %3939 = vmatmul.mubr.f32.vlgmr.msra.gmra.mxu0 %v3869_v60  ;;  %4010 = vmatmul.mubr.f32.vlgmr.msra.gmra.mxu1 %v3869_v60 }
 0xe4f   :  { %4293 = vmatpush3.msra.mxu0 %v4053_v24  ;;  %4324 = vmatprep.mubr.msk.f32.mxu0 %vm4695_vm1, %v7463_v53 }
 0xe50   :  { %4294 = vmatprep.subr.mxu0 %v7463_v53  ;;  %4359 = vmatprep.mubr.msk.f32.mxu1 %vm4695_vm1, %v7463_v53 }
 0xe51   :  { %4295 = vmatpush3.msra.mxu0 %v4052_v29  ;;  %4328 = vmatpush3.msra.mxu1 %v4147_v47  ;;  %v4134_v29 = vld [vmem:[#allocation9 + $0x10] sm:$0xff] }
 0xe52   :  { %4296 = vmatprep.subr.mxu0 %v7463_v53  ;;  %4329 = vmatprep.subr.mxu1 %v7463_v53 }
 0xe53   :  { %4297 = vmatpush3.msra.mxu0 %v4051_v16  ;;  %4330 = vmatpush3.msra.mxu1 %v4146_v48  ;;  %v4133_v16 = vld [vmem:[#allocation9 + $0x8] sm:$0xff] }
 0xe54   :  { %4298 = vmatprep.subr.mxu0 %v7463_v53  ;;  %4331 = vmatprep.subr.mxu1 %v7463_v53 }
 0xe55   :  { %4299 = vmatpush3.msra.mxu0 %v4050_v25  ;;  %4332 = vmatpush3.msra.mxu1 %v4145_v49  ;;  %v4132_v25 = vld [vmem:[#allocation9] sm:$0xff] }
 0xe56   :  { %4300 = vmatprep.subr.mxu0 %v7463_v53  ;;  %4333 = vmatprep.subr.mxu1 %v7463_v53 }
 0xe57   :  { %4301 = vmatpush3.msra.mxu0 %v4049_v33  ;;  %4334 = vmatpush3.msra.mxu1 %v4144_v50 }
 0xe58   :  { %4302 = vmatprep.subr.mxu0 %v7463_v53  ;;  %4335 = vmatprep.subr.mxu1 %v7463_v53 }
 0xe59   :  { %4303 = vmatpush3.msra.mxu0 %v4048_v55  ;;  %4336 = vmatpush3.msra.mxu1 %v4143_v61 }
 0xe5a   :  { %4304 = vmatprep.subr.mxu0 %v7463_v53  ;;  %4337 = vmatprep.subr.mxu1 %v7463_v53 }
 0xe5b   :  { %4305 = vmatpush3.msra.mxu0 %v4047_v22  ;;  %4338 = vmatpush3.msra.mxu1 %v4142_v7 }
 0xe5c   :  { %4306 = vmatprep.subr.mxu0 %v7463_v53  ;;  %4339 = vmatprep.subr.mxu1 %v7463_v53 }
 0xe5d   :  { %4307 = vmatpush3.msra.mxu0 %v4046_v38  ;;  %4340 = vmatpush3.msra.mxu1 %v4141_v0 }
 0xe5e   :  { %4308 = vmatprep.subr.mxu0 %v7463_v53  ;;  %4341 = vmatprep.subr.mxu1 %v7463_v53 }
 0xe5f   :  { %4309 = vmatpush3.msra.mxu0 %v4045_v28  ;;  %4342 = vmatpush3.msra.mxu1 %v4140_v58  ;;  %v4256_v28 = vld [vmem:[%s6839_s10] ss:$0 sm:$0xff] }
 0xe60   :  { %4310 = vmatprep.subr.mxu0 %v7463_v53  ;;  %4343 = vmatprep.subr.mxu1 %v7463_v53 }
 0xe61   :  { %4311 = vmatpush3.msra.mxu0 %v4044_v39  ;;  %4344 = vmatpush3.msra.mxu1 %v4139_v3 }
 0xe62   :  { %4312 = vmatprep.subr.mxu0 %v7463_v53  ;;  %4345 = vmatprep.subr.mxu1 %v7463_v53 }
 0xe63   :  { %4313 = vmatpush3.msra.mxu0 %v4043_v40  ;;  %4346 = vmatpush3.msra.mxu1 %v4138_v36 }
 0xe64   :  { %4314 = vmatprep.subr.mxu0 %v7463_v53  ;;  %4347 = vmatprep.subr.mxu1 %v7463_v53 }
 0xe65   :  { %4315 = vmatpush3.msra.mxu0 %v4042_v41  ;;  %4348 = vmatpush3.msra.mxu1 %v4137_v6 }
 0xe66   :  { %4316 = vmatprep.subr.mxu0 %v7463_v53  ;;  %4349 = vmatprep.subr.mxu1 %v7463_v53 }
 0xe67   :  { %4317 = vmatpush3.msra.mxu0 %v4041_v42  ;;  %4350 = vmatpush3.msra.mxu1 %v4136_v2 }
 0xe68   :  { %4318 = vmatprep.subr.mxu0 %v7463_v53  ;;  %4351 = vmatprep.subr.mxu1 %v7463_v53 }
 0xe69   :  { %4319 = vmatpush3.msra.mxu0 %v4040_v43  ;;  %4352 = vmatpush3.msra.mxu1 %v4135_v57 }
 0xe6a   :  { %4320 = vmatprep.subr.mxu0 %v7463_v53  ;;  %4353 = vmatprep.subr.mxu1 %v7463_v53 }
 0xe6b   :  { %4321 = vmatpush3.msra.mxu0 %v4039_v44  ;;  %4354 = vmatpush3.msra.mxu1 %v4134_v29 }
 0xe6c   :  { %4322 = vmatprep.subr.mxu0 %v7463_v53  ;;  %4355 = vmatprep.subr.mxu1 %v7463_v53 }
 0xe6d   :  { %4323 = vmatpush3.msra.mxu0 %v4038_v46  ;;  %4356 = vmatpush3.msra.mxu1 %v4133_v16 }
 0xe6e   :  { %4357 = vmatprep.subr.mxu1 %v7463_v53 }
 0xe6f   :  { %4358 = vmatpush3.msra.mxu1 %v4132_v25 }
 0xf0e   :  { %v3940_v63 = vpop.f32.mrf.mxu0  ;;  %v4011_v27 = vpop.f32.mrf.mxu1 }
 0xf0f   :  { %v4016_v54 = vadd.f32 %v3940_v63, %v2481_v1  ;;  %v4018_v19 = vadd.f32 %v4011_v27, %v2594_v10 }
 0xf10   :  { %v3942_v11 = vpop.f32.mrf.mxu0  ;;  %v4013_v9 = vpop.f32.mrf.mxu1 }
 0xf11   :  { %v4020_v31 = vmul.f32 0.5, %v4016_v54  ;;  %v4017_v12 = vadd.f32 %v3942_v11, %v2483_v62  ;;  %v4019_v37 = vadd.f32 %v4013_v9, %v2596_v51 }
 0xf13   :  { %4522 = vtanh.f32 %v4020_v31  ;;  %v4024_v23 = vmul.f32 0.5, %v4017_v12  ;;  %v4029_v8 = vmul.f32 0.5, %v4019_v37 }
 0xf15   :  { %4524 = vtanh.f32 %v4024_v23 }
 0xf16   :  { %4526 = vtanh.f32 %v4018_v19 }
 0xf17   :  { %4528 = vtanh.f32 %v4029_v8 }
 0xf20   :  { %v4523_v45 = vpop.eup %4522 }
 0xf21   :  { %v4022_v17 = vmul.f32 0.5, %v4523_v45 }
 0xf22   :  { %v4525_v32 = vpop.eup %4524 }
 0xf23   :  { %v4023_v56 = vadd.f32 0.5, %v4022_v17  ;;  %v4026_v13 = vmul.f32 0.5, %v4525_v32  ;;  %v4527_v14 = vpop.eup %4526 }
 0xf24   :  { %v4529_v15 = vpop.eup %4528 }
 0xf25   :  { %v4027_v26 = vadd.f32 0.5, %v4026_v13  ;;  %v4034_v5 = vmul.f32 %v4527_v14, %v4023_v56  ;;  %v4031_v20 = vmul.f32 0.5, %v4529_v15 }
 0xf27   :  { %v4033_v18 = vmul.f32 %v4027_v26, %v6728_v30  ;;  %v4032_v60 = vadd.f32 0.5, %v4031_v20  ;;  %v4255_v30 = vld [vmem:[%s6837_s8] ss:$0 sm:$0xff] }
 0xf29   :  { %v4035_v21 = vadd.f32 %v4034_v5, %v4033_v18 }
 0xf2b   :  { %4530 = vtanh.f32 %v4035_v21 }
 0xf38   :  { %v4531_v24 = vpop.eup %4530 }
 0xf39   :  { %v4037_v35 = vmul.f32 %v4531_v24, %v4032_v60 }
 0xf3b   :  { %4325 = vmatmul.mubr.f32.vlgmr.msra.gmra.mxu0 %v4037_v35 }
 0xffb   :  { %v4127_v33 = vpop.f32.mrf.mxu0 }
 0xffc   :  { %v4128_v55 = vadd.f32 %v4255_v30, %v4127_v33 }
 0xffd   :  { %v4326_v22 = vpop.f32.mrf.mxu0 }
 0xffe   :  { %v4131_v38 = vmax.f32 %v4128_v55, 0.0 }
0x1000   :  { %4360 = vmatmul.mubr.f32.vlgmr.msra.gmra.mxu1 %v4131_v38 }
0x10c0   :  { %v4221_v39 = vpop.f32.mrf.mxu1 }
0x10c1   :  { %v4222_v40 = vadd.f32 %v4256_v28, %v4221_v39 }
0x10c2   :  { %v4361_v41 = vpop.f32.mrf.mxu1 }
0x10c3   :  { %v4257_v42 = vmul.f32 -1.442695, %v4222_v40 }
0x10c5   :  { %4532 = vpow2.f32 %v4257_v42 }
0x10d2   :  { %v4533_v53 = vpop.eup %4532 }
0x10d3   :  { %v4228_v43 = vadd.f32 1.0, %v4533_v53 }
0x10d5   :  { %4534 = vrcp.f32 %v4228_v43 }
0x10e2   :  { %v4535_v44 = vpop.eup %4534 }
0x10e3   :  { %4231 = vst [vmem:[%s6840_s11] sm:$0xff] %v4535_v44 }
0x10e4   :  { %4236 = vsyncpa [#allocation5], 1 }
0x10e5   :  { %4237 = vsyncpa [#allocation7], 1 }
0x10e6   :  { %4238 = vsyncpa [#allocation10], 1 }

</bundles_post_ra>
